<compile_context>
chip_gen: v6e
topology: v6e:2x2x1
jax: 0.10.0
libtpu: 0.0.40
codegen_flags: <defaults>
</compile_context>

<pallas_src>
import functools
import math

import jax
import jax.numpy as jnp
from jax import lax
from jax.experimental import pallas as pl
from jax.experimental.pallas import tpu as pltpu


# ----------------------------------------------------------------------------
# Pallas kernel
# ----------------------------------------------------------------------------
def _music_lstm_kernel(xn_ref, xd_ref,
                       wih0_n_ref, wihr_n_ref, whh_n_ref, b_n_ref,
                       wih0_d_ref, wihr_d_ref, whh_d_ref, b_d_ref,
                       lin_w_ref, lin_b_ref,
                       out_ref,
                       *, num_layers, seq_len, hidden, batch):
    B, H, L = batch, hidden, num_layers

    # ---- hoist all loop-invariant loads / broadcasts out of the time loop ---
    wih0_n = wih0_n_ref[...]                                     # (1, 4H)
    wih0_d = wih0_d_ref[...]                                     # (1, 4H)
    whh_n = [whh_n_ref[l] for l in range(L)]                     # L x (H, 4H)
    whh_d = [whh_d_ref[l] for l in range(L)]
    wihr_n = [wihr_n_ref[l - 1] for l in range(1, L)]            # (L-1) x (H, 4H)
    wihr_d = [wihr_d_ref[l - 1] for l in range(1, L)]
    b_n = [jnp.broadcast_to(b_n_ref[l], (B, 4 * H)) for l in range(L)]   # L x (B, 4H)
    b_d = [jnp.broadcast_to(b_d_ref[l], (B, 4 * H)) for l in range(L)]

    def cell(x_contrib, h, c, whh, b):
        gates = (x_contrib
                 + jnp.dot(h, whh, preferred_element_type=jnp.float32)
                 + b)
        # PyTorch gate order: i, f, g, o
        i_g = jax.nn.sigmoid(gates[:, 0:H])
        f_g = jax.nn.sigmoid(gates[:, H:2 * H])
        g_g = jnp.tanh(gates[:, 2 * H:3 * H])
        o_g = jax.nn.sigmoid(gates[:, 3 * H:4 * H])
        c_new = f_g * c + i_g * g_g
        h_new = o_g * jnp.tanh(c_new)
        return h_new, c_new

    def step(t, carry):
        hs_n, cs_n, hs_d, cs_d = carry
        xn_t = xn_ref[t]                      # (B, 1) dynamic first-axis read
        xd_t = xd_ref[t]                      # (B, 1)
        # Layer-0 input contribution: rank-1 VPU broadcast (no padded matmul).
        in_n = xn_t * wih0_n                  # (B, 1) * (1, 4H) -> (B, 4H)
        in_d = xd_t * wih0_d

        new_hs_n, new_cs_n, new_hs_d, new_cs_d = [], [], [], []
        for l in range(L):                    # static, small
            if l > 0:
                in_n = jnp.dot(new_hs_n[l - 1], wihr_n[l - 1],
                               preferred_element_type=jnp.float32)
                in_d = jnp.dot(new_hs_d[l - 1], wihr_d[l - 1],
                               preferred_element_type=jnp.float32)
            # The two streams are independent; emitting both cells in the same
            # basic block lets the LLO scheduler interleave their MXU/EUP/VPU
            # work.
            h_n, c_n = cell(in_n, hs_n[l], cs_n[l], whh_n[l], b_n[l])
            h_d, c_d = cell(in_d, hs_d[l], cs_d[l], whh_d[l], b_d[l])
            new_hs_n.append(h_n); new_cs_n.append(c_n)
            new_hs_d.append(h_d); new_cs_d.append(c_d)
            # TODO(synk): inter-layer dropout (p=0.2) is training-only in
            # nn.LSTM; omitted here (inference semantics).
        return (tuple(new_hs_n), tuple(new_cs_n),
                tuple(new_hs_d), tuple(new_cs_d))

    zeros = tuple(jnp.zeros((B, H), jnp.float32) for _ in range(L))
    init = (zeros, zeros, zeros, zeros)
    unroll = True if seq_len <= 16 else 4
    hs_n, cs_n, hs_d, cs_d = lax.fori_loop(0, seq_len, step, init,
                                           unroll=unroll)

    h_notes = hs_n[L - 1]                     # out_notes[:, -1, :]
    h_dur = hs_d[L - 1]                       # out_durations[:, -1, :]

    # cat([h_notes, h_dur], dim=1) @ W.T + b, as a split matmul (avoids an
    # in-kernel lane concat).  lin_w / lin_b / out are lane-padded to 128.
    out = (jnp.dot(h_notes, lin_w_ref[0:H, :],
                   preferred_element_type=jnp.float32)
           + jnp.dot(h_dur, lin_w_ref[H:2 * H, :],
                     preferred_element_type=jnp.float32)
           + lin_b_ref[...])
    out_ref[...] = out


# ----------------------------------------------------------------------------
# Wrapper (parameter packing + pallas_call)
# ----------------------------------------------------------------------------
def music_lstm_forward(X, params):
    B, T, _ = X.shape
    H = params["hidden_size"]
    L = params["num_layers"]
    C = params["lin_w"].shape[0]
    C_pad = max(128, ((C + 127) // 128) * 128)   # lane-dense output width

    # Time-major scalar streams, shape (T, B, 1); no H-padding.
    x_notes = jnp.transpose(X[:, :, 0:1], (1, 0, 2)).astype(jnp.float32)
    x_dur = jnp.transpose(X[:, :, 1:2], (1, 0, 2)).astype(jnp.float32)

    def pack_lstm(raw_layers):
        # layer 0: W_ih is (4H, 1) -> single row (1, 4H) used as a rank-1 op.
        wih0 = raw_layers[0][0].T.astype(jnp.float32)                 # (1, 4H)
        if L > 1:
            wihr = jnp.stack([raw_layers[l][0].T for l in range(1, L)])  # (L-1, H, 4H)
        else:
            wihr = jnp.zeros((1, H, 4 * H), jnp.float32)              # dummy, unused
        whh = jnp.stack([raw_layers[l][1].T for l in range(L)])       # (L, H, 4H)
        b = jnp.stack([(raw_layers[l][2] + raw_layers[l][3])[None, :]
                       for l in range(L)])                            # (L, 1, 4H)
        return wih0, wihr, whh, b

    wih0_n, wihr_n, whh_n, b_n = pack_lstm(params["note_lstm"])
    wih0_d, wihr_d, whh_d, b_d = pack_lstm(params["duration_lstm"])

    lin_wT = jnp.zeros((2 * H, C_pad), jnp.float32).at[:, :C].set(params["lin_w"].T)
    lin_b = jnp.zeros((1, C_pad), jnp.float32).at[:, :C].set(params["lin_b"][None, :])

    kernel = functools.partial(_music_lstm_kernel,
                               num_layers=L, seq_len=T, hidden=H, batch=B)

    out_pad = pl.pallas_call(
        kernel,
        out_shape=jax.ShapeDtypeStruct((B, C_pad), jnp.float32),
        in_specs=[pl.BlockSpec(memory_space=pltpu.MemorySpace.VMEM)] * 12,
        out_specs=pl.BlockSpec(memory_space=pltpu.MemorySpace.VMEM),
    )(x_notes, x_dur,
      wih0_n, wihr_n, whh_n, b_n,
      wih0_d, wihr_d, whh_d, b_d,
      lin_wT, lin_b)
    return out_pad[:, :C]


# ----------------------------------------------------------------------------
# Deterministic parameter init (shapes match nn.LSTM / nn.Linear)
# ----------------------------------------------------------------------------
def init_params(key, hidden_size, num_layers, num_note_classes, num_duration_classes):
    std = 1.0 / math.sqrt(hidden_size)

    def u(k, shape):
        return jax.random.uniform(k, shape, jnp.float32, -std, std)

    params = {"hidden_size": hidden_size, "num_layers": num_layers}
    for name in ("note_lstm", "duration_lstm"):
        layers = []
        for l in range(num_layers):
            in_size = 1 if l == 0 else hidden_size
            key, k1, k2, k3, k4 = jax.random.split(key, 5)
            layers.append((u(k1, (4 * hidden_size, in_size)),        # weight_ih_l{l}
                           u(k2, (4 * hidden_size, hidden_size)),    # weight_hh_l{l}
                           u(k3, (4 * hidden_size,)),                # bias_ih_l{l}
                           u(k4, (4 * hidden_size,))))               # bias_hh_l{l}
        params[name] = layers

    C = num_note_classes + num_duration_classes
    key, k1, k2 = jax.random.split(key, 3)
    params["lin_w"] = u(k1, (C, 2 * hidden_size))
    params["lin_b"] = u(k2, (C,))
    return params


# ----------------------------------------------------------------------------
# Pure-JAX reference (mirrors the PyTorch forward) for correctness check
# ----------------------------------------------------------------------------
def _lstm_ref(x, layers):  # x: (B, T, in_size)
    B, T, _ = x.shape
    inp = x
    for (wih, whh, bih, bhh) in layers:
        H = whh.shape[1]
        h = jnp.zeros((B, H), jnp.float32)
        c = jnp.zeros((B, H), jnp.float32)
        outs = []
        for t in range(T):
            gates = inp[:, t] @ wih.T + h @ whh.T + bih + bhh
            i = jax.nn.sigmoid(gates[:, :H])
            f = jax.nn.sigmoid(gates[:, H:2 * H])
            g = jnp.tanh(gates[:, 2 * H:3 * H])
            o = jax.nn.sigmoid(gates[:, 3 * H:])
            c = f * c + i * g
            h = o * jnp.tanh(c)
            outs.append(h)
        inp = jnp.stack(outs, axis=1)
    return inp[:, -1]


def music_lstm_reference(X, params):
    hn = _lstm_ref(X[:, :, :1], params["note_lstm"])
    hd = _lstm_ref(X[:, :, 1:], params["duration_lstm"])
    cat = jnp.concatenate([hn, hd], axis=1)
    return cat @ params["lin_w"].T + params["lin_b"]


# ----------------------------------------------------------------------------
if __name__ == "__main__":
    B, T = 2, 8
    hidden_size, num_layers = 32, 2
    num_note_classes, num_duration_classes = 16, 8

    key = jax.random.PRNGKey(0)
    key, kx, kp = jax.random.split(key, 3)
    X = jax.random.normal(kx, (B, T, 2), jnp.float32)
    params = init_params(kp, hidden_size, num_layers,
                         num_note_classes, num_duration_classes)

    out = music_lstm_forward(X, params)
    out = jax.block_until_ready(out)

    ref = music_lstm_reference(X, params)
    assert out.shape == (B, num_note_classes + num_duration_classes)
    # Slightly loose tolerance: Pallas EUP sigmoid/tanh vs. XLA transcendentals.
    assert jnp.allclose(out, ref, rtol=1e-4, atol=1e-4), "mismatch vs reference"

    print("KERNEL_OK")
</pallas_src>

<mosaic_0001>
module attributes {stable_mosaic.version = 11 : i64} {
  func.func @_music_lstm_kernel(%arg0: memref<8x2x1xf32, #tpu.memory_space<vmem>>, %arg1: memref<8x2x1xf32, #tpu.memory_space<vmem>>, %arg2: memref<1x128xf32, #tpu.memory_space<vmem>>, %arg3: memref<1x32x128xf32, #tpu.memory_space<vmem>>, %arg4: memref<2x32x128xf32, #tpu.memory_space<vmem>>, %arg5: memref<2x1x128xf32, #tpu.memory_space<vmem>>, %arg6: memref<1x128xf32, #tpu.memory_space<vmem>>, %arg7: memref<1x32x128xf32, #tpu.memory_space<vmem>>, %arg8: memref<2x32x128xf32, #tpu.memory_space<vmem>>, %arg9: memref<2x1x128xf32, #tpu.memory_space<vmem>>, %arg10: memref<64x128xf32, #tpu.memory_space<vmem>>, %arg11: memref<1x128xf32, #tpu.memory_space<vmem>>, %arg12: memref<2x128xf32, #tpu.memory_space<vmem>>) attributes {dimension_semantics = [], scalar_prefetch = 0 : i64, scratch_operands = 0 : i64, tpu.core_type = #tpu.core_type<tc>} {
    %c0 = arith.constant 0 : index
    %c0_0 = arith.constant 0 : index
    %0 = vector.load %arg2[%c0, %c0_0] : memref<1x128xf32, #tpu.memory_space<vmem>>, vector<1x128xf32>
    %c0_1 = arith.constant 0 : index
    %c0_2 = arith.constant 0 : index
    %1 = vector.load %arg6[%c0_1, %c0_2] : memref<1x128xf32, #tpu.memory_space<vmem>>, vector<1x128xf32>
    %c0_3 = arith.constant 0 : index
    %c0_4 = arith.constant 0 : index
    %c0_5 = arith.constant 0 : index
    %2 = vector.load %arg4[%c0_3, %c0_4, %c0_5] : memref<2x32x128xf32, #tpu.memory_space<vmem>>, vector<1x32x128xf32>
    %3 = vector.shape_cast %2 : vector<1x32x128xf32> to vector<32x128xf32>
    %c1 = arith.constant 1 : index
    %c0_6 = arith.constant 0 : index
    %c0_7 = arith.constant 0 : index
    %4 = vector.load %arg4[%c1, %c0_6, %c0_7] : memref<2x32x128xf32, #tpu.memory_space<vmem>>, vector<1x32x128xf32>
    %5 = vector.shape_cast %4 : vector<1x32x128xf32> to vector<32x128xf32>
    %c0_8 = arith.constant 0 : index
    %c0_9 = arith.constant 0 : index
    %c0_10 = arith.constant 0 : index
    %6 = vector.load %arg8[%c0_8, %c0_9, %c0_10] : memref<2x32x128xf32, #tpu.memory_space<vmem>>, vector<1x32x128xf32>
    %7 = vector.shape_cast %6 : vector<1x32x128xf32> to vector<32x128xf32>
    %c1_11 = arith.constant 1 : index
    %c0_12 = arith.constant 0 : index
    %c0_13 = arith.constant 0 : index
    %8 = vector.load %arg8[%c1_11, %c0_12, %c0_13] : memref<2x32x128xf32, #tpu.memory_space<vmem>>, vector<1x32x128xf32>
    %9 = vector.shape_cast %8 : vector<1x32x128xf32> to vector<32x128xf32>
    %c0_14 = arith.constant 0 : index
    %c0_15 = arith.constant 0 : index
    %c0_16 = arith.constant 0 : index
    %10 = vector.load %arg3[%c0_14, %c0_15, %c0_16] : memref<1x32x128xf32, #tpu.memory_space<vmem>>, vector<1x32x128xf32>
    %11 = vector.shape_cast %10 : vector<1x32x128xf32> to vector<32x128xf32>
    %c0_17 = arith.constant 0 : index
    %c0_18 = arith.constant 0 : index
    %c0_19 = arith.constant 0 : index
    %12 = vector.load %arg7[%c0_17, %c0_18, %c0_19] : memref<1x32x128xf32, #tpu.memory_space<vmem>>, vector<1x32x128xf32>
    %13 = vector.shape_cast %12 : vector<1x32x128xf32> to vector<32x128xf32>
    %c0_20 = arith.constant 0 : index
    %c0_21 = arith.constant 0 : index
    %c0_22 = arith.constant 0 : index
    %14 = vector.load %arg5[%c0_20, %c0_21, %c0_22] : memref<2x1x128xf32, #tpu.memory_space<vmem>>, vector<1x1x128xf32>
    %15 = vector.shape_cast %14 : vector<1x1x128xf32> to vector<1x128xf32>
    %16 = vector.shape_cast %15 : vector<1x128xf32> to vector<1x128xf32>
    %17 = vector.broadcast %16 : vector<1x128xf32> to vector<2x128xf32>
    %c1_23 = arith.constant 1 : index
    %c0_24 = arith.constant 0 : index
    %c0_25 = arith.constant 0 : index
    %18 = vector.load %arg5[%c1_23, %c0_24, %c0_25] : memref<2x1x128xf32, #tpu.memory_space<vmem>>, vector<1x1x128xf32>
    %19 = vector.shape_cast %18 : vector<1x1x128xf32> to vector<1x128xf32>
    %20 = vector.shape_cast %19 : vector<1x128xf32> to vector<1x128xf32>
    %21 = vector.broadcast %20 : vector<1x128xf32> to vector<2x128xf32>
    %c0_26 = arith.constant 0 : index
    %c0_27 = arith.constant 0 : index
    %c0_28 = arith.constant 0 : index
    %22 = vector.load %arg9[%c0_26, %c0_27, %c0_28] : memref<2x1x128xf32, #tpu.memory_space<vmem>>, vector<1x1x128xf32>
    %23 = vector.shape_cast %22 : vector<1x1x128xf32> to vector<1x128xf32>
    %24 = vector.shape_cast %23 : vector<1x128xf32> to vector<1x128xf32>
    %25 = vector.broadcast %24 : vector<1x128xf32> to vector<2x128xf32>
    %c1_29 = arith.constant 1 : index
    %c0_30 = arith.constant 0 : index
    %c0_31 = arith.constant 0 : index
    %26 = vector.load %arg9[%c1_29, %c0_30, %c0_31] : memref<2x1x128xf32, #tpu.memory_space<vmem>>, vector<1x1x128xf32>
    %27 = vector.shape_cast %26 : vector<1x1x128xf32> to vector<1x128xf32>
    %28 = vector.shape_cast %27 : vector<1x128xf32> to vector<1x128xf32>
    %29 = vector.broadcast %28 : vector<1x128xf32> to vector<2x128xf32>
    %cst = arith.constant 0.000000e+00 : f32
    %30 = vector.broadcast %cst : f32 to vector<2x32xf32>
    %cst_32 = arith.constant 0.000000e+00 : f32
    %31 = vector.broadcast %cst_32 : f32 to vector<2x32xf32>
    %c0_i32 = arith.constant 0 : i32
    %32 = arith.index_cast %c0_i32 : i32 to index
    %c0_33 = arith.constant 0 : index
    %c0_34 = arith.constant 0 : index
    %33 = vector.load %arg0[%32, %c0_33, %c0_34] : memref<8x2x1xf32, #tpu.memory_space<vmem>>, vector<1x2x1xf32>
    %34 = vector.shape_cast %33 : vector<1x2x1xf32> to vector<2x1xf32>
    %35 = arith.index_cast %c0_i32 : i32 to index
    %c0_35 = arith.constant 0 : index
    %c0_36 = arith.constant 0 : index
    %36 = vector.load %arg1[%35, %c0_35, %c0_36] : memref<8x2x1xf32, #tpu.memory_space<vmem>>, vector<1x2x1xf32>
    %37 = vector.shape_cast %36 : vector<1x2x1xf32> to vector<2x1xf32>
    %38 = vector.broadcast %34 : vector<2x1xf32> to vector<2x128xf32>
    %39 = vector.broadcast %0 : vector<1x128xf32> to vector<2x128xf32>
    %40 = arith.mulf %38, %39 : vector<2x128xf32>
    %41 = vector.broadcast %37 : vector<2x1xf32> to vector<2x128xf32>
    %42 = vector.broadcast %1 : vector<1x128xf32> to vector<2x128xf32>
    %43 = arith.mulf %41, %42 : vector<2x128xf32>
    %cst_37 = arith.constant dense<0.000000e+00> : vector<2x128xf32>
    %44 = tpu.matmul %30, %3, %cst_37 {dimension_numbers = #tpu.dot_dimension_numbers<[1], [0], [0], [1], [0, 0, 1, 1], [], []>} : vector<2x32xf32>, vector<32x128xf32>, vector<2x128xf32> -> vector<2x128xf32>
    %45 = arith.addf %40, %44 : vector<2x128xf32>
    %46 = arith.addf %45, %17 : vector<2x128xf32>
    %47 = vector.extract_strided_slice %46 {offsets = [0, 0], sizes = [2, 32], strides = [1, 1]} : vector<2x128xf32> to vector<2x32xf32>
    %48 = arith.negf %47 : vector<2x32xf32>
    %49 = math.exp %48 : vector<2x32xf32>
    %cst_38 = arith.constant 1.000000e+00 : f32
    %50 = vector.broadcast %cst_38 : f32 to vector<2x32xf32>
    %51 = arith.addf %50, %49 : vector<2x32xf32>
    %52 = arith.divf %50, %51 : vector<2x32xf32>
    %53 = vector.extract_strided_slice %46 {offsets = [0, 32], sizes = [2, 32], strides = [1, 1]} : vector<2x128xf32> to vector<2x32xf32>
    %54 = arith.negf %53 : vector<2x32xf32>
    %55 = math.exp %54 : vector<2x32xf32>
    %cst_39 = arith.constant 1.000000e+00 : f32
    %56 = vector.broadcast %cst_39 : f32 to vector<2x32xf32>
    %57 = arith.addf %56, %55 : vector<2x32xf32>
    %58 = arith.divf %56, %57 : vector<2x32xf32>
    %59 = vector.extract_strided_slice %46 {offsets = [0, 64], sizes = [2, 32], strides = [1, 1]} : vector<2x128xf32> to vector<2x32xf32>
    %60 = math.tanh %59 : vector<2x32xf32>
    %61 = vector.extract_strided_slice %46 {offsets = [0, 96], sizes = [2, 32], strides = [1, 1]} : vector<2x128xf32> to vector<2x32xf32>
    %62 = arith.negf %61 : vector<2x32xf32>
    %63 = math.exp %62 : vector<2x32xf32>
    %cst_40 = arith.constant 1.000000e+00 : f32
    %64 = vector.broadcast %cst_40 : f32 to vector<2x32xf32>
    %65 = arith.addf %64, %63 : vector<2x32xf32>
    %66 = arith.divf %64, %65 : vector<2x32xf32>
    %67 = arith.mulf %58, %30 : vector<2x32xf32>
    %68 = arith.mulf %52, %60 : vector<2x32xf32>
    %69 = arith.addf %67, %68 : vector<2x32xf32>
    %70 = math.tanh %69 : vector<2x32xf32>
    %71 = arith.mulf %66, %70 : vector<2x32xf32>
    %cst_41 = arith.constant dense<0.000000e+00> : vector<2x128xf32>
    %72 = tpu.matmul %30, %7, %cst_41 {dimension_numbers = #tpu.dot_dimension_numbers<[1], [0], [0], [1], [0, 0, 1, 1], [], []>} : vector<2x32xf32>, vector<32x128xf32>, vector<2x128xf32> -> vector<2x128xf32>
    %73 = arith.addf %43, %72 : vector<2x128xf32>
    %74 = arith.addf %73, %25 : vector<2x128xf32>
    %75 = vector.extract_strided_slice %74 {offsets = [0, 0], sizes = [2, 32], strides = [1, 1]} : vector<2x128xf32> to vector<2x32xf32>
    %76 = arith.negf %75 : vector<2x32xf32>
    %77 = math.exp %76 : vector<2x32xf32>
    %cst_42 = arith.constant 1.000000e+00 : f32
    %78 = vector.broadcast %cst_42 : f32 to vector<2x32xf32>
    %79 = arith.addf %78, %77 : vector<2x32xf32>
    %80 = arith.divf %78, %79 : vector<2x32xf32>
    %81 = vector.extract_strided_slice %74 {offsets = [0, 32], sizes = [2, 32], strides = [1, 1]} : vector<2x128xf32> to vector<2x32xf32>
    %82 = arith.negf %81 : vector<2x32xf32>
    %83 = math.exp %82 : vector<2x32xf32>
    %cst_43 = arith.constant 1.000000e+00 : f32
    %84 = vector.broadcast %cst_43 : f32 to vector<2x32xf32>
    %85 = arith.addf %84, %83 : vector<2x32xf32>
    %86 = arith.divf %84, %85 : vector<2x32xf32>
    %87 = vector.extract_strided_slice %74 {offsets = [0, 64], sizes = [2, 32], strides = [1, 1]} : vector<2x128xf32> to vector<2x32xf32>
    %88 = math.tanh %87 : vector<2x32xf32>
    %89 = vector.extract_strided_slice %74 {offsets = [0, 96], sizes = [2, 32], strides = [1, 1]} : vector<2x128xf32> to vector<2x32xf32>
    %90 = arith.negf %89 : vector<2x32xf32>
    %91 = math.exp %90 : vector<2x32xf32>
    %cst_44 = arith.constant 1.000000e+00 : f32
    %92 = vector.broadcast %cst_44 : f32 to vector<2x32xf32>
    %93 = arith.addf %92, %91 : vector<2x32xf32>
    %94 = arith.divf %92, %93 : vector<2x32xf32>
    %95 = arith.mulf %86, %30 : vector<2x32xf32>
    %96 = arith.mulf %80, %88 : vector<2x32xf32>
    %97 = arith.addf %95, %96 : vector<2x32xf32>
    %98 = math.tanh %97 : vector<2x32xf32>
    %99 = arith.mulf %94, %98 : vector<2x32xf32>
    %cst_45 = arith.constant dense<0.000000e+00> : vector<2x128xf32>
    %100 = tpu.matmul %71, %11, %cst_45 {dimension_numbers = #tpu.dot_dimension_numbers<[1], [0], [0], [1], [0, 0, 1, 1], [], []>} : vector<2x32xf32>, vector<32x128xf32>, vector<2x128xf32> -> vector<2x128xf32>
    %cst_46 = arith.constant dense<0.000000e+00> : vector<2x128xf32>
    %101 = tpu.matmul %99, %13, %cst_46 {dimension_numbers = #tpu.dot_dimension_numbers<[1], [0], [0], [1], [0, 0, 1, 1], [], []>} : vector<2x32xf32>, vector<32x128xf32>, vector<2x128xf32> -> vector<2x128xf32>
    %cst_47 = arith.constant dense<0.000000e+00> : vector<2x128xf32>
    %102 = tpu.matmul %31, %5, %cst_47 {dimension_numbers = #tpu.dot_dimension_numbers<[1], [0], [0], [1], [0, 0, 1, 1], [], []>} : vector<2x32xf32>, vector<32x128xf32>, vector<2x128xf32> -> vector<2x128xf32>
    %103 = arith.addf %100, %102 : vector<2x128xf32>
    %104 = arith.addf %103, %21 : vector<2x128xf32>
    %105 = vector.extract_strided_slice %104 {offsets = [0, 0], sizes = [2, 32], strides = [1, 1]} : vector<2x128xf32> to vector<2x32xf32>
    %106 = arith.negf %105 : vector<2x32xf32>
    %107 = math.exp %106 : vector<2x32xf32>
    %cst_48 = arith.constant 1.000000e+00 : f32
    %108 = vector.broadcast %cst_48 : f32 to vector<2x32xf32>
    %109 = arith.addf %108, %107 : vector<2x32xf32>
    %110 = arith.divf %108, %109 : vector<2x32xf32>
    %111 = vector.extract_strided_slice %104 {offsets = [0, 32], sizes = [2, 32], strides = [1, 1]} : vector<2x128xf32> to vector<2x32xf32>
    %112 = arith.negf %111 : vector<2x32xf32>
    %113 = math.exp %112 : vector<2x32xf32>
    %cst_49 = arith.constant 1.000000e+00 : f32
    %114 = vector.broadcast %cst_49 : f32 to vector<2x32xf32>
    %115 = arith.addf %114, %113 : vector<2x32xf32>
    %116 = arith.divf %114, %115 : vector<2x32xf32>
    %117 = vector.extract_strided_slice %104 {offsets = [0, 64], sizes = [2, 32], strides = [1, 1]} : vector<2x128xf32> to vector<2x32xf32>
    %118 = math.tanh %117 : vector<2x32xf32>
    %119 = vector.extract_strided_slice %104 {offsets = [0, 96], sizes = [2, 32], strides = [1, 1]} : vector<2x128xf32> to vector<2x32xf32>
    %120 = arith.negf %119 : vector<2x32xf32>
    %121 = math.exp %120 : vector<2x32xf32>
    %cst_50 = arith.constant 1.000000e+00 : f32
    %122 = vector.broadcast %cst_50 : f32 to vector<2x32xf32>
    %123 = arith.addf %122, %121 : vector<2x32xf32>
    %124 = arith.divf %122, %123 : vector<2x32xf32>
    %125 = arith.mulf %116, %31 : vector<2x32xf32>
    %126 = arith.mulf %110, %118 : vector<2x32xf32>
    %127 = arith.addf %125, %126 : vector<2x32xf32>
    %128 = math.tanh %127 : vector<2x32xf32>
    %129 = arith.mulf %124, %128 : vector<2x32xf32>
    %cst_51 = arith.constant dense<0.000000e+00> : vector<2x128xf32>
    %130 = tpu.matmul %31, %9, %cst_51 {dimension_numbers = #tpu.dot_dimension_numbers<[1], [0], [0], [1], [0, 0, 1, 1], [], []>} : vector<2x32xf32>, vector<32x128xf32>, vector<2x128xf32> -> vector<2x128xf32>
    %131 = arith.addf %101, %130 : vector<2x128xf32>
    %132 = arith.addf %131, %29 : vector<2x128xf32>
    %133 = vector.extract_strided_slice %132 {offsets = [0, 0], sizes = [2, 32], strides = [1, 1]} : vector<2x128xf32> to vector<2x32xf32>
    %134 = arith.negf %133 : vector<2x32xf32>
    %135 = math.exp %134 : vector<2x32xf32>
    %cst_52 = arith.constant 1.000000e+00 : f32
    %136 = vector.broadcast %cst_52 : f32 to vector<2x32xf32>
    %137 = arith.addf %136, %135 : vector<2x32xf32>
    %138 = arith.divf %136, %137 : vector<2x32xf32>
    %139 = vector.extract_strided_slice %132 {offsets = [0, 32], sizes = [2, 32], strides = [1, 1]} : vector<2x128xf32> to vector<2x32xf32>
    %140 = arith.negf %139 : vector<2x32xf32>
    %141 = math.exp %140 : vector<2x32xf32>
    %cst_53 = arith.constant 1.000000e+00 : f32
    %142 = vector.broadcast %cst_53 : f32 to vector<2x32xf32>
    %143 = arith.addf %142, %141 : vector<2x32xf32>
    %144 = arith.divf %142, %143 : vector<2x32xf32>
    %145 = vector.extract_strided_slice %132 {offsets = [0, 64], sizes = [2, 32], strides = [1, 1]} : vector<2x128xf32> to vector<2x32xf32>
    %146 = math.tanh %145 : vector<2x32xf32>
    %147 = vector.extract_strided_slice %132 {offsets = [0, 96], sizes = [2, 32], strides = [1, 1]} : vector<2x128xf32> to vector<2x32xf32>
    %148 = arith.negf %147 : vector<2x32xf32>
    %149 = math.exp %148 : vector<2x32xf32>
    %cst_54 = arith.constant 1.000000e+00 : f32
    %150 = vector.broadcast %cst_54 : f32 to vector<2x32xf32>
    %151 = arith.addf %150, %149 : vector<2x32xf32>
    %152 = arith.divf %150, %151 : vector<2x32xf32>
    %153 = arith.mulf %144, %31 : vector<2x32xf32>
    %154 = arith.mulf %138, %146 : vector<2x32xf32>
    %155 = arith.addf %153, %154 : vector<2x32xf32>
    %156 = math.tanh %155 : vector<2x32xf32>
    %157 = arith.mulf %152, %156 : vector<2x32xf32>
    %c1_i32 = arith.constant 1 : i32
    %158 = arith.index_cast %c1_i32 : i32 to index
    %c0_55 = arith.constant 0 : index
    %c0_56 = arith.constant 0 : index
    %159 = vector.load %arg0[%158, %c0_55, %c0_56] : memref<8x2x1xf32, #tpu.memory_space<vmem>>, vector<1x2x1xf32>
    %160 = vector.shape_cast %159 : vector<1x2x1xf32> to vector<2x1xf32>
    %161 = arith.index_cast %c1_i32 : i32 to index
    %c0_57 = arith.constant 0 : index
    %c0_58 = arith.constant 0 : index
    %162 = vector.load %arg1[%161, %c0_57, %c0_58] : memref<8x2x1xf32, #tpu.memory_space<vmem>>, vector<1x2x1xf32>
    %163 = vector.shape_cast %162 : vector<1x2x1xf32> to vector<2x1xf32>
    %164 = vector.broadcast %160 : vector<2x1xf32> to vector<2x128xf32>
    %165 = vector.broadcast %0 : vector<1x128xf32> to vector<2x128xf32>
    %166 = arith.mulf %164, %165 : vector<2x128xf32>
    %167 = vector.broadcast %163 : vector<2x1xf32> to vector<2x128xf32>
    %168 = vector.broadcast %1 : vector<1x128xf32> to vector<2x128xf32>
    %169 = arith.mulf %167, %168 : vector<2x128xf32>
    %cst_59 = arith.constant dense<0.000000e+00> : vector<2x128xf32>
    %170 = tpu.matmul %71, %3, %cst_59 {dimension_numbers = #tpu.dot_dimension_numbers<[1], [0], [0], [1], [0, 0, 1, 1], [], []>} : vector<2x32xf32>, vector<32x128xf32>, vector<2x128xf32> -> vector<2x128xf32>
    %171 = arith.addf %166, %170 : vector<2x128xf32>
    %172 = arith.addf %171, %17 : vector<2x128xf32>
    %173 = vector.extract_strided_slice %172 {offsets = [0, 0], sizes = [2, 32], strides = [1, 1]} : vector<2x128xf32> to vector<2x32xf32>
    %174 = arith.negf %173 : vector<2x32xf32>
    %175 = math.exp %174 : vector<2x32xf32>
    %cst_60 = arith.constant 1.000000e+00 : f32
    %176 = vector.broadcast %cst_60 : f32 to vector<2x32xf32>
    %177 = arith.addf %176, %175 : vector<2x32xf32>
    %178 = arith.divf %176, %177 : vector<2x32xf32>
    %179 = vector.extract_strided_slice %172 {offsets = [0, 32], sizes = [2, 32], strides = [1, 1]} : vector<2x128xf32> to vector<2x32xf32>
    %180 = arith.negf %179 : vector<2x32xf32>
    %181 = math.exp %180 : vector<2x32xf32>
    %cst_61 = arith.constant 1.000000e+00 : f32
    %182 = vector.broadcast %cst_61 : f32 to vector<2x32xf32>
    %183 = arith.addf %182, %181 : vector<2x32xf32>
    %184 = arith.divf %182, %183 : vector<2x32xf32>
    %185 = vector.extract_strided_slice %172 {offsets = [0, 64], sizes = [2, 32], strides = [1, 1]} : vector<2x128xf32> to vector<2x32xf32>
    %186 = math.tanh %185 : vector<2x32xf32>
    %187 = vector.extract_strided_slice %172 {offsets = [0, 96], sizes = [2, 32], strides = [1, 1]} : vector<2x128xf32> to vector<2x32xf32>
    %188 = arith.negf %187 : vector<2x32xf32>
    %189 = math.exp %188 : vector<2x32xf32>
    %cst_62 = arith.constant 1.000000e+00 : f32
    %190 = vector.broadcast %cst_62 : f32 to vector<2x32xf32>
    %191 = arith.addf %190, %189 : vector<2x32xf32>
    %192 = arith.divf %190, %191 : vector<2x32xf32>
    %193 = arith.mulf %184, %69 : vector<2x32xf32>
    %194 = arith.mulf %178, %186 : vector<2x32xf32>
    %195 = arith.addf %193, %194 : vector<2x32xf32>
    %196 = math.tanh %195 : vector<2x32xf32>
    %197 = arith.mulf %192, %196 : vector<2x32xf32>
    %cst_63 = arith.constant dense<0.000000e+00> : vector<2x128xf32>
    %198 = tpu.matmul %99, %7, %cst_63 {dimension_numbers = #tpu.dot_dimension_numbers<[1], [0], [0], [1], [0, 0, 1, 1], [], []>} : vector<2x32xf32>, vector<32x128xf32>, vector<2x128xf32> -> vector<2x128xf32>
    %199 = arith.addf %169, %198 : vector<2x128xf32>
    %200 = arith.addf %199, %25 : vector<2x128xf32>
    %201 = vector.extract_strided_slice %200 {offsets = [0, 0], sizes = [2, 32], strides = [1, 1]} : vector<2x128xf32> to vector<2x32xf32>
    %202 = arith.negf %201 : vector<2x32xf32>
    %203 = math.exp %202 : vector<2x32xf32>
    %cst_64 = arith.constant 1.000000e+00 : f32
    %204 = vector.broadcast %cst_64 : f32 to vector<2x32xf32>
    %205 = arith.addf %204, %203 : vector<2x32xf32>
    %206 = arith.divf %204, %205 : vector<2x32xf32>
    %207 = vector.extract_strided_slice %200 {offsets = [0, 32], sizes = [2, 32], strides = [1, 1]} : vector<2x128xf32> to vector<2x32xf32>
    %208 = arith.negf %207 : vector<2x32xf32>
    %209 = math.exp %208 : vector<2x32xf32>
    %cst_65 = arith.constant 1.000000e+00 : f32
    %210 = vector.broadcast %cst_65 : f32 to vector<2x32xf32>
    %211 = arith.addf %210, %209 : vector<2x32xf32>
    %212 = arith.divf %210, %211 : vector<2x32xf32>
    %213 = vector.extract_strided_slice %200 {offsets = [0, 64], sizes = [2, 32], strides = [1, 1]} : vector<2x128xf32> to vector<2x32xf32>
    %214 = math.tanh %213 : vector<2x32xf32>
    %215 = vector.extract_strided_slice %200 {offsets = [0, 96], sizes = [2, 32], strides = [1, 1]} : vector<2x128xf32> to vector<2x32xf32>
    %216 = arith.negf %215 : vector<2x32xf32>
    %217 = math.exp %216 : vector<2x32xf32>
    %cst_66 = arith.constant 1.000000e+00 : f32
    %218 = vector.broadcast %cst_66 : f32 to vector<2x32xf32>
    %219 = arith.addf %218, %217 : vector<2x32xf32>
    %220 = arith.divf %218, %219 : vector<2x32xf32>
    %221 = arith.mulf %212, %97 : vector<2x32xf32>
    %222 = arith.mulf %206, %214 : vector<2x32xf32>
    %223 = arith.addf %221, %222 : vector<2x32xf32>
    %224 = math.tanh %223 : vector<2x32xf32>
    %225 = arith.mulf %220, %224 : vector<2x32xf32>
    %cst_67 = arith.constant dense<0.000000e+00> : vector<2x128xf32>
    %226 = tpu.matmul %197, %11, %cst_67 {dimension_numbers = #tpu.dot_dimension_numbers<[1], [0], [0], [1], [0, 0, 1, 1], [], []>} : vector<2x32xf32>, vector<32x128xf32>, vector<2x128xf32> -> vector<2x128xf32>
    %cst_68 = arith.constant dense<0.000000e+00> : vector<2x128xf32>
    %227 = tpu.matmul %225, %13, %cst_68 {dimension_numbers = #tpu.dot_dimension_numbers<[1], [0], [0], [1], [0, 0, 1, 1], [], []>} : vector<2x32xf32>, vector<32x128xf32>, vector<2x128xf32> -> vector<2x128xf32>
    %cst_69 = arith.constant dense<0.000000e+00> : vector<2x128xf32>
    %228 = tpu.matmul %129, %5, %cst_69 {dimension_numbers = #tpu.dot_dimension_numbers<[1], [0], [0], [1], [0, 0, 1, 1], [], []>} : vector<2x32xf32>, vector<32x128xf32>, vector<2x128xf32> -> vector<2x128xf32>
    %229 = arith.addf %226, %228 : vector<2x128xf32>
    %230 = arith.addf %229, %21 : vector<2x128xf32>
    %231 = vector.extract_strided_slice %230 {offsets = [0, 0], sizes = [2, 32], strides = [1, 1]} : vector<2x128xf32> to vector<2x32xf32>
    %232 = arith.negf %231 : vector<2x32xf32>
    %233 = math.exp %232 : vector<2x32xf32>
    %cst_70 = arith.constant 1.000000e+00 : f32
    %234 = vector.broadcast %cst_70 : f32 to vector<2x32xf32>
    %235 = arith.addf %234, %233 : vector<2x32xf32>
    %236 = arith.divf %234, %235 : vector<2x32xf32>
    %237 = vector.extract_strided_slice %230 {offsets = [0, 32], sizes = [2, 32], strides = [1, 1]} : vector<2x128xf32> to vector<2x32xf32>
    %238 = arith.negf %237 : vector<2x32xf32>
    %239 = math.exp %238 : vector<2x32xf32>
    %cst_71 = arith.constant 1.000000e+00 : f32
    %240 = vector.broadcast %cst_71 : f32 to vector<2x32xf32>
    %241 = arith.addf %240, %239 : vector<2x32xf32>
    %242 = arith.divf %240, %241 : vector<2x32xf32>
    %243 = vector.extract_strided_slice %230 {offsets = [0, 64], sizes = [2, 32], strides = [1, 1]} : vector<2x128xf32> to vector<2x32xf32>
    %244 = math.tanh %243 : vector<2x32xf32>
    %245 = vector.extract_strided_slice %230 {offsets = [0, 96], sizes = [2, 32], strides = [1, 1]} : vector<2x128xf32> to vector<2x32xf32>
    %246 = arith.negf %245 : vector<2x32xf32>
    %247 = math.exp %246 : vector<2x32xf32>
    %cst_72 = arith.constant 1.000000e+00 : f32
    %248 = vector.broadcast %cst_72 : f32 to vector<2x32xf32>
    %249 = arith.addf %248, %247 : vector<2x32xf32>
    %250 = arith.divf %248, %249 : vector<2x32xf32>
    %251 = arith.mulf %242, %127 : vector<2x32xf32>
    %252 = arith.mulf %236, %244 : vector<2x32xf32>
    %253 = arith.addf %251, %252 : vector<2x32xf32>
    %254 = math.tanh %253 : vector<2x32xf32>
    %255 = arith.mulf %250, %254 : vector<2x32xf32>
    %cst_73 = arith.constant dense<0.000000e+00> : vector<2x128xf32>
    %256 = tpu.matmul %157, %9, %cst_73 {dimension_numbers = #tpu.dot_dimension_numbers<[1], [0], [0], [1], [0, 0, 1, 1], [], []>} : vector<2x32xf32>, vector<32x128xf32>, vector<2x128xf32> -> vector<2x128xf32>
    %257 = arith.addf %227, %256 : vector<2x128xf32>
    %258 = arith.addf %257, %29 : vector<2x128xf32>
    %259 = vector.extract_strided_slice %258 {offsets = [0, 0], sizes = [2, 32], strides = [1, 1]} : vector<2x128xf32> to vector<2x32xf32>
    %260 = arith.negf %259 : vector<2x32xf32>
    %261 = math.exp %260 : vector<2x32xf32>
    %cst_74 = arith.constant 1.000000e+00 : f32
    %262 = vector.broadcast %cst_74 : f32 to vector<2x32xf32>
    %263 = arith.addf %262, %261 : vector<2x32xf32>
    %264 = arith.divf %262, %263 : vector<2x32xf32>
    %265 = vector.extract_strided_slice %258 {offsets = [0, 32], sizes = [2, 32], strides = [1, 1]} : vector<2x128xf32> to vector<2x32xf32>
    %266 = arith.negf %265 : vector<2x32xf32>
    %267 = math.exp %266 : vector<2x32xf32>
    %cst_75 = arith.constant 1.000000e+00 : f32
    %268 = vector.broadcast %cst_75 : f32 to vector<2x32xf32>
    %269 = arith.addf %268, %267 : vector<2x32xf32>
    %270 = arith.divf %268, %269 : vector<2x32xf32>
    %271 = vector.extract_strided_slice %258 {offsets = [0, 64], sizes = [2, 32], strides = [1, 1]} : vector<2x128xf32> to vector<2x32xf32>
    %272 = math.tanh %271 : vector<2x32xf32>
    %273 = vector.extract_strided_slice %258 {offsets = [0, 96], sizes = [2, 32], strides = [1, 1]} : vector<2x128xf32> to vector<2x32xf32>
    %274 = arith.negf %273 : vector<2x32xf32>
    %275 = math.exp %274 : vector<2x32xf32>
    %cst_76 = arith.constant 1.000000e+00 : f32
    %276 = vector.broadcast %cst_76 : f32 to vector<2x32xf32>
    %277 = arith.addf %276, %275 : vector<2x32xf32>
    %278 = arith.divf %276, %277 : vector<2x32xf32>
    %279 = arith.mulf %270, %155 : vector<2x32xf32>
    %280 = arith.mulf %264, %272 : vector<2x32xf32>
    %281 = arith.addf %279, %280 : vector<2x32xf32>
    %282 = math.tanh %281 : vector<2x32xf32>
    %283 = arith.mulf %278, %282 : vector<2x32xf32>
    %c2_i32 = arith.constant 2 : i32
    %284 = arith.index_cast %c2_i32 : i32 to index
    %c0_77 = arith.constant 0 : index
    %c0_78 = arith.constant 0 : index
    %285 = vector.load %arg0[%284, %c0_77, %c0_78] : memref<8x2x1xf32, #tpu.memory_space<vmem>>, vector<1x2x1xf32>
    %286 = vector.shape_cast %285 : vector<1x2x1xf32> to vector<2x1xf32>
    %287 = arith.index_cast %c2_i32 : i32 to index
    %c0_79 = arith.constant 0 : index
    %c0_80 = arith.constant 0 : index
    %288 = vector.load %arg1[%287, %c0_79, %c0_80] : memref<8x2x1xf32, #tpu.memory_space<vmem>>, vector<1x2x1xf32>
    %289 = vector.shape_cast %288 : vector<1x2x1xf32> to vector<2x1xf32>
    %290 = vector.broadcast %286 : vector<2x1xf32> to vector<2x128xf32>
    %291 = vector.broadcast %0 : vector<1x128xf32> to vector<2x128xf32>
    %292 = arith.mulf %290, %291 : vector<2x128xf32>
    %293 = vector.broadcast %289 : vector<2x1xf32> to vector<2x128xf32>
    %294 = vector.broadcast %1 : vector<1x128xf32> to vector<2x128xf32>
    %295 = arith.mulf %293, %294 : vector<2x128xf32>
    %cst_81 = arith.constant dense<0.000000e+00> : vector<2x128xf32>
    %296 = tpu.matmul %197, %3, %cst_81 {dimension_numbers = #tpu.dot_dimension_numbers<[1], [0], [0], [1], [0, 0, 1, 1], [], []>} : vector<2x32xf32>, vector<32x128xf32>, vector<2x128xf32> -> vector<2x128xf32>
    %297 = arith.addf %292, %296 : vector<2x128xf32>
    %298 = arith.addf %297, %17 : vector<2x128xf32>
    %299 = vector.extract_strided_slice %298 {offsets = [0, 0], sizes = [2, 32], strides = [1, 1]} : vector<2x128xf32> to vector<2x32xf32>
    %300 = arith.negf %299 : vector<2x32xf32>
    %301 = math.exp %300 : vector<2x32xf32>
    %cst_82 = arith.constant 1.000000e+00 : f32
    %302 = vector.broadcast %cst_82 : f32 to vector<2x32xf32>
    %303 = arith.addf %302, %301 : vector<2x32xf32>
    %304 = arith.divf %302, %303 : vector<2x32xf32>
    %305 = vector.extract_strided_slice %298 {offsets = [0, 32], sizes = [2, 32], strides = [1, 1]} : vector<2x128xf32> to vector<2x32xf32>
    %306 = arith.negf %305 : vector<2x32xf32>
    %307 = math.exp %306 : vector<2x32xf32>
    %cst_83 = arith.constant 1.000000e+00 : f32
    %308 = vector.broadcast %cst_83 : f32 to vector<2x32xf32>
    %309 = arith.addf %308, %307 : vector<2x32xf32>
    %310 = arith.divf %308, %309 : vector<2x32xf32>
    %311 = vector.extract_strided_slice %298 {offsets = [0, 64], sizes = [2, 32], strides = [1, 1]} : vector<2x128xf32> to vector<2x32xf32>
    %312 = math.tanh %311 : vector<2x32xf32>
    %313 = vector.extract_strided_slice %298 {offsets = [0, 96], sizes = [2, 32], strides = [1, 1]} : vector<2x128xf32> to vector<2x32xf32>
    %314 = arith.negf %313 : vector<2x32xf32>
    %315 = math.exp %314 : vector<2x32xf32>
    %cst_84 = arith.constant 1.000000e+00 : f32
    %316 = vector.broadcast %cst_84 : f32 to vector<2x32xf32>
    %317 = arith.addf %316, %315 : vector<2x32xf32>
    %318 = arith.divf %316, %317 : vector<2x32xf32>
    %319 = arith.mulf %310, %195 : vector<2x32xf32>
    %320 = arith.mulf %304, %312 : vector<2x32xf32>
    %321 = arith.addf %319, %320 : vector<2x32xf32>
    %322 = math.tanh %321 : vector<2x32xf32>
    %323 = arith.mulf %318, %322 : vector<2x32xf32>
    %cst_85 = arith.constant dense<0.000000e+00> : vector<2x128xf32>
    %324 = tpu.matmul %225, %7, %cst_85 {dimension_numbers = #tpu.dot_dimension_numbers<[1], [0], [0], [1], [0, 0, 1, 1], [], []>} : vector<2x32xf32>, vector<32x128xf32>, vector<2x128xf32> -> vector<2x128xf32>
    %325 = arith.addf %295, %324 : vector<2x128xf32>
    %326 = arith.addf %325, %25 : vector<2x128xf32>
    %327 = vector.extract_strided_slice %326 {offsets = [0, 0], sizes = [2, 32], strides = [1, 1]} : vector<2x128xf32> to vector<2x32xf32>
    %328 = arith.negf %327 : vector<2x32xf32>
    %329 = math.exp %328 : vector<2x32xf32>
    %cst_86 = arith.constant 1.000000e+00 : f32
    %330 = vector.broadcast %cst_86 : f32 to vector<2x32xf32>
    %331 = arith.addf %330, %329 : vector<2x32xf32>
    %332 = arith.divf %330, %331 : vector<2x32xf32>
    %333 = vector.extract_strided_slice %326 {offsets = [0, 32], sizes = [2, 32], strides = [1, 1]} : vector<2x128xf32> to vector<2x32xf32>
    %334 = arith.negf %333 : vector<2x32xf32>
    %335 = math.exp %334 : vector<2x32xf32>
    %cst_87 = arith.constant 1.000000e+00 : f32
    %336 = vector.broadcast %cst_87 : f32 to vector<2x32xf32>
    %337 = arith.addf %336, %335 : vector<2x32xf32>
    %338 = arith.divf %336, %337 : vector<2x32xf32>
    %339 = vector.extract_strided_slice %326 {offsets = [0, 64], sizes = [2, 32], strides = [1, 1]} : vector<2x128xf32> to vector<2x32xf32>
    %340 = math.tanh %339 : vector<2x32xf32>
    %341 = vector.extract_strided_slice %326 {offsets = [0, 96], sizes = [2, 32], strides = [1, 1]} : vector<2x128xf32> to vector<2x32xf32>
    %342 = arith.negf %341 : vector<2x32xf32>
    %343 = math.exp %342 : vector<2x32xf32>
    %cst_88 = arith.constant 1.000000e+00 : f32
    %344 = vector.broadcast %cst_88 : f32 to vector<2x32xf32>
    %345 = arith.addf %344, %343 : vector<2x32xf32>
    %346 = arith.divf %344, %345 : vector<2x32xf32>
    %347 = arith.mulf %338, %223 : vector<2x32xf32>
    %348 = arith.mulf %332, %340 : vector<2x32xf32>
    %349 = arith.addf %347, %348 : vector<2x32xf32>
    %350 = math.tanh %349 : vector<2x32xf32>
    %351 = arith.mulf %346, %350 : vector<2x32xf32>
    %cst_89 = arith.constant dense<0.000000e+00> : vector<2x128xf32>
    %352 = tpu.matmul %323, %11, %cst_89 {dimension_numbers = #tpu.dot_dimension_numbers<[1], [0], [0], [1], [0, 0, 1, 1], [], []>} : vector<2x32xf32>, vector<32x128xf32>, vector<2x128xf32> -> vector<2x128xf32>
    %cst_90 = arith.constant dense<0.000000e+00> : vector<2x128xf32>
    %353 = tpu.matmul %351, %13, %cst_90 {dimension_numbers = #tpu.dot_dimension_numbers<[1], [0], [0], [1], [0, 0, 1, 1], [], []>} : vector<2x32xf32>, vector<32x128xf32>, vector<2x128xf32> -> vector<2x128xf32>
    %cst_91 = arith.constant dense<0.000000e+00> : vector<2x128xf32>
    %354 = tpu.matmul %255, %5, %cst_91 {dimension_numbers = #tpu.dot_dimension_numbers<[1], [0], [0], [1], [0, 0, 1, 1], [], []>} : vector<2x32xf32>, vector<32x128xf32>, vector<2x128xf32> -> vector<2x128xf32>
    %355 = arith.addf %352, %354 : vector<2x128xf32>
    %356 = arith.addf %355, %21 : vector<2x128xf32>
    %357 = vector.extract_strided_slice %356 {offsets = [0, 0], sizes = [2, 32], strides = [1, 1]} : vector<2x128xf32> to vector<2x32xf32>
    %358 = arith.negf %357 : vector<2x32xf32>
    %359 = math.exp %358 : vector<2x32xf32>
    %cst_92 = arith.constant 1.000000e+00 : f32
    %360 = vector.broadcast %cst_92 : f32 to vector<2x32xf32>
    %361 = arith.addf %360, %359 : vector<2x32xf32>
    %362 = arith.divf %360, %361 : vector<2x32xf32>
    %363 = vector.extract_strided_slice %356 {offsets = [0, 32], sizes = [2, 32], strides = [1, 1]} : vector<2x128xf32> to vector<2x32xf32>
    %364 = arith.negf %363 : vector<2x32xf32>
    %365 = math.exp %364 : vector<2x32xf32>
    %cst_93 = arith.constant 1.000000e+00 : f32
    %366 = vector.broadcast %cst_93 : f32 to vector<2x32xf32>
    %367 = arith.addf %366, %365 : vector<2x32xf32>
    %368 = arith.divf %366, %367 : vector<2x32xf32>
    %369 = vector.extract_strided_slice %356 {offsets = [0, 64], sizes = [2, 32], strides = [1, 1]} : vector<2x128xf32> to vector<2x32xf32>
    %370 = math.tanh %369 : vector<2x32xf32>
    %371 = vector.extract_strided_slice %356 {offsets = [0, 96], sizes = [2, 32], strides = [1, 1]} : vector<2x128xf32> to vector<2x32xf32>
    %372 = arith.negf %371 : vector<2x32xf32>
    %373 = math.exp %372 : vector<2x32xf32>
    %cst_94 = arith.constant 1.000000e+00 : f32
    %374 = vector.broadcast %cst_94 : f32 to vector<2x32xf32>
    %375 = arith.addf %374, %373 : vector<2x32xf32>
    %376 = arith.divf %374, %375 : vector<2x32xf32>
    %377 = arith.mulf %368, %253 : vector<2x32xf32>
    %378 = arith.mulf %362, %370 : vector<2x32xf32>
    %379 = arith.addf %377, %378 : vector<2x32xf32>
    %380 = math.tanh %379 : vector<2x32xf32>
    %381 = arith.mulf %376, %380 : vector<2x32xf32>
    %cst_95 = arith.constant dense<0.000000e+00> : vector<2x128xf32>
    %382 = tpu.matmul %283, %9, %cst_95 {dimension_numbers = #tpu.dot_dimension_numbers<[1], [0], [0], [1], [0, 0, 1, 1], [], []>} : vector<2x32xf32>, vector<32x128xf32>, vector<2x128xf32> -> vector<2x128xf32>
    %383 = arith.addf %353, %382 : vector<2x128xf32>
    %384 = arith.addf %383, %29 : vector<2x128xf32>
    %385 = vector.extract_strided_slice %384 {offsets = [0, 0], sizes = [2, 32], strides = [1, 1]} : vector<2x128xf32> to vector<2x32xf32>
    %386 = arith.negf %385 : vector<2x32xf32>
    %387 = math.exp %386 : vector<2x32xf32>
    %cst_96 = arith.constant 1.000000e+00 : f32
    %388 = vector.broadcast %cst_96 : f32 to vector<2x32xf32>
    %389 = arith.addf %388, %387 : vector<2x32xf32>
    %390 = arith.divf %388, %389 : vector<2x32xf32>
    %391 = vector.extract_strided_slice %384 {offsets = [0, 32], sizes = [2, 32], strides = [1, 1]} : vector<2x128xf32> to vector<2x32xf32>
    %392 = arith.negf %391 : vector<2x32xf32>
    %393 = math.exp %392 : vector<2x32xf32>
    %cst_97 = arith.constant 1.000000e+00 : f32
    %394 = vector.broadcast %cst_97 : f32 to vector<2x32xf32>
    %395 = arith.addf %394, %393 : vector<2x32xf32>
    %396 = arith.divf %394, %395 : vector<2x32xf32>
    %397 = vector.extract_strided_slice %384 {offsets = [0, 64], sizes = [2, 32], strides = [1, 1]} : vector<2x128xf32> to vector<2x32xf32>
    %398 = math.tanh %397 : vector<2x32xf32>
    %399 = vector.extract_strided_slice %384 {offsets = [0, 96], sizes = [2, 32], strides = [1, 1]} : vector<2x128xf32> to vector<2x32xf32>
    %400 = arith.negf %399 : vector<2x32xf32>
    %401 = math.exp %400 : vector<2x32xf32>
    %cst_98 = arith.constant 1.000000e+00 : f32
    %402 = vector.broadcast %cst_98 : f32 to vector<2x32xf32>
    %403 = arith.addf %402, %401 : vector<2x32xf32>
    %404 = arith.divf %402, %403 : vector<2x32xf32>
    %405 = arith.mulf %396, %281 : vector<2x32xf32>
    %406 = arith.mulf %390, %398 : vector<2x32xf32>
    %407 = arith.addf %405, %406 : vector<2x32xf32>
    %408 = math.tanh %407 : vector<2x32xf32>
    %409 = arith.mulf %404, %408 : vector<2x32xf32>
    %c3_i32 = arith.constant 3 : i32
    %410 = arith.index_cast %c3_i32 : i32 to index
    %c0_99 = arith.constant 0 : index
    %c0_100 = arith.constant 0 : index
    %411 = vector.load %arg0[%410, %c0_99, %c0_100] : memref<8x2x1xf32, #tpu.memory_space<vmem>>, vector<1x2x1xf32>
    %412 = vector.shape_cast %411 : vector<1x2x1xf32> to vector<2x1xf32>
    %413 = arith.index_cast %c3_i32 : i32 to index
    %c0_101 = arith.constant 0 : index
    %c0_102 = arith.constant 0 : index
    %414 = vector.load %arg1[%413, %c0_101, %c0_102] : memref<8x2x1xf32, #tpu.memory_space<vmem>>, vector<1x2x1xf32>
    %415 = vector.shape_cast %414 : vector<1x2x1xf32> to vector<2x1xf32>
    %416 = vector.broadcast %412 : vector<2x1xf32> to vector<2x128xf32>
    %417 = vector.broadcast %0 : vector<1x128xf32> to vector<2x128xf32>
    %418 = arith.mulf %416, %417 : vector<2x128xf32>
    %419 = vector.broadcast %415 : vector<2x1xf32> to vector<2x128xf32>
    %420 = vector.broadcast %1 : vector<1x128xf32> to vector<2x128xf32>
    %421 = arith.mulf %419, %420 : vector<2x128xf32>
    %cst_103 = arith.constant dense<0.000000e+00> : vector<2x128xf32>
    %422 = tpu.matmul %323, %3, %cst_103 {dimension_numbers = #tpu.dot_dimension_numbers<[1], [0], [0], [1], [0, 0, 1, 1], [], []>} : vector<2x32xf32>, vector<32x128xf32>, vector<2x128xf32> -> vector<2x128xf32>
    %423 = arith.addf %418, %422 : vector<2x128xf32>
    %424 = arith.addf %423, %17 : vector<2x128xf32>
    %425 = vector.extract_strided_slice %424 {offsets = [0, 0], sizes = [2, 32], strides = [1, 1]} : vector<2x128xf32> to vector<2x32xf32>
    %426 = arith.negf %425 : vector<2x32xf32>
    %427 = math.exp %426 : vector<2x32xf32>
    %cst_104 = arith.constant 1.000000e+00 : f32
    %428 = vector.broadcast %cst_104 : f32 to vector<2x32xf32>
    %429 = arith.addf %428, %427 : vector<2x32xf32>
    %430 = arith.divf %428, %429 : vector<2x32xf32>
    %431 = vector.extract_strided_slice %424 {offsets = [0, 32], sizes = [2, 32], strides = [1, 1]} : vector<2x128xf32> to vector<2x32xf32>
    %432 = arith.negf %431 : vector<2x32xf32>
    %433 = math.exp %432 : vector<2x32xf32>
    %cst_105 = arith.constant 1.000000e+00 : f32
    %434 = vector.broadcast %cst_105 : f32 to vector<2x32xf32>
    %435 = arith.addf %434, %433 : vector<2x32xf32>
    %436 = arith.divf %434, %435 : vector<2x32xf32>
    %437 = vector.extract_strided_slice %424 {offsets = [0, 64], sizes = [2, 32], strides = [1, 1]} : vector<2x128xf32> to vector<2x32xf32>
    %438 = math.tanh %437 : vector<2x32xf32>
    %439 = vector.extract_strided_slice %424 {offsets = [0, 96], sizes = [2, 32], strides = [1, 1]} : vector<2x128xf32> to vector<2x32xf32>
    %440 = arith.negf %439 : vector<2x32xf32>
    %441 = math.exp %440 : vector<2x32xf32>
    %cst_106 = arith.constant 1.000000e+00 : f32
    %442 = vector.broadcast %cst_106 : f32 to vector<2x32xf32>
    %443 = arith.addf %442, %441 : vector<2x32xf32>
    %444 = arith.divf %442, %443 : vector<2x32xf32>
    %445 = arith.mulf %436, %321 : vector<2x32xf32>
    %446 = arith.mulf %430, %438 : vector<2x32xf32>
    %447 = arith.addf %445, %446 : vector<2x32xf32>
    %448 = math.tanh %447 : vector<2x32xf32>
    %449 = arith.mulf %444, %448 : vector<2x32xf32>
    %cst_107 = arith.constant dense<0.000000e+00> : vector<2x128xf32>
    %450 = tpu.matmul %351, %7, %cst_107 {dimension_numbers = #tpu.dot_dimension_numbers<[1], [0], [0], [1], [0, 0, 1, 1], [], []>} : vector<2x32xf32>, vector<32x128xf32>, vector<2x128xf32> -> vector<2x128xf32>
    %451 = arith.addf %421, %450 : vector<2x128xf32>
    %452 = arith.addf %451, %25 : vector<2x128xf32>
    %453 = vector.extract_strided_slice %452 {offsets = [0, 0], sizes = [2, 32], strides = [1, 1]} : vector<2x128xf32> to vector<2x32xf32>
    %454 = arith.negf %453 : vector<2x32xf32>
    %455 = math.exp %454 : vector<2x32xf32>
    %cst_108 = arith.constant 1.000000e+00 : f32
    %456 = vector.broadcast %cst_108 : f32 to vector<2x32xf32>
    %457 = arith.addf %456, %455 : vector<2x32xf32>
    %458 = arith.divf %456, %457 : vector<2x32xf32>
    %459 = vector.extract_strided_slice %452 {offsets = [0, 32], sizes = [2, 32], strides = [1, 1]} : vector<2x128xf32> to vector<2x32xf32>
    %460 = arith.negf %459 : vector<2x32xf32>
    %461 = math.exp %460 : vector<2x32xf32>
    %cst_109 = arith.constant 1.000000e+00 : f32
    %462 = vector.broadcast %cst_109 : f32 to vector<2x32xf32>
    %463 = arith.addf %462, %461 : vector<2x32xf32>
    %464 = arith.divf %462, %463 : vector<2x32xf32>
    %465 = vector.extract_strided_slice %452 {offsets = [0, 64], sizes = [2, 32], strides = [1, 1]} : vector<2x128xf32> to vector<2x32xf32>
    %466 = math.tanh %465 : vector<2x32xf32>
    %467 = vector.extract_strided_slice %452 {offsets = [0, 96], sizes = [2, 32], strides = [1, 1]} : vector<2x128xf32> to vector<2x32xf32>
    %468 = arith.negf %467 : vector<2x32xf32>
    %469 = math.exp %468 : vector<2x32xf32>
    %cst_110 = arith.constant 1.000000e+00 : f32
    %470 = vector.broadcast %cst_110 : f32 to vector<2x32xf32>
    %471 = arith.addf %470, %469 : vector<2x32xf32>
    %472 = arith.divf %470, %471 : vector<2x32xf32>
    %473 = arith.mulf %464, %349 : vector<2x32xf32>
    %474 = arith.mulf %458, %466 : vector<2x32xf32>
    %475 = arith.addf %473, %474 : vector<2x32xf32>
    %476 = math.tanh %475 : vector<2x32xf32>
    %477 = arith.mulf %472, %476 : vector<2x32xf32>
    %cst_111 = arith.constant dense<0.000000e+00> : vector<2x128xf32>
    %478 = tpu.matmul %449, %11, %cst_111 {dimension_numbers = #tpu.dot_dimension_numbers<[1], [0], [0], [1], [0, 0, 1, 1], [], []>} : vector<2x32xf32>, vector<32x128xf32>, vector<2x128xf32> -> vector<2x128xf32>
    %cst_112 = arith.constant dense<0.000000e+00> : vector<2x128xf32>
    %479 = tpu.matmul %477, %13, %cst_112 {dimension_numbers = #tpu.dot_dimension_numbers<[1], [0], [0], [1], [0, 0, 1, 1], [], []>} : vector<2x32xf32>, vector<32x128xf32>, vector<2x128xf32> -> vector<2x128xf32>
    %cst_113 = arith.constant dense<0.000000e+00> : vector<2x128xf32>
    %480 = tpu.matmul %381, %5, %cst_113 {dimension_numbers = #tpu.dot_dimension_numbers<[1], [0], [0], [1], [0, 0, 1, 1], [], []>} : vector<2x32xf32>, vector<32x128xf32>, vector<2x128xf32> -> vector<2x128xf32>
    %481 = arith.addf %478, %480 : vector<2x128xf32>
    %482 = arith.addf %481, %21 : vector<2x128xf32>
    %483 = vector.extract_strided_slice %482 {offsets = [0, 0], sizes = [2, 32], strides = [1, 1]} : vector<2x128xf32> to vector<2x32xf32>
    %484 = arith.negf %483 : vector<2x32xf32>
    %485 = math.exp %484 : vector<2x32xf32>
    %cst_114 = arith.constant 1.000000e+00 : f32
    %486 = vector.broadcast %cst_114 : f32 to vector<2x32xf32>
    %487 = arith.addf %486, %485 : vector<2x32xf32>
    %488 = arith.divf %486, %487 : vector<2x32xf32>
    %489 = vector.extract_strided_slice %482 {offsets = [0, 32], sizes = [2, 32], strides = [1, 1]} : vector<2x128xf32> to vector<2x32xf32>
    %490 = arith.negf %489 : vector<2x32xf32>
    %491 = math.exp %490 : vector<2x32xf32>
    %cst_115 = arith.constant 1.000000e+00 : f32
    %492 = vector.broadcast %cst_115 : f32 to vector<2x32xf32>
    %493 = arith.addf %492, %491 : vector<2x32xf32>
    %494 = arith.divf %492, %493 : vector<2x32xf32>
    %495 = vector.extract_strided_slice %482 {offsets = [0, 64], sizes = [2, 32], strides = [1, 1]} : vector<2x128xf32> to vector<2x32xf32>
    %496 = math.tanh %495 : vector<2x32xf32>
    %497 = vector.extract_strided_slice %482 {offsets = [0, 96], sizes = [2, 32], strides = [1, 1]} : vector<2x128xf32> to vector<2x32xf32>
    %498 = arith.negf %497 : vector<2x32xf32>
    %499 = math.exp %498 : vector<2x32xf32>
    %cst_116 = arith.constant 1.000000e+00 : f32
    %500 = vector.broadcast %cst_116 : f32 to vector<2x32xf32>
    %501 = arith.addf %500, %499 : vector<2x32xf32>
    %502 = arith.divf %500, %501 : vector<2x32xf32>
    %503 = arith.mulf %494, %379 : vector<2x32xf32>
    %504 = arith.mulf %488, %496 : vector<2x32xf32>
    %505 = arith.addf %503, %504 : vector<2x32xf32>
    %506 = math.tanh %505 : vector<2x32xf32>
    %507 = arith.mulf %502, %506 : vector<2x32xf32>
    %cst_117 = arith.constant dense<0.000000e+00> : vector<2x128xf32>
    %508 = tpu.matmul %409, %9, %cst_117 {dimension_numbers = #tpu.dot_dimension_numbers<[1], [0], [0], [1], [0, 0, 1, 1], [], []>} : vector<2x32xf32>, vector<32x128xf32>, vector<2x128xf32> -> vector<2x128xf32>
    %509 = arith.addf %479, %508 : vector<2x128xf32>
    %510 = arith.addf %509, %29 : vector<2x128xf32>
    %511 = vector.extract_strided_slice %510 {offsets = [0, 0], sizes = [2, 32], strides = [1, 1]} : vector<2x128xf32> to vector<2x32xf32>
    %512 = arith.negf %511 : vector<2x32xf32>
    %513 = math.exp %512 : vector<2x32xf32>
    %cst_118 = arith.constant 1.000000e+00 : f32
    %514 = vector.broadcast %cst_118 : f32 to vector<2x32xf32>
    %515 = arith.addf %514, %513 : vector<2x32xf32>
    %516 = arith.divf %514, %515 : vector<2x32xf32>
    %517 = vector.extract_strided_slice %510 {offsets = [0, 32], sizes = [2, 32], strides = [1, 1]} : vector<2x128xf32> to vector<2x32xf32>
    %518 = arith.negf %517 : vector<2x32xf32>
    %519 = math.exp %518 : vector<2x32xf32>
    %cst_119 = arith.constant 1.000000e+00 : f32
    %520 = vector.broadcast %cst_119 : f32 to vector<2x32xf32>
    %521 = arith.addf %520, %519 : vector<2x32xf32>
    %522 = arith.divf %520, %521 : vector<2x32xf32>
    %523 = vector.extract_strided_slice %510 {offsets = [0, 64], sizes = [2, 32], strides = [1, 1]} : vector<2x128xf32> to vector<2x32xf32>
    %524 = math.tanh %523 : vector<2x32xf32>
    %525 = vector.extract_strided_slice %510 {offsets = [0, 96], sizes = [2, 32], strides = [1, 1]} : vector<2x128xf32> to vector<2x32xf32>
    %526 = arith.negf %525 : vector<2x32xf32>
    %527 = math.exp %526 : vector<2x32xf32>
    %cst_120 = arith.constant 1.000000e+00 : f32
    %528 = vector.broadcast %cst_120 : f32 to vector<2x32xf32>
    %529 = arith.addf %528, %527 : vector<2x32xf32>
    %530 = arith.divf %528, %529 : vector<2x32xf32>
    %531 = arith.mulf %522, %407 : vector<2x32xf32>
    %532 = arith.mulf %516, %524 : vector<2x32xf32>
    %533 = arith.addf %531, %532 : vector<2x32xf32>
    %534 = math.tanh %533 : vector<2x32xf32>
    %535 = arith.mulf %530, %534 : vector<2x32xf32>
    %c4_i32 = arith.constant 4 : i32
    %536 = arith.index_cast %c4_i32 : i32 to index
    %c0_121 = arith.constant 0 : index
    %c0_122 = arith.constant 0 : index
    %537 = vector.load %arg0[%536, %c0_121, %c0_122] : memref<8x2x1xf32, #tpu.memory_space<vmem>>, vector<1x2x1xf32>
    %538 = vector.shape_cast %537 : vector<1x2x1xf32> to vector<2x1xf32>
    %539 = arith.index_cast %c4_i32 : i32 to index
    %c0_123 = arith.constant 0 : index
    %c0_124 = arith.constant 0 : index
    %540 = vector.load %arg1[%539, %c0_123, %c0_124] : memref<8x2x1xf32, #tpu.memory_space<vmem>>, vector<1x2x1xf32>
    %541 = vector.shape_cast %540 : vector<1x2x1xf32> to vector<2x1xf32>
    %542 = vector.broadcast %538 : vector<2x1xf32> to vector<2x128xf32>
    %543 = vector.broadcast %0 : vector<1x128xf32> to vector<2x128xf32>
    %544 = arith.mulf %542, %543 : vector<2x128xf32>
    %545 = vector.broadcast %541 : vector<2x1xf32> to vector<2x128xf32>
    %546 = vector.broadcast %1 : vector<1x128xf32> to vector<2x128xf32>
    %547 = arith.mulf %545, %546 : vector<2x128xf32>
    %cst_125 = arith.constant dense<0.000000e+00> : vector<2x128xf32>
    %548 = tpu.matmul %449, %3, %cst_125 {dimension_numbers = #tpu.dot_dimension_numbers<[1], [0], [0], [1], [0, 0, 1, 1], [], []>} : vector<2x32xf32>, vector<32x128xf32>, vector<2x128xf32> -> vector<2x128xf32>
    %549 = arith.addf %544, %548 : vector<2x128xf32>
    %550 = arith.addf %549, %17 : vector<2x128xf32>
    %551 = vector.extract_strided_slice %550 {offsets = [0, 0], sizes = [2, 32], strides = [1, 1]} : vector<2x128xf32> to vector<2x32xf32>
    %552 = arith.negf %551 : vector<2x32xf32>
    %553 = math.exp %552 : vector<2x32xf32>
    %cst_126 = arith.constant 1.000000e+00 : f32
    %554 = vector.broadcast %cst_126 : f32 to vector<2x32xf32>
    %555 = arith.addf %554, %553 : vector<2x32xf32>
    %556 = arith.divf %554, %555 : vector<2x32xf32>
    %557 = vector.extract_strided_slice %550 {offsets = [0, 32], sizes = [2, 32], strides = [1, 1]} : vector<2x128xf32> to vector<2x32xf32>
    %558 = arith.negf %557 : vector<2x32xf32>
    %559 = math.exp %558 : vector<2x32xf32>
    %cst_127 = arith.constant 1.000000e+00 : f32
    %560 = vector.broadcast %cst_127 : f32 to vector<2x32xf32>
    %561 = arith.addf %560, %559 : vector<2x32xf32>
    %562 = arith.divf %560, %561 : vector<2x32xf32>
    %563 = vector.extract_strided_slice %550 {offsets = [0, 64], sizes = [2, 32], strides = [1, 1]} : vector<2x128xf32> to vector<2x32xf32>
    %564 = math.tanh %563 : vector<2x32xf32>
    %565 = vector.extract_strided_slice %550 {offsets = [0, 96], sizes = [2, 32], strides = [1, 1]} : vector<2x128xf32> to vector<2x32xf32>
    %566 = arith.negf %565 : vector<2x32xf32>
    %567 = math.exp %566 : vector<2x32xf32>
    %cst_128 = arith.constant 1.000000e+00 : f32
    %568 = vector.broadcast %cst_128 : f32 to vector<2x32xf32>
    %569 = arith.addf %568, %567 : vector<2x32xf32>
    %570 = arith.divf %568, %569 : vector<2x32xf32>
    %571 = arith.mulf %562, %447 : vector<2x32xf32>
    %572 = arith.mulf %556, %564 : vector<2x32xf32>
    %573 = arith.addf %571, %572 : vector<2x32xf32>
    %574 = math.tanh %573 : vector<2x32xf32>
    %575 = arith.mulf %570, %574 : vector<2x32xf32>
    %cst_129 = arith.constant dense<0.000000e+00> : vector<2x128xf32>
    %576 = tpu.matmul %477, %7, %cst_129 {dimension_numbers = #tpu.dot_dimension_numbers<[1], [0], [0], [1], [0, 0, 1, 1], [], []>} : vector<2x32xf32>, vector<32x128xf32>, vector<2x128xf32> -> vector<2x128xf32>
    %577 = arith.addf %547, %576 : vector<2x128xf32>
    %578 = arith.addf %577, %25 : vector<2x128xf32>
    %579 = vector.extract_strided_slice %578 {offsets = [0, 0], sizes = [2, 32], strides = [1, 1]} : vector<2x128xf32> to vector<2x32xf32>
    %580 = arith.negf %579 : vector<2x32xf32>
    %581 = math.exp %580 : vector<2x32xf32>
    %cst_130 = arith.constant 1.000000e+00 : f32
    %582 = vector.broadcast %cst_130 : f32 to vector<2x32xf32>
    %583 = arith.addf %582, %581 : vector<2x32xf32>
    %584 = arith.divf %582, %583 : vector<2x32xf32>
    %585 = vector.extract_strided_slice %578 {offsets = [0, 32], sizes = [2, 32], strides = [1, 1]} : vector<2x128xf32> to vector<2x32xf32>
    %586 = arith.negf %585 : vector<2x32xf32>
    %587 = math.exp %586 : vector<2x32xf32>
    %cst_131 = arith.constant 1.000000e+00 : f32
    %588 = vector.broadcast %cst_131 : f32 to vector<2x32xf32>
    %589 = arith.addf %588, %587 : vector<2x32xf32>
    %590 = arith.divf %588, %589 : vector<2x32xf32>
    %591 = vector.extract_strided_slice %578 {offsets = [0, 64], sizes = [2, 32], strides = [1, 1]} : vector<2x128xf32> to vector<2x32xf32>
    %592 = math.tanh %591 : vector<2x32xf32>
    %593 = vector.extract_strided_slice %578 {offsets = [0, 96], sizes = [2, 32], strides = [1, 1]} : vector<2x128xf32> to vector<2x32xf32>
    %594 = arith.negf %593 : vector<2x32xf32>
    %595 = math.exp %594 : vector<2x32xf32>
    %cst_132 = arith.constant 1.000000e+00 : f32
    %596 = vector.broadcast %cst_132 : f32 to vector<2x32xf32>
    %597 = arith.addf %596, %595 : vector<2x32xf32>
    %598 = arith.divf %596, %597 : vector<2x32xf32>
    %599 = arith.mulf %590, %475 : vector<2x32xf32>
    %600 = arith.mulf %584, %592 : vector<2x32xf32>
    %601 = arith.addf %599, %600 : vector<2x32xf32>
    %602 = math.tanh %601 : vector<2x32xf32>
    %603 = arith.mulf %598, %602 : vector<2x32xf32>
    %cst_133 = arith.constant dense<0.000000e+00> : vector<2x128xf32>
    %604 = tpu.matmul %575, %11, %cst_133 {dimension_numbers = #tpu.dot_dimension_numbers<[1], [0], [0], [1], [0, 0, 1, 1], [], []>} : vector<2x32xf32>, vector<32x128xf32>, vector<2x128xf32> -> vector<2x128xf32>
    %cst_134 = arith.constant dense<0.000000e+00> : vector<2x128xf32>
    %605 = tpu.matmul %603, %13, %cst_134 {dimension_numbers = #tpu.dot_dimension_numbers<[1], [0], [0], [1], [0, 0, 1, 1], [], []>} : vector<2x32xf32>, vector<32x128xf32>, vector<2x128xf32> -> vector<2x128xf32>
    %cst_135 = arith.constant dense<0.000000e+00> : vector<2x128xf32>
    %606 = tpu.matmul %507, %5, %cst_135 {dimension_numbers = #tpu.dot_dimension_numbers<[1], [0], [0], [1], [0, 0, 1, 1], [], []>} : vector<2x32xf32>, vector<32x128xf32>, vector<2x128xf32> -> vector<2x128xf32>
    %607 = arith.addf %604, %606 : vector<2x128xf32>
    %608 = arith.addf %607, %21 : vector<2x128xf32>
    %609 = vector.extract_strided_slice %608 {offsets = [0, 0], sizes = [2, 32], strides = [1, 1]} : vector<2x128xf32> to vector<2x32xf32>
    %610 = arith.negf %609 : vector<2x32xf32>
    %611 = math.exp %610 : vector<2x32xf32>
    %cst_136 = arith.constant 1.000000e+00 : f32
    %612 = vector.broadcast %cst_136 : f32 to vector<2x32xf32>
    %613 = arith.addf %612, %611 : vector<2x32xf32>
    %614 = arith.divf %612, %613 : vector<2x32xf32>
    %615 = vector.extract_strided_slice %608 {offsets = [0, 32], sizes = [2, 32], strides = [1, 1]} : vector<2x128xf32> to vector<2x32xf32>
    %616 = arith.negf %615 : vector<2x32xf32>
    %617 = math.exp %616 : vector<2x32xf32>
    %cst_137 = arith.constant 1.000000e+00 : f32
    %618 = vector.broadcast %cst_137 : f32 to vector<2x32xf32>
    %619 = arith.addf %618, %617 : vector<2x32xf32>
    %620 = arith.divf %618, %619 : vector<2x32xf32>
    %621 = vector.extract_strided_slice %608 {offsets = [0, 64], sizes = [2, 32], strides = [1, 1]} : vector<2x128xf32> to vector<2x32xf32>
    %622 = math.tanh %621 : vector<2x32xf32>
    %623 = vector.extract_strided_slice %608 {offsets = [0, 96], sizes = [2, 32], strides = [1, 1]} : vector<2x128xf32> to vector<2x32xf32>
    %624 = arith.negf %623 : vector<2x32xf32>
    %625 = math.exp %624 : vector<2x32xf32>
    %cst_138 = arith.constant 1.000000e+00 : f32
    %626 = vector.broadcast %cst_138 : f32 to vector<2x32xf32>
    %627 = arith.addf %626, %625 : vector<2x32xf32>
    %628 = arith.divf %626, %627 : vector<2x32xf32>
    %629 = arith.mulf %620, %505 : vector<2x32xf32>
    %630 = arith.mulf %614, %622 : vector<2x32xf32>
    %631 = arith.addf %629, %630 : vector<2x32xf32>
    %632 = math.tanh %631 : vector<2x32xf32>
    %633 = arith.mulf %628, %632 : vector<2x32xf32>
    %cst_139 = arith.constant dense<0.000000e+00> : vector<2x128xf32>
    %634 = tpu.matmul %535, %9, %cst_139 {dimension_numbers = #tpu.dot_dimension_numbers<[1], [0], [0], [1], [0, 0, 1, 1], [], []>} : vector<2x32xf32>, vector<32x128xf32>, vector<2x128xf32> -> vector<2x128xf32>
    %635 = arith.addf %605, %634 : vector<2x128xf32>
    %636 = arith.addf %635, %29 : vector<2x128xf32>
    %637 = vector.extract_strided_slice %636 {offsets = [0, 0], sizes = [2, 32], strides = [1, 1]} : vector<2x128xf32> to vector<2x32xf32>
    %638 = arith.negf %637 : vector<2x32xf32>
    %639 = math.exp %638 : vector<2x32xf32>
    %cst_140 = arith.constant 1.000000e+00 : f32
    %640 = vector.broadcast %cst_140 : f32 to vector<2x32xf32>
    %641 = arith.addf %640, %639 : vector<2x32xf32>
    %642 = arith.divf %640, %641 : vector<2x32xf32>
    %643 = vector.extract_strided_slice %636 {offsets = [0, 32], sizes = [2, 32], strides = [1, 1]} : vector<2x128xf32> to vector<2x32xf32>
    %644 = arith.negf %643 : vector<2x32xf32>
    %645 = math.exp %644 : vector<2x32xf32>
    %cst_141 = arith.constant 1.000000e+00 : f32
    %646 = vector.broadcast %cst_141 : f32 to vector<2x32xf32>
    %647 = arith.addf %646, %645 : vector<2x32xf32>
    %648 = arith.divf %646, %647 : vector<2x32xf32>
    %649 = vector.extract_strided_slice %636 {offsets = [0, 64], sizes = [2, 32], strides = [1, 1]} : vector<2x128xf32> to vector<2x32xf32>
    %650 = math.tanh %649 : vector<2x32xf32>
    %651 = vector.extract_strided_slice %636 {offsets = [0, 96], sizes = [2, 32], strides = [1, 1]} : vector<2x128xf32> to vector<2x32xf32>
    %652 = arith.negf %651 : vector<2x32xf32>
    %653 = math.exp %652 : vector<2x32xf32>
    %cst_142 = arith.constant 1.000000e+00 : f32
    %654 = vector.broadcast %cst_142 : f32 to vector<2x32xf32>
    %655 = arith.addf %654, %653 : vector<2x32xf32>
    %656 = arith.divf %654, %655 : vector<2x32xf32>
    %657 = arith.mulf %648, %533 : vector<2x32xf32>
    %658 = arith.mulf %642, %650 : vector<2x32xf32>
    %659 = arith.addf %657, %658 : vector<2x32xf32>
    %660 = math.tanh %659 : vector<2x32xf32>
    %661 = arith.mulf %656, %660 : vector<2x32xf32>
    %c5_i32 = arith.constant 5 : i32
    %662 = arith.index_cast %c5_i32 : i32 to index
    %c0_143 = arith.constant 0 : index
    %c0_144 = arith.constant 0 : index
    %663 = vector.load %arg0[%662, %c0_143, %c0_144] : memref<8x2x1xf32, #tpu.memory_space<vmem>>, vector<1x2x1xf32>
    %664 = vector.shape_cast %663 : vector<1x2x1xf32> to vector<2x1xf32>
    %665 = arith.index_cast %c5_i32 : i32 to index
    %c0_145 = arith.constant 0 : index
    %c0_146 = arith.constant 0 : index
    %666 = vector.load %arg1[%665, %c0_145, %c0_146] : memref<8x2x1xf32, #tpu.memory_space<vmem>>, vector<1x2x1xf32>
    %667 = vector.shape_cast %666 : vector<1x2x1xf32> to vector<2x1xf32>
    %668 = vector.broadcast %664 : vector<2x1xf32> to vector<2x128xf32>
    %669 = vector.broadcast %0 : vector<1x128xf32> to vector<2x128xf32>
    %670 = arith.mulf %668, %669 : vector<2x128xf32>
    %671 = vector.broadcast %667 : vector<2x1xf32> to vector<2x128xf32>
    %672 = vector.broadcast %1 : vector<1x128xf32> to vector<2x128xf32>
    %673 = arith.mulf %671, %672 : vector<2x128xf32>
    %cst_147 = arith.constant dense<0.000000e+00> : vector<2x128xf32>
    %674 = tpu.matmul %575, %3, %cst_147 {dimension_numbers = #tpu.dot_dimension_numbers<[1], [0], [0], [1], [0, 0, 1, 1], [], []>} : vector<2x32xf32>, vector<32x128xf32>, vector<2x128xf32> -> vector<2x128xf32>
    %675 = arith.addf %670, %674 : vector<2x128xf32>
    %676 = arith.addf %675, %17 : vector<2x128xf32>
    %677 = vector.extract_strided_slice %676 {offsets = [0, 0], sizes = [2, 32], strides = [1, 1]} : vector<2x128xf32> to vector<2x32xf32>
    %678 = arith.negf %677 : vector<2x32xf32>
    %679 = math.exp %678 : vector<2x32xf32>
    %cst_148 = arith.constant 1.000000e+00 : f32
    %680 = vector.broadcast %cst_148 : f32 to vector<2x32xf32>
    %681 = arith.addf %680, %679 : vector<2x32xf32>
    %682 = arith.divf %680, %681 : vector<2x32xf32>
    %683 = vector.extract_strided_slice %676 {offsets = [0, 32], sizes = [2, 32], strides = [1, 1]} : vector<2x128xf32> to vector<2x32xf32>
    %684 = arith.negf %683 : vector<2x32xf32>
    %685 = math.exp %684 : vector<2x32xf32>
    %cst_149 = arith.constant 1.000000e+00 : f32
    %686 = vector.broadcast %cst_149 : f32 to vector<2x32xf32>
    %687 = arith.addf %686, %685 : vector<2x32xf32>
    %688 = arith.divf %686, %687 : vector<2x32xf32>
    %689 = vector.extract_strided_slice %676 {offsets = [0, 64], sizes = [2, 32], strides = [1, 1]} : vector<2x128xf32> to vector<2x32xf32>
    %690 = math.tanh %689 : vector<2x32xf32>
    %691 = vector.extract_strided_slice %676 {offsets = [0, 96], sizes = [2, 32], strides = [1, 1]} : vector<2x128xf32> to vector<2x32xf32>
    %692 = arith.negf %691 : vector<2x32xf32>
    %693 = math.exp %692 : vector<2x32xf32>
    %cst_150 = arith.constant 1.000000e+00 : f32
    %694 = vector.broadcast %cst_150 : f32 to vector<2x32xf32>
    %695 = arith.addf %694, %693 : vector<2x32xf32>
    %696 = arith.divf %694, %695 : vector<2x32xf32>
    %697 = arith.mulf %688, %573 : vector<2x32xf32>
    %698 = arith.mulf %682, %690 : vector<2x32xf32>
    %699 = arith.addf %697, %698 : vector<2x32xf32>
    %700 = math.tanh %699 : vector<2x32xf32>
    %701 = arith.mulf %696, %700 : vector<2x32xf32>
    %cst_151 = arith.constant dense<0.000000e+00> : vector<2x128xf32>
    %702 = tpu.matmul %603, %7, %cst_151 {dimension_numbers = #tpu.dot_dimension_numbers<[1], [0], [0], [1], [0, 0, 1, 1], [], []>} : vector<2x32xf32>, vector<32x128xf32>, vector<2x128xf32> -> vector<2x128xf32>
    %703 = arith.addf %673, %702 : vector<2x128xf32>
    %704 = arith.addf %703, %25 : vector<2x128xf32>
    %705 = vector.extract_strided_slice %704 {offsets = [0, 0], sizes = [2, 32], strides = [1, 1]} : vector<2x128xf32> to vector<2x32xf32>
    %706 = arith.negf %705 : vector<2x32xf32>
    %707 = math.exp %706 : vector<2x32xf32>
    %cst_152 = arith.constant 1.000000e+00 : f32
    %708 = vector.broadcast %cst_152 : f32 to vector<2x32xf32>
    %709 = arith.addf %708, %707 : vector<2x32xf32>
    %710 = arith.divf %708, %709 : vector<2x32xf32>
    %711 = vector.extract_strided_slice %704 {offsets = [0, 32], sizes = [2, 32], strides = [1, 1]} : vector<2x128xf32> to vector<2x32xf32>
    %712 = arith.negf %711 : vector<2x32xf32>
    %713 = math.exp %712 : vector<2x32xf32>
    %cst_153 = arith.constant 1.000000e+00 : f32
    %714 = vector.broadcast %cst_153 : f32 to vector<2x32xf32>
    %715 = arith.addf %714, %713 : vector<2x32xf32>
    %716 = arith.divf %714, %715 : vector<2x32xf32>
    %717 = vector.extract_strided_slice %704 {offsets = [0, 64], sizes = [2, 32], strides = [1, 1]} : vector<2x128xf32> to vector<2x32xf32>
    %718 = math.tanh %717 : vector<2x32xf32>
    %719 = vector.extract_strided_slice %704 {offsets = [0, 96], sizes = [2, 32], strides = [1, 1]} : vector<2x128xf32> to vector<2x32xf32>
    %720 = arith.negf %719 : vector<2x32xf32>
    %721 = math.exp %720 : vector<2x32xf32>
    %cst_154 = arith.constant 1.000000e+00 : f32
    %722 = vector.broadcast %cst_154 : f32 to vector<2x32xf32>
    %723 = arith.addf %722, %721 : vector<2x32xf32>
    %724 = arith.divf %722, %723 : vector<2x32xf32>
    %725 = arith.mulf %716, %601 : vector<2x32xf32>
    %726 = arith.mulf %710, %718 : vector<2x32xf32>
    %727 = arith.addf %725, %726 : vector<2x32xf32>
    %728 = math.tanh %727 : vector<2x32xf32>
    %729 = arith.mulf %724, %728 : vector<2x32xf32>
    %cst_155 = arith.constant dense<0.000000e+00> : vector<2x128xf32>
    %730 = tpu.matmul %701, %11, %cst_155 {dimension_numbers = #tpu.dot_dimension_numbers<[1], [0], [0], [1], [0, 0, 1, 1], [], []>} : vector<2x32xf32>, vector<32x128xf32>, vector<2x128xf32> -> vector<2x128xf32>
    %cst_156 = arith.constant dense<0.000000e+00> : vector<2x128xf32>
    %731 = tpu.matmul %729, %13, %cst_156 {dimension_numbers = #tpu.dot_dimension_numbers<[1], [0], [0], [1], [0, 0, 1, 1], [], []>} : vector<2x32xf32>, vector<32x128xf32>, vector<2x128xf32> -> vector<2x128xf32>
    %cst_157 = arith.constant dense<0.000000e+00> : vector<2x128xf32>
    %732 = tpu.matmul %633, %5, %cst_157 {dimension_numbers = #tpu.dot_dimension_numbers<[1], [0], [0], [1], [0, 0, 1, 1], [], []>} : vector<2x32xf32>, vector<32x128xf32>, vector<2x128xf32> -> vector<2x128xf32>
    %733 = arith.addf %730, %732 : vector<2x128xf32>
    %734 = arith.addf %733, %21 : vector<2x128xf32>
    %735 = vector.extract_strided_slice %734 {offsets = [0, 0], sizes = [2, 32], strides = [1, 1]} : vector<2x128xf32> to vector<2x32xf32>
    %736 = arith.negf %735 : vector<2x32xf32>
    %737 = math.exp %736 : vector<2x32xf32>
    %cst_158 = arith.constant 1.000000e+00 : f32
    %738 = vector.broadcast %cst_158 : f32 to vector<2x32xf32>
    %739 = arith.addf %738, %737 : vector<2x32xf32>
    %740 = arith.divf %738, %739 : vector<2x32xf32>
    %741 = vector.extract_strided_slice %734 {offsets = [0, 32], sizes = [2, 32], strides = [1, 1]} : vector<2x128xf32> to vector<2x32xf32>
    %742 = arith.negf %741 : vector<2x32xf32>
    %743 = math.exp %742 : vector<2x32xf32>
    %cst_159 = arith.constant 1.000000e+00 : f32
    %744 = vector.broadcast %cst_159 : f32 to vector<2x32xf32>
    %745 = arith.addf %744, %743 : vector<2x32xf32>
    %746 = arith.divf %744, %745 : vector<2x32xf32>
    %747 = vector.extract_strided_slice %734 {offsets = [0, 64], sizes = [2, 32], strides = [1, 1]} : vector<2x128xf32> to vector<2x32xf32>
    %748 = math.tanh %747 : vector<2x32xf32>
    %749 = vector.extract_strided_slice %734 {offsets = [0, 96], sizes = [2, 32], strides = [1, 1]} : vector<2x128xf32> to vector<2x32xf32>
    %750 = arith.negf %749 : vector<2x32xf32>
    %751 = math.exp %750 : vector<2x32xf32>
    %cst_160 = arith.constant 1.000000e+00 : f32
    %752 = vector.broadcast %cst_160 : f32 to vector<2x32xf32>
    %753 = arith.addf %752, %751 : vector<2x32xf32>
    %754 = arith.divf %752, %753 : vector<2x32xf32>
    %755 = arith.mulf %746, %631 : vector<2x32xf32>
    %756 = arith.mulf %740, %748 : vector<2x32xf32>
    %757 = arith.addf %755, %756 : vector<2x32xf32>
    %758 = math.tanh %757 : vector<2x32xf32>
    %759 = arith.mulf %754, %758 : vector<2x32xf32>
    %cst_161 = arith.constant dense<0.000000e+00> : vector<2x128xf32>
    %760 = tpu.matmul %661, %9, %cst_161 {dimension_numbers = #tpu.dot_dimension_numbers<[1], [0], [0], [1], [0, 0, 1, 1], [], []>} : vector<2x32xf32>, vector<32x128xf32>, vector<2x128xf32> -> vector<2x128xf32>
    %761 = arith.addf %731, %760 : vector<2x128xf32>
    %762 = arith.addf %761, %29 : vector<2x128xf32>
    %763 = vector.extract_strided_slice %762 {offsets = [0, 0], sizes = [2, 32], strides = [1, 1]} : vector<2x128xf32> to vector<2x32xf32>
    %764 = arith.negf %763 : vector<2x32xf32>
    %765 = math.exp %764 : vector<2x32xf32>
    %cst_162 = arith.constant 1.000000e+00 : f32
    %766 = vector.broadcast %cst_162 : f32 to vector<2x32xf32>
    %767 = arith.addf %766, %765 : vector<2x32xf32>
    %768 = arith.divf %766, %767 : vector<2x32xf32>
    %769 = vector.extract_strided_slice %762 {offsets = [0, 32], sizes = [2, 32], strides = [1, 1]} : vector<2x128xf32> to vector<2x32xf32>
    %770 = arith.negf %769 : vector<2x32xf32>
    %771 = math.exp %770 : vector<2x32xf32>
    %cst_163 = arith.constant 1.000000e+00 : f32
    %772 = vector.broadcast %cst_163 : f32 to vector<2x32xf32>
    %773 = arith.addf %772, %771 : vector<2x32xf32>
    %774 = arith.divf %772, %773 : vector<2x32xf32>
    %775 = vector.extract_strided_slice %762 {offsets = [0, 64], sizes = [2, 32], strides = [1, 1]} : vector<2x128xf32> to vector<2x32xf32>
    %776 = math.tanh %775 : vector<2x32xf32>
    %777 = vector.extract_strided_slice %762 {offsets = [0, 96], sizes = [2, 32], strides = [1, 1]} : vector<2x128xf32> to vector<2x32xf32>
    %778 = arith.negf %777 : vector<2x32xf32>
    %779 = math.exp %778 : vector<2x32xf32>
    %cst_164 = arith.constant 1.000000e+00 : f32
    %780 = vector.broadcast %cst_164 : f32 to vector<2x32xf32>
    %781 = arith.addf %780, %779 : vector<2x32xf32>
    %782 = arith.divf %780, %781 : vector<2x32xf32>
    %783 = arith.mulf %774, %659 : vector<2x32xf32>
    %784 = arith.mulf %768, %776 : vector<2x32xf32>
    %785 = arith.addf %783, %784 : vector<2x32xf32>
    %786 = math.tanh %785 : vector<2x32xf32>
    %787 = arith.mulf %782, %786 : vector<2x32xf32>
    %c6_i32 = arith.constant 6 : i32
    %788 = arith.index_cast %c6_i32 : i32 to index
    %c0_165 = arith.constant 0 : index
    %c0_166 = arith.constant 0 : index
    %789 = vector.load %arg0[%788, %c0_165, %c0_166] : memref<8x2x1xf32, #tpu.memory_space<vmem>>, vector<1x2x1xf32>
    %790 = vector.shape_cast %789 : vector<1x2x1xf32> to vector<2x1xf32>
    %791 = arith.index_cast %c6_i32 : i32 to index
    %c0_167 = arith.constant 0 : index
    %c0_168 = arith.constant 0 : index
    %792 = vector.load %arg1[%791, %c0_167, %c0_168] : memref<8x2x1xf32, #tpu.memory_space<vmem>>, vector<1x2x1xf32>
    %793 = vector.shape_cast %792 : vector<1x2x1xf32> to vector<2x1xf32>
    %794 = vector.broadcast %790 : vector<2x1xf32> to vector<2x128xf32>
    %795 = vector.broadcast %0 : vector<1x128xf32> to vector<2x128xf32>
    %796 = arith.mulf %794, %795 : vector<2x128xf32>
    %797 = vector.broadcast %793 : vector<2x1xf32> to vector<2x128xf32>
    %798 = vector.broadcast %1 : vector<1x128xf32> to vector<2x128xf32>
    %799 = arith.mulf %797, %798 : vector<2x128xf32>
    %cst_169 = arith.constant dense<0.000000e+00> : vector<2x128xf32>
    %800 = tpu.matmul %701, %3, %cst_169 {dimension_numbers = #tpu.dot_dimension_numbers<[1], [0], [0], [1], [0, 0, 1, 1], [], []>} : vector<2x32xf32>, vector<32x128xf32>, vector<2x128xf32> -> vector<2x128xf32>
    %801 = arith.addf %796, %800 : vector<2x128xf32>
    %802 = arith.addf %801, %17 : vector<2x128xf32>
    %803 = vector.extract_strided_slice %802 {offsets = [0, 0], sizes = [2, 32], strides = [1, 1]} : vector<2x128xf32> to vector<2x32xf32>
    %804 = arith.negf %803 : vector<2x32xf32>
    %805 = math.exp %804 : vector<2x32xf32>
    %cst_170 = arith.constant 1.000000e+00 : f32
    %806 = vector.broadcast %cst_170 : f32 to vector<2x32xf32>
    %807 = arith.addf %806, %805 : vector<2x32xf32>
    %808 = arith.divf %806, %807 : vector<2x32xf32>
    %809 = vector.extract_strided_slice %802 {offsets = [0, 32], sizes = [2, 32], strides = [1, 1]} : vector<2x128xf32> to vector<2x32xf32>
    %810 = arith.negf %809 : vector<2x32xf32>
    %811 = math.exp %810 : vector<2x32xf32>
    %cst_171 = arith.constant 1.000000e+00 : f32
    %812 = vector.broadcast %cst_171 : f32 to vector<2x32xf32>
    %813 = arith.addf %812, %811 : vector<2x32xf32>
    %814 = arith.divf %812, %813 : vector<2x32xf32>
    %815 = vector.extract_strided_slice %802 {offsets = [0, 64], sizes = [2, 32], strides = [1, 1]} : vector<2x128xf32> to vector<2x32xf32>
    %816 = math.tanh %815 : vector<2x32xf32>
    %817 = vector.extract_strided_slice %802 {offsets = [0, 96], sizes = [2, 32], strides = [1, 1]} : vector<2x128xf32> to vector<2x32xf32>
    %818 = arith.negf %817 : vector<2x32xf32>
    %819 = math.exp %818 : vector<2x32xf32>
    %cst_172 = arith.constant 1.000000e+00 : f32
    %820 = vector.broadcast %cst_172 : f32 to vector<2x32xf32>
    %821 = arith.addf %820, %819 : vector<2x32xf32>
    %822 = arith.divf %820, %821 : vector<2x32xf32>
    %823 = arith.mulf %814, %699 : vector<2x32xf32>
    %824 = arith.mulf %808, %816 : vector<2x32xf32>
    %825 = arith.addf %823, %824 : vector<2x32xf32>
    %826 = math.tanh %825 : vector<2x32xf32>
    %827 = arith.mulf %822, %826 : vector<2x32xf32>
    %cst_173 = arith.constant dense<0.000000e+00> : vector<2x128xf32>
    %828 = tpu.matmul %729, %7, %cst_173 {dimension_numbers = #tpu.dot_dimension_numbers<[1], [0], [0], [1], [0, 0, 1, 1], [], []>} : vector<2x32xf32>, vector<32x128xf32>, vector<2x128xf32> -> vector<2x128xf32>
    %829 = arith.addf %799, %828 : vector<2x128xf32>
    %830 = arith.addf %829, %25 : vector<2x128xf32>
    %831 = vector.extract_strided_slice %830 {offsets = [0, 0], sizes = [2, 32], strides = [1, 1]} : vector<2x128xf32> to vector<2x32xf32>
    %832 = arith.negf %831 : vector<2x32xf32>
    %833 = math.exp %832 : vector<2x32xf32>
    %cst_174 = arith.constant 1.000000e+00 : f32
    %834 = vector.broadcast %cst_174 : f32 to vector<2x32xf32>
    %835 = arith.addf %834, %833 : vector<2x32xf32>
    %836 = arith.divf %834, %835 : vector<2x32xf32>
    %837 = vector.extract_strided_slice %830 {offsets = [0, 32], sizes = [2, 32], strides = [1, 1]} : vector<2x128xf32> to vector<2x32xf32>
    %838 = arith.negf %837 : vector<2x32xf32>
    %839 = math.exp %838 : vector<2x32xf32>
    %cst_175 = arith.constant 1.000000e+00 : f32
    %840 = vector.broadcast %cst_175 : f32 to vector<2x32xf32>
    %841 = arith.addf %840, %839 : vector<2x32xf32>
    %842 = arith.divf %840, %841 : vector<2x32xf32>
    %843 = vector.extract_strided_slice %830 {offsets = [0, 64], sizes = [2, 32], strides = [1, 1]} : vector<2x128xf32> to vector<2x32xf32>
    %844 = math.tanh %843 : vector<2x32xf32>
    %845 = vector.extract_strided_slice %830 {offsets = [0, 96], sizes = [2, 32], strides = [1, 1]} : vector<2x128xf32> to vector<2x32xf32>
    %846 = arith.negf %845 : vector<2x32xf32>
    %847 = math.exp %846 : vector<2x32xf32>
    %cst_176 = arith.constant 1.000000e+00 : f32
    %848 = vector.broadcast %cst_176 : f32 to vector<2x32xf32>
    %849 = arith.addf %848, %847 : vector<2x32xf32>
    %850 = arith.divf %848, %849 : vector<2x32xf32>
    %851 = arith.mulf %842, %727 : vector<2x32xf32>
    %852 = arith.mulf %836, %844 : vector<2x32xf32>
    %853 = arith.addf %851, %852 : vector<2x32xf32>
    %854 = math.tanh %853 : vector<2x32xf32>
    %855 = arith.mulf %850, %854 : vector<2x32xf32>
    %cst_177 = arith.constant dense<0.000000e+00> : vector<2x128xf32>
    %856 = tpu.matmul %827, %11, %cst_177 {dimension_numbers = #tpu.dot_dimension_numbers<[1], [0], [0], [1], [0, 0, 1, 1], [], []>} : vector<2x32xf32>, vector<32x128xf32>, vector<2x128xf32> -> vector<2x128xf32>
    %cst_178 = arith.constant dense<0.000000e+00> : vector<2x128xf32>
    %857 = tpu.matmul %855, %13, %cst_178 {dimension_numbers = #tpu.dot_dimension_numbers<[1], [0], [0], [1], [0, 0, 1, 1], [], []>} : vector<2x32xf32>, vector<32x128xf32>, vector<2x128xf32> -> vector<2x128xf32>
    %cst_179 = arith.constant dense<0.000000e+00> : vector<2x128xf32>
    %858 = tpu.matmul %759, %5, %cst_179 {dimension_numbers = #tpu.dot_dimension_numbers<[1], [0], [0], [1], [0, 0, 1, 1], [], []>} : vector<2x32xf32>, vector<32x128xf32>, vector<2x128xf32> -> vector<2x128xf32>
    %859 = arith.addf %856, %858 : vector<2x128xf32>
    %860 = arith.addf %859, %21 : vector<2x128xf32>
    %861 = vector.extract_strided_slice %860 {offsets = [0, 0], sizes = [2, 32], strides = [1, 1]} : vector<2x128xf32> to vector<2x32xf32>
    %862 = arith.negf %861 : vector<2x32xf32>
    %863 = math.exp %862 : vector<2x32xf32>
    %cst_180 = arith.constant 1.000000e+00 : f32
    %864 = vector.broadcast %cst_180 : f32 to vector<2x32xf32>
    %865 = arith.addf %864, %863 : vector<2x32xf32>
    %866 = arith.divf %864, %865 : vector<2x32xf32>
    %867 = vector.extract_strided_slice %860 {offsets = [0, 32], sizes = [2, 32], strides = [1, 1]} : vector<2x128xf32> to vector<2x32xf32>
    %868 = arith.negf %867 : vector<2x32xf32>
    %869 = math.exp %868 : vector<2x32xf32>
    %cst_181 = arith.constant 1.000000e+00 : f32
    %870 = vector.broadcast %cst_181 : f32 to vector<2x32xf32>
    %871 = arith.addf %870, %869 : vector<2x32xf32>
    %872 = arith.divf %870, %871 : vector<2x32xf32>
    %873 = vector.extract_strided_slice %860 {offsets = [0, 64], sizes = [2, 32], strides = [1, 1]} : vector<2x128xf32> to vector<2x32xf32>
    %874 = math.tanh %873 : vector<2x32xf32>
    %875 = vector.extract_strided_slice %860 {offsets = [0, 96], sizes = [2, 32], strides = [1, 1]} : vector<2x128xf32> to vector<2x32xf32>
    %876 = arith.negf %875 : vector<2x32xf32>
    %877 = math.exp %876 : vector<2x32xf32>
    %cst_182 = arith.constant 1.000000e+00 : f32
    %878 = vector.broadcast %cst_182 : f32 to vector<2x32xf32>
    %879 = arith.addf %878, %877 : vector<2x32xf32>
    %880 = arith.divf %878, %879 : vector<2x32xf32>
    %881 = arith.mulf %872, %757 : vector<2x32xf32>
    %882 = arith.mulf %866, %874 : vector<2x32xf32>
    %883 = arith.addf %881, %882 : vector<2x32xf32>
    %884 = math.tanh %883 : vector<2x32xf32>
    %885 = arith.mulf %880, %884 : vector<2x32xf32>
    %cst_183 = arith.constant dense<0.000000e+00> : vector<2x128xf32>
    %886 = tpu.matmul %787, %9, %cst_183 {dimension_numbers = #tpu.dot_dimension_numbers<[1], [0], [0], [1], [0, 0, 1, 1], [], []>} : vector<2x32xf32>, vector<32x128xf32>, vector<2x128xf32> -> vector<2x128xf32>
    %887 = arith.addf %857, %886 : vector<2x128xf32>
    %888 = arith.addf %887, %29 : vector<2x128xf32>
    %889 = vector.extract_strided_slice %888 {offsets = [0, 0], sizes = [2, 32], strides = [1, 1]} : vector<2x128xf32> to vector<2x32xf32>
    %890 = arith.negf %889 : vector<2x32xf32>
    %891 = math.exp %890 : vector<2x32xf32>
    %cst_184 = arith.constant 1.000000e+00 : f32
    %892 = vector.broadcast %cst_184 : f32 to vector<2x32xf32>
    %893 = arith.addf %892, %891 : vector<2x32xf32>
    %894 = arith.divf %892, %893 : vector<2x32xf32>
    %895 = vector.extract_strided_slice %888 {offsets = [0, 32], sizes = [2, 32], strides = [1, 1]} : vector<2x128xf32> to vector<2x32xf32>
    %896 = arith.negf %895 : vector<2x32xf32>
    %897 = math.exp %896 : vector<2x32xf32>
    %cst_185 = arith.constant 1.000000e+00 : f32
    %898 = vector.broadcast %cst_185 : f32 to vector<2x32xf32>
    %899 = arith.addf %898, %897 : vector<2x32xf32>
    %900 = arith.divf %898, %899 : vector<2x32xf32>
    %901 = vector.extract_strided_slice %888 {offsets = [0, 64], sizes = [2, 32], strides = [1, 1]} : vector<2x128xf32> to vector<2x32xf32>
    %902 = math.tanh %901 : vector<2x32xf32>
    %903 = vector.extract_strided_slice %888 {offsets = [0, 96], sizes = [2, 32], strides = [1, 1]} : vector<2x128xf32> to vector<2x32xf32>
    %904 = arith.negf %903 : vector<2x32xf32>
    %905 = math.exp %904 : vector<2x32xf32>
    %cst_186 = arith.constant 1.000000e+00 : f32
    %906 = vector.broadcast %cst_186 : f32 to vector<2x32xf32>
    %907 = arith.addf %906, %905 : vector<2x32xf32>
    %908 = arith.divf %906, %907 : vector<2x32xf32>
    %909 = arith.mulf %900, %785 : vector<2x32xf32>
    %910 = arith.mulf %894, %902 : vector<2x32xf32>
    %911 = arith.addf %909, %910 : vector<2x32xf32>
    %912 = math.tanh %911 : vector<2x32xf32>
    %913 = arith.mulf %908, %912 : vector<2x32xf32>
    %c7_i32 = arith.constant 7 : i32
    %914 = arith.index_cast %c7_i32 : i32 to index
    %c0_187 = arith.constant 0 : index
    %c0_188 = arith.constant 0 : index
    %915 = vector.load %arg0[%914, %c0_187, %c0_188] : memref<8x2x1xf32, #tpu.memory_space<vmem>>, vector<1x2x1xf32>
    %916 = vector.shape_cast %915 : vector<1x2x1xf32> to vector<2x1xf32>
    %917 = arith.index_cast %c7_i32 : i32 to index
    %c0_189 = arith.constant 0 : index
    %c0_190 = arith.constant 0 : index
    %918 = vector.load %arg1[%917, %c0_189, %c0_190] : memref<8x2x1xf32, #tpu.memory_space<vmem>>, vector<1x2x1xf32>
    %919 = vector.shape_cast %918 : vector<1x2x1xf32> to vector<2x1xf32>
    %920 = vector.broadcast %916 : vector<2x1xf32> to vector<2x128xf32>
    %921 = vector.broadcast %0 : vector<1x128xf32> to vector<2x128xf32>
    %922 = arith.mulf %920, %921 : vector<2x128xf32>
    %923 = vector.broadcast %919 : vector<2x1xf32> to vector<2x128xf32>
    %924 = vector.broadcast %1 : vector<1x128xf32> to vector<2x128xf32>
    %925 = arith.mulf %923, %924 : vector<2x128xf32>
    %cst_191 = arith.constant dense<0.000000e+00> : vector<2x128xf32>
    %926 = tpu.matmul %827, %3, %cst_191 {dimension_numbers = #tpu.dot_dimension_numbers<[1], [0], [0], [1], [0, 0, 1, 1], [], []>} : vector<2x32xf32>, vector<32x128xf32>, vector<2x128xf32> -> vector<2x128xf32>
    %927 = arith.addf %922, %926 : vector<2x128xf32>
    %928 = arith.addf %927, %17 : vector<2x128xf32>
    %929 = vector.extract_strided_slice %928 {offsets = [0, 0], sizes = [2, 32], strides = [1, 1]} : vector<2x128xf32> to vector<2x32xf32>
    %930 = arith.negf %929 : vector<2x32xf32>
    %931 = math.exp %930 : vector<2x32xf32>
    %cst_192 = arith.constant 1.000000e+00 : f32
    %932 = vector.broadcast %cst_192 : f32 to vector<2x32xf32>
    %933 = arith.addf %932, %931 : vector<2x32xf32>
    %934 = arith.divf %932, %933 : vector<2x32xf32>
    %935 = vector.extract_strided_slice %928 {offsets = [0, 32], sizes = [2, 32], strides = [1, 1]} : vector<2x128xf32> to vector<2x32xf32>
    %936 = arith.negf %935 : vector<2x32xf32>
    %937 = math.exp %936 : vector<2x32xf32>
    %cst_193 = arith.constant 1.000000e+00 : f32
    %938 = vector.broadcast %cst_193 : f32 to vector<2x32xf32>
    %939 = arith.addf %938, %937 : vector<2x32xf32>
    %940 = arith.divf %938, %939 : vector<2x32xf32>
    %941 = vector.extract_strided_slice %928 {offsets = [0, 64], sizes = [2, 32], strides = [1, 1]} : vector<2x128xf32> to vector<2x32xf32>
    %942 = math.tanh %941 : vector<2x32xf32>
    %943 = vector.extract_strided_slice %928 {offsets = [0, 96], sizes = [2, 32], strides = [1, 1]} : vector<2x128xf32> to vector<2x32xf32>
    %944 = arith.negf %943 : vector<2x32xf32>
    %945 = math.exp %944 : vector<2x32xf32>
    %cst_194 = arith.constant 1.000000e+00 : f32
    %946 = vector.broadcast %cst_194 : f32 to vector<2x32xf32>
    %947 = arith.addf %946, %945 : vector<2x32xf32>
    %948 = arith.divf %946, %947 : vector<2x32xf32>
    %949 = arith.mulf %940, %825 : vector<2x32xf32>
    %950 = arith.mulf %934, %942 : vector<2x32xf32>
    %951 = arith.addf %949, %950 : vector<2x32xf32>
    %952 = math.tanh %951 : vector<2x32xf32>
    %953 = arith.mulf %948, %952 : vector<2x32xf32>
    %cst_195 = arith.constant dense<0.000000e+00> : vector<2x128xf32>
    %954 = tpu.matmul %855, %7, %cst_195 {dimension_numbers = #tpu.dot_dimension_numbers<[1], [0], [0], [1], [0, 0, 1, 1], [], []>} : vector<2x32xf32>, vector<32x128xf32>, vector<2x128xf32> -> vector<2x128xf32>
    %955 = arith.addf %925, %954 : vector<2x128xf32>
    %956 = arith.addf %955, %25 : vector<2x128xf32>
    %957 = vector.extract_strided_slice %956 {offsets = [0, 0], sizes = [2, 32], strides = [1, 1]} : vector<2x128xf32> to vector<2x32xf32>
    %958 = arith.negf %957 : vector<2x32xf32>
    %959 = math.exp %958 : vector<2x32xf32>
    %cst_196 = arith.constant 1.000000e+00 : f32
    %960 = vector.broadcast %cst_196 : f32 to vector<2x32xf32>
    %961 = arith.addf %960, %959 : vector<2x32xf32>
    %962 = arith.divf %960, %961 : vector<2x32xf32>
    %963 = vector.extract_strided_slice %956 {offsets = [0, 32], sizes = [2, 32], strides = [1, 1]} : vector<2x128xf32> to vector<2x32xf32>
    %964 = arith.negf %963 : vector<2x32xf32>
    %965 = math.exp %964 : vector<2x32xf32>
    %cst_197 = arith.constant 1.000000e+00 : f32
    %966 = vector.broadcast %cst_197 : f32 to vector<2x32xf32>
    %967 = arith.addf %966, %965 : vector<2x32xf32>
    %968 = arith.divf %966, %967 : vector<2x32xf32>
    %969 = vector.extract_strided_slice %956 {offsets = [0, 64], sizes = [2, 32], strides = [1, 1]} : vector<2x128xf32> to vector<2x32xf32>
    %970 = math.tanh %969 : vector<2x32xf32>
    %971 = vector.extract_strided_slice %956 {offsets = [0, 96], sizes = [2, 32], strides = [1, 1]} : vector<2x128xf32> to vector<2x32xf32>
    %972 = arith.negf %971 : vector<2x32xf32>
    %973 = math.exp %972 : vector<2x32xf32>
    %cst_198 = arith.constant 1.000000e+00 : f32
    %974 = vector.broadcast %cst_198 : f32 to vector<2x32xf32>
    %975 = arith.addf %974, %973 : vector<2x32xf32>
    %976 = arith.divf %974, %975 : vector<2x32xf32>
    %977 = arith.mulf %968, %853 : vector<2x32xf32>
    %978 = arith.mulf %962, %970 : vector<2x32xf32>
    %979 = arith.addf %977, %978 : vector<2x32xf32>
    %980 = math.tanh %979 : vector<2x32xf32>
    %981 = arith.mulf %976, %980 : vector<2x32xf32>
    %cst_199 = arith.constant dense<0.000000e+00> : vector<2x128xf32>
    %982 = tpu.matmul %953, %11, %cst_199 {dimension_numbers = #tpu.dot_dimension_numbers<[1], [0], [0], [1], [0, 0, 1, 1], [], []>} : vector<2x32xf32>, vector<32x128xf32>, vector<2x128xf32> -> vector<2x128xf32>
    %cst_200 = arith.constant dense<0.000000e+00> : vector<2x128xf32>
    %983 = tpu.matmul %981, %13, %cst_200 {dimension_numbers = #tpu.dot_dimension_numbers<[1], [0], [0], [1], [0, 0, 1, 1], [], []>} : vector<2x32xf32>, vector<32x128xf32>, vector<2x128xf32> -> vector<2x128xf32>
    %cst_201 = arith.constant dense<0.000000e+00> : vector<2x128xf32>
    %984 = tpu.matmul %885, %5, %cst_201 {dimension_numbers = #tpu.dot_dimension_numbers<[1], [0], [0], [1], [0, 0, 1, 1], [], []>} : vector<2x32xf32>, vector<32x128xf32>, vector<2x128xf32> -> vector<2x128xf32>
    %985 = arith.addf %982, %984 : vector<2x128xf32>
    %986 = arith.addf %985, %21 : vector<2x128xf32>
    %987 = vector.extract_strided_slice %986 {offsets = [0, 0], sizes = [2, 32], strides = [1, 1]} : vector<2x128xf32> to vector<2x32xf32>
    %988 = arith.negf %987 : vector<2x32xf32>
    %989 = math.exp %988 : vector<2x32xf32>
    %cst_202 = arith.constant 1.000000e+00 : f32
    %990 = vector.broadcast %cst_202 : f32 to vector<2x32xf32>
    %991 = arith.addf %990, %989 : vector<2x32xf32>
    %992 = arith.divf %990, %991 : vector<2x32xf32>
    %993 = vector.extract_strided_slice %986 {offsets = [0, 32], sizes = [2, 32], strides = [1, 1]} : vector<2x128xf32> to vector<2x32xf32>
    %994 = arith.negf %993 : vector<2x32xf32>
    %995 = math.exp %994 : vector<2x32xf32>
    %cst_203 = arith.constant 1.000000e+00 : f32
    %996 = vector.broadcast %cst_203 : f32 to vector<2x32xf32>
    %997 = arith.addf %996, %995 : vector<2x32xf32>
    %998 = arith.divf %996, %997 : vector<2x32xf32>
    %999 = vector.extract_strided_slice %986 {offsets = [0, 64], sizes = [2, 32], strides = [1, 1]} : vector<2x128xf32> to vector<2x32xf32>
    %1000 = math.tanh %999 : vector<2x32xf32>
    %1001 = vector.extract_strided_slice %986 {offsets = [0, 96], sizes = [2, 32], strides = [1, 1]} : vector<2x128xf32> to vector<2x32xf32>
    %1002 = arith.negf %1001 : vector<2x32xf32>
    %1003 = math.exp %1002 : vector<2x32xf32>
    %cst_204 = arith.constant 1.000000e+00 : f32
    %1004 = vector.broadcast %cst_204 : f32 to vector<2x32xf32>
    %1005 = arith.addf %1004, %1003 : vector<2x32xf32>
    %1006 = arith.divf %1004, %1005 : vector<2x32xf32>
    %1007 = arith.mulf %998, %883 : vector<2x32xf32>
    %1008 = arith.mulf %992, %1000 : vector<2x32xf32>
    %1009 = arith.addf %1007, %1008 : vector<2x32xf32>
    %1010 = math.tanh %1009 : vector<2x32xf32>
    %1011 = arith.mulf %1006, %1010 : vector<2x32xf32>
    %cst_205 = arith.constant dense<0.000000e+00> : vector<2x128xf32>
    %1012 = tpu.matmul %913, %9, %cst_205 {dimension_numbers = #tpu.dot_dimension_numbers<[1], [0], [0], [1], [0, 0, 1, 1], [], []>} : vector<2x32xf32>, vector<32x128xf32>, vector<2x128xf32> -> vector<2x128xf32>
    %1013 = arith.addf %983, %1012 : vector<2x128xf32>
    %1014 = arith.addf %1013, %29 : vector<2x128xf32>
    %1015 = vector.extract_strided_slice %1014 {offsets = [0, 0], sizes = [2, 32], strides = [1, 1]} : vector<2x128xf32> to vector<2x32xf32>
    %1016 = arith.negf %1015 : vector<2x32xf32>
    %1017 = math.exp %1016 : vector<2x32xf32>
    %cst_206 = arith.constant 1.000000e+00 : f32
    %1018 = vector.broadcast %cst_206 : f32 to vector<2x32xf32>
    %1019 = arith.addf %1018, %1017 : vector<2x32xf32>
    %1020 = arith.divf %1018, %1019 : vector<2x32xf32>
    %1021 = vector.extract_strided_slice %1014 {offsets = [0, 32], sizes = [2, 32], strides = [1, 1]} : vector<2x128xf32> to vector<2x32xf32>
    %1022 = arith.negf %1021 : vector<2x32xf32>
    %1023 = math.exp %1022 : vector<2x32xf32>
    %cst_207 = arith.constant 1.000000e+00 : f32
    %1024 = vector.broadcast %cst_207 : f32 to vector<2x32xf32>
    %1025 = arith.addf %1024, %1023 : vector<2x32xf32>
    %1026 = arith.divf %1024, %1025 : vector<2x32xf32>
    %1027 = vector.extract_strided_slice %1014 {offsets = [0, 64], sizes = [2, 32], strides = [1, 1]} : vector<2x128xf32> to vector<2x32xf32>
    %1028 = math.tanh %1027 : vector<2x32xf32>
    %1029 = vector.extract_strided_slice %1014 {offsets = [0, 96], sizes = [2, 32], strides = [1, 1]} : vector<2x128xf32> to vector<2x32xf32>
    %1030 = arith.negf %1029 : vector<2x32xf32>
    %1031 = math.exp %1030 : vector<2x32xf32>
    %cst_208 = arith.constant 1.000000e+00 : f32
    %1032 = vector.broadcast %cst_208 : f32 to vector<2x32xf32>
    %1033 = arith.addf %1032, %1031 : vector<2x32xf32>
    %1034 = arith.divf %1032, %1033 : vector<2x32xf32>
    %1035 = arith.mulf %1026, %911 : vector<2x32xf32>
    %1036 = arith.mulf %1020, %1028 : vector<2x32xf32>
    %1037 = arith.addf %1035, %1036 : vector<2x32xf32>
    %1038 = math.tanh %1037 : vector<2x32xf32>
    %1039 = arith.mulf %1034, %1038 : vector<2x32xf32>
    %c8_i32 = arith.constant 8 : i32
    %c0_209 = arith.constant 0 : index
    %c0_210 = arith.constant 0 : index
    %1040 = vector.load %arg10[%c0_209, %c0_210] : memref<64x128xf32, #tpu.memory_space<vmem>>, vector<32x128xf32>
    %cst_211 = arith.constant dense<0.000000e+00> : vector<2x128xf32>
    %1041 = tpu.matmul %1011, %1040, %cst_211 {dimension_numbers = #tpu.dot_dimension_numbers<[1], [0], [0], [1], [0, 0, 1, 1], [], []>} : vector<2x32xf32>, vector<32x128xf32>, vector<2x128xf32> -> vector<2x128xf32>
    %c32 = arith.constant 32 : index
    %c0_212 = arith.constant 0 : index
    %1042 = vector.load %arg10[%c32, %c0_212] : memref<64x128xf32, #tpu.memory_space<vmem>>, vector<32x128xf32>
    %cst_213 = arith.constant dense<0.000000e+00> : vector<2x128xf32>
    %1043 = tpu.matmul %1039, %1042, %cst_213 {dimension_numbers = #tpu.dot_dimension_numbers<[1], [0], [0], [1], [0, 0, 1, 1], [], []>} : vector<2x32xf32>, vector<32x128xf32>, vector<2x128xf32> -> vector<2x128xf32>
    %1044 = arith.addf %1041, %1043 : vector<2x128xf32>
    %c0_214 = arith.constant 0 : index
    %c0_215 = arith.constant 0 : index
    %1045 = vector.load %arg11[%c0_214, %c0_215] : memref<1x128xf32, #tpu.memory_space<vmem>>, vector<1x128xf32>
    %1046 = vector.broadcast %1045 : vector<1x128xf32> to vector<2x128xf32>
    %1047 = arith.addf %1044, %1046 : vector<2x128xf32>
    %c0_216 = arith.constant 0 : index
    %c0_217 = arith.constant 0 : index
    %1048 = vector.load %arg12[%c0_216, %c0_217] : memref<2x128xf32, #tpu.memory_space<vmem>>, vector<2x128xf32>
    tpu.vector_store %arg12[%c0_216, %c0_217], %1047 {strides = array<i32>} : memref<2x128xf32, #tpu.memory_space<vmem>>, vector<2x128xf32>,
    return
  }
}

</mosaic_0001>

<bundles_post_ra>
// kernel: tpu_custom_call.1
= control target key start
LH: loop header
LB: loop body
LE: loop exit
PB: predicated region body
PF: predicated region fallthrough
CT: control target
= control target key end

     0   :  { %17 = vsyncpa [#allocation3], 0  ;;  %s7378_s0 = inlined_call_operand.vmem [shape: f32[8,2,1], index: 0, kind: input, shape index: {}]   ;;  %s7379_s1 = inlined_call_operand.vmem [shape: f32[8,2,1], index: 1, kind: input, shape index: {}]   ;;  %s7380_s2 = inlined_call_operand.vmem [shape: f32[1,128], index: 2, kind: input, shape index: {}]   ;;  %s7381_s3 = inlined_call_operand.vmem [shape: f32[1,32,128], index: 3, kind: input, shape index: {}]   ;;  %s7382_s4 = inlined_call_operand.hbm [shape: f32[2,32,128], index: 4, kind: input, shape index: {}]   ;;  %s7383_s5 = inlined_call_operand.vmem [shape: f32[2,1,128], index: 5, kind: input, shape index: {}]   ;;  %s7384_s6 = inlined_call_operand.vmem [shape: f32[1,128], index: 6, kind: input, shape index: {}]   ;;  %s7385_s7 = inlined_call_operand.hbm [shape: f32[1,32,128], index: 7, kind: input, shape index: {}]   ;;  %s7386_s8 = inlined_call_operand.hbm [shape: f32[2,32,128], index: 8, kind: input, shape index: {}]   ;;  %s7387_s9 = inlined_call_operand.vmem [shape: f32[2,1,128], index: 9, kind: input, shape index: {}]   ;;  %s7388_s10 = inlined_call_operand.hbm [shape: f32[64,128], index: 10, kind: input, shape index: {}]   ;;  %s7389_s11 = inlined_call_operand.vmem [shape: f32[1,128], index: 11, kind: input, shape index: {}]   ;;  %s7390_s12 = inlined_call_operand.hbm [shape: f32[2,128], index: 12, kind: output, shape index: {}]  }
   0x1   :  { %18 = vsyncpa [#allocation6], 0 }
   0x2   :  { %19 = vsyncpa [#allocation9], 0 }
   0x3   :  { %20 = vsyncpa [#allocation4], 0  ;;  %s6146_s21 = smov [#allocation5]   ;;  %s6147_s23 = smov [#allocation2]  }
   0x4   :  { %s50_s22 = sshll.u32 %s6146_s21, 4  ;;  %s34_s24 = sshll.u32 %s6147_s23, 4  ;;  %s51_s22 = int_to_ptr.vmem [resolvable:$true] %s50_s22  ;;  %s35_s24 = int_to_ptr.vmem [resolvable:$true] %s34_s24 }
   0x5   :  { %s6046_s25 = scalar_lea.vmem %s51_s22, 512  ;;  %p6051_p1 = scmp.lt.s32.totalorder %s51_s22, %s51_s22 }
   0x6   :  { %p6047_p0 = scmp.ne.s32.totalorder %s51_s22, %s6046_s25  ;;  %p6052_p2 = scmp.lt.s32.totalorder %s6046_s25, %s6046_s25 }
   0x8   :  { %p6053_p3 = por %p6052_p2, %p6051_p1 }
   0xa   :  { %p6054_p4 = pnand %p6053_p3, %p6047_p0 }
   0xc   :  { %6057 = shalt.err (!%p6054_p4)
}
   0xd   :  { %s6148_s26 = smov 128   ;;  %s6149_s27 = smov 8  }
   0xe   :  { %56 = dma.hbm_to_vmem [thread:$0]  %s7385_s7, 512, %s51_s22, [#allocation6], %s6148_s26, %s6148_s26, %s6149_s27  }
   0xf   :  { %s6066_s30 = scalar_lea.vmem %s35_s24, 1024  ;;  %p6071_p6 = scmp.lt.s32.totalorder %s35_s24, %s35_s24 }
  0x10   :  { %p6067_p5 = scmp.ne.s32.totalorder %s35_s24, %s6066_s30  ;;  %p6072_p7 = scmp.lt.s32.totalorder %s6066_s30, %s6066_s30 }
  0x12   :  { %p6073_p8 = por %p6072_p7, %p6071_p6 }
  0x14   :  { %p6074_p9 = pnand %p6073_p8, %p6067_p5 }
  0x16   :  { %6077 = shalt.err (!%p6074_p9)
}
  0x17   :  { %40 = dma.hbm_to_vmem [thread:$0]  %s7382_s4, 1024, %s35_s24, [#allocation3], %s6148_s26, %s6148_s26, %s6149_s27  }
  0x18   :  { %s6150_s15 = smov [#allocation7]   ;;  %s6151_s17 = smov [#allocation8]  }
  0x19   :  { %s62_s16 = sshll.u32 %s6150_s15, 4  ;;  %s76_s18 = sshll.u32 %s6151_s17, 4  ;;  %s63_s16 = int_to_ptr.vmem [resolvable:$true] %s62_s16  ;;  %s77_s18 = int_to_ptr.vmem [resolvable:$true] %s76_s18 }
  0x1a   :  { %s6086_s7 = scalar_lea.vmem %s63_s16, 1024  ;;  %p6091_p11 = scmp.lt.s32.totalorder %s63_s16, %s63_s16 }
  0x1b   :  { %p6087_p10 = scmp.ne.s32.totalorder %s63_s16, %s6086_s7  ;;  %p6092_p12 = scmp.lt.s32.totalorder %s6086_s7, %s6086_s7 }
  0x1d   :  { %p6093_p13 = por %p6092_p12, %p6091_p11 }
  0x1f   :  { %p6094_p0 = pnand %p6093_p13, %p6087_p10 }
  0x21   :  { %6097 = shalt.err (!%p6094_p0)
}
  0x22   :  { %68 = dma.hbm_to_vmem [thread:$0]  %s7386_s8, 1024, %s63_s16, [#allocation6], %s6148_s26, %s6148_s26, %s6149_s27  }
  0x23   :  { %s6106_s4 = scalar_lea.vmem %s77_s18, 1024  ;;  %p6111_p2 = scmp.lt.s32.totalorder %s77_s18, %s77_s18 }
  0x24   :  { %p6107_p1 = scmp.ne.s32.totalorder %s77_s18, %s6106_s4  ;;  %p6112_p3 = scmp.lt.s32.totalorder %s6106_s4, %s6106_s4 }
  0x26   :  { %p6113_p4 = por %p6112_p3, %p6111_p2 }
  0x28   :  { %p6114_p5 = pnand %p6113_p4, %p6107_p1 }
  0x2a   :  { %6117 = shalt.err (!%p6114_p5)
}
  0x2b   :  { %82 = dma.hbm_to_vmem [thread:$0]  %s7388_s10, 1024, %s77_s18, [#allocation9], %s6148_s26, %s6148_s26, %s6149_s27  }
  0x2c   :  { %6138 = dma.done.wait [#allocation3], 1024  }
  0x2d   :  { %6139 = vsyncadd [#allocation3], 4294966272 }
  0x2e   :  { %6140 = dma.done.wait [#allocation6], 1536  }
  0x2f   :  { %6141 = vsyncadd [#allocation6], 4294965760 }
  0x30   :  { %6142 = dma.done.wait [#allocation9], 1024  }
  0x31   :  { %6143 = vsyncadd [#allocation9], 4294966272  ;;  %v6152_v0 = vmov 0.0   ;;  %vm6153_vm0 = vmmov 0   ;;  %v6154_v1 = vmov 0   ;;  %v6253_v2 = vld [vmem:[#allocation2 + $0x18] sm:$0xff] }
  0x32   :  { %5158 = vmatprep.subr.mxu0 %v6152_v0  ;;  %5169 = vmatprep.subr.mxu1 %v6152_v0  ;;  %v6255_v3 = vld [vmem:[#allocation7 + $0x18] sm:$0xff]  ;;  %v6257_v4 = vld [vmem:[#allocation2 + $0x10] sm:$0xff]  ;;  %v6265_v6 = vld [vmem:[#allocation2 + $0x8] sm:$0xff]  ;;  %s6155_s15 = smov 64   ;;  %s6156_s16 = smov 32   ;;  %vm181_vm1 = vcmask 261120  }
  0x33   :  { %5166 = vmatprep.mubr.msk.f32.mxu0 %vm6153_vm0, %v6152_v0  ;;  %5177 = vmatprep.mubr.msk.f32.mxu1 %vm6153_vm0, %v6152_v0  ;;  %v6261_v5 = vld [vmem:[#allocation7 + $0x10] sm:$0xff]  ;;  %v6267_v7 = vld [vmem:[#allocation7 + $0x8] sm:$0xff]  ;;  %v6273_v8 = vld [vmem:[#allocation2] sm:$0xff] }
  0x34   :  { %5720 = vset.pattern.permute.xlu0 %v6154_v1  ;;  %5721 = vset.pattern.permute.xlu1 %v6154_v1  ;;  %v6275_v9 = vld [vmem:[#allocation7] sm:$0xff]  ;;  %v6339_v48 = vld [vmem:[#allocation2 + $0x38] sm:$0xff]  ;;  %v6341_v49 = vld [vmem:[#allocation2 + $0x30] sm:$0xff] }
  0x35   :  { %5159 = vmatpush3.msra.mxu0 %v6253_v2  ;;  %5170 = vmatpush3.msra.mxu1 %v6255_v3  ;;  %v155_v10 = vld [vmem:[%s7378_s0] sm:$0x3]  ;;  %v6345_v50 = vld [vmem:[#allocation2 + $0x28] sm:$0xff]  ;;  %v6351_v51 = vld [vmem:[%s7381_s3 + $0x18] sm:$0xff] }
  0x36   :  { %5160 = vmatprep.subr.mxu0 %v6152_v0  ;;  %5171 = vmatprep.subr.mxu1 %v6152_v0  ;;  %v156_v11 = vld [vmem:[%s7379_s1] sm:$0x3]  ;;  %v6356_v52 = vld [vmem:[%s7381_s3 + $0x10] sm:$0xff]  ;;  %v6365_v55 = vld [vmem:[#allocation7 + $0x38] sm:$0xff] }
  0x37   :  { %5161 = vmatpush3.msra.mxu0 %v6257_v4  ;;  %5172 = vmatpush3.msra.mxu1 %v6261_v5  ;;  %v6300_v13 = vld [vmem:[%s7380_s2] ss:$0 sm:$0xff]  ;;  %v6372_v56 = vld [vmem:[#allocation7 + $0x30] sm:$0xff]  ;;  %v6380_v57 = vld [vmem:[%s7381_s3 + $0x8] sm:$0xff] }
  0x38   :  { %5162 = vmatprep.subr.mxu0 %v6152_v0  ;;  %5173 = vmatprep.subr.mxu1 %v6152_v0  ;;  %v6305_v15 = vld [vmem:[%s7384_s6] ss:$0 sm:$0xff]  ;;  %v6383_v59 = vld [vmem:[#allocation7 + $0x28] sm:$0xff] }
  0x39   :  { %5163 = vmatpush3.msra.mxu0 %v6265_v6  ;;  %5174 = vmatpush3.msra.mxu1 %v6267_v7  ;;  %v6312_v18 = vld [vmem:[%s7383_s5] ss:$0 sm:$0xff] }
  0x3a   :  { %5164 = vmatprep.subr.mxu0 %v6152_v0  ;;  %5175 = vmatprep.subr.mxu1 %v6152_v0  ;;  %v6317_v23 = vld [vmem:[%s7387_s9] ss:$0 sm:$0xff] }
  0x3b   :  { %5165 = vmatpush3.msra.mxu0 %v6273_v8  ;;  %5176 = vmatpush3.msra.mxu1 %v6275_v9  ;;  %v6359_v53 = vld [vmem:[#allocation2 + $0x20] sm:$0xff] }
  0x3c   :  { %5167 = vmatmul.mubr.f32.vlgmr.msra.gmra.mxu0 %v6152_v0  ;;  %5178 = vmatmul.mubr.f32.vlgmr.msra.gmra.mxu1 %v6152_v0  ;;  %v6391_v60 = vld [vmem:[%s7381_s3] sm:$0xff] }
  0x3d   :  { %159 = vperm.xlu0 %5720, %v155_v10   ;;  %5180 = vmatprep.subr.mxu0 %v6152_v0  ;;  %v6394_v61 = vld [vmem:[#allocation7 + $0x20] sm:$0xff] }
  0x3e   :  { %5188 = vmatprep.mubr.msk.f32.mxu0 %vm6153_vm0, %v6152_v0  ;;  %5191 = vmatprep.subr.mxu1 %v6152_v0  ;;  %v4821_v10 = vld [vmem:[%s7378_s0 + $0x2] sm:$0x3] }
  0x3f   :  { %5199 = vmatprep.mubr.msk.f32.mxu1 %vm6153_vm0, %v6152_v0  ;;  %5181 = vmatpush3.msra.mxu0 %v6339_v48 }
  0x40   :  { %5182 = vmatprep.subr.mxu0 %v6152_v0  ;;  %5192 = vmatpush3.msra.mxu1 %v6351_v51 }
  0x41   :  { %171 = vperm.xlu0 %5720, %v156_v11   ;;  %5183 = vmatpush3.msra.mxu0 %v6341_v49 }
  0x42   :  { %5184 = vmatprep.subr.mxu0 %v6152_v0  ;;  %5193 = vmatprep.subr.mxu1 %v6152_v0 }
  0x43   :  { %5185 = vmatpush3.msra.mxu0 %v6345_v50  ;;  %5194 = vmatpush3.msra.mxu1 %v6356_v52 }
  0x44   :  { %5186 = vmatprep.subr.mxu0 %v6152_v0  ;;  %5195 = vmatprep.subr.mxu1 %v6152_v0 }
  0x45   :  { %5187 = vmatpush3.msra.mxu0 %v6359_v53  ;;  %5196 = vmatpush3.msra.mxu1 %v6380_v57 }
  0x46   :  { %5202 = vmatprep.subr.mxu0 %v6152_v0  ;;  %5189 = vmatmul.mubr.f32.vlgmr.msra.gmra.mxu0 %v6152_v0 }
  0x47   :  { %5203 = vmatpush3.msra.mxu0 %v6365_v55  ;;  %5210 = vmatprep.mubr.msk.f32.mxu0 %vm6153_vm0, %v6152_v0 }
  0x48   :  { %5204 = vmatprep.subr.mxu0 %v6152_v0  ;;  %5197 = vmatprep.subr.mxu1 %v6152_v0 }
  0x49   :  { %5205 = vmatpush3.msra.mxu0 %v6372_v56  ;;  %5198 = vmatpush3.msra.mxu1 %v6391_v60 }
  0x4a   :  { %5206 = vmatprep.subr.mxu0 %v6152_v0  ;;  %5213 = vmatprep.subr.mxu1 %v6152_v0 }
  0x4b   :  { %5207 = vmatpush3.msra.mxu0 %v6383_v59 }
  0x4c   :  { %5208 = vmatprep.subr.mxu0 %v6152_v0 }
  0x4d   :  { %5209 = vmatpush3.msra.mxu0 %v6394_v61 }
  0x4e   :  { %5224 = vmatprep.subr.mxu0 %v6152_v0  ;;  %5211 = vmatmul.mubr.f32.vlgmr.msra.gmra.mxu0 %v6152_v0 }
  0x4f   :  { %5225 = vmatpush3.msra.mxu0 %v6253_v2  ;;  %5232 = vmatprep.mubr.msk.f32.mxu0 %vm6153_vm0, %v6152_v0 }
  0x50   :  { %5226 = vmatprep.subr.mxu0 %v6152_v0 }
  0x51   :  { %5227 = vmatpush3.msra.mxu0 %v6257_v4 }
  0x52   :  { %5228 = vmatprep.subr.mxu0 %v6152_v0 }
  0x53   :  { %5229 = vmatpush3.msra.mxu0 %v6265_v6 }
  0x54   :  { %5230 = vmatprep.subr.mxu0 %v6152_v0 }
  0x55   :  { %5231 = vmatpush3.msra.mxu0 %v6273_v8 }
  0x56   :  { %5246 = vmatprep.subr.mxu0 %v6152_v0 }
  0xb8   :  { %v160_v12 = vpop.permute.xlu0 %159 }
  0xb9   :  { %v168_v16 = vmul.f32 %v6300_v13, %v160_v12  ;;  %v4822_v12 = vld [vmem:[%s7379_s1 + $0x2] sm:$0x3] }
  0xbc   :  { %v172_v14 = vpop.permute.xlu0 %171 }
  0xbd   :  { %v180_v17 = vmul.f32 %v6305_v15, %v172_v14 }
  0xfc   :  { %v251_v19 = vpop.f32.mrf.mxu0  ;;  %v347_v20 = vpop.f32.mrf.mxu1 }
  0xfd   :  { %v255_v21 = vadd.f32 %v251_v19, %v168_v16  ;;  %v351_v22 = vadd.f32 %v347_v20, %v180_v17  ;;  %v6427_v20 = vld [vmem:[#allocation5 + $0x18] sm:$0xff] }
  0xfe   :  { %v5168_v24 = vpop.f32.mrf.mxu0  ;;  %v5179_v25 = vpop.f32.mrf.mxu1 }
  0xff   :  { %v256_v26 = vadd.f32 %v6312_v18, %v255_v21  ;;  %v352_v27 = vadd.f32 %v6317_v23, %v351_v22  ;;  %v6431_v22 = vld [vmem:[#allocation5 + $0x10] sm:$0xff]  ;;  %v6437_v24 = vld [vmem:[#allocation5 + $0x8] sm:$0xff]  ;;  %v6443_v25 = vld [vmem:[#allocation5] sm:$0xff] }
 0x101   :  { %5722 = vtanh.f32 %v256_v26  ;;  %v4815_v30 = vmul.f32 -1.442695, %v256_v26  ;;  %v4816_v31 = vmul.f32 -1.442695, %v352_v27 }
 0x102   :  { %5724 = vtanh.f32 %v352_v27 }
 0x103   :  { %5726 = vpow2.f32 %v4815_v30 }
 0x104   :  { %5728 = vpow2.f32 %v4816_v31 }
 0x106   :  { %v443_v14 = vpop.f32.mrf.mxu0 }
 0x108   :  { %v5190_v16 = vpop.f32.mrf.mxu0 }
 0x10e   :  { %v5723_v28 = vpop.eup %5722  ;;  %v6425_v17 = vpop.f32.mrf.mxu0 }
 0x10f   :  { %266 = vrot.lane.b32.xlu1 %v5723_v28, %s6155_s15  ;;  %v5725_v29 = vpop.eup %5724 }
 0x110   :  { %v5727_v32 = vpop.eup %5726  ;;  %v5212_v19 = vpop.f32.mrf.mxu0 }
 0x111   :  { %v260_v33 = vadd.f32 1.0, %v5727_v32  ;;  %v5729_v34 = vpop.eup %5728 }
 0x112   :  { %v356_v35 = vadd.f32 1.0, %v5729_v34 }
 0x113   :  { %362 = vrot.lane.b32.xlu1 %v5725_v29, %s6155_s15  ;;  %5730 = vrcp.f32 %v260_v33  ;;  %v6483_v29 = vld [vmem:[%s7383_s5 + $0x1] ss:$0 sm:$0xff] }
 0x114   :  { %5732 = vrcp.f32 %v356_v35 }
 0x120   :  { %v6323_v36 = vpop.eup %5730 }
 0x121   :  { %v6327_v39 = vpop.eup %5732  ;;  %v264_v42 = vmul.f32 0.0, %v6323_v36 }
 0x122   :  { %v360_v45 = vmul.f32 0.0, %v6327_v39 }
 0x181   :  { %v267_v37 = vpop.permute.xlu1 %266 }
 0x182   :  { %v269_v38 = vmul.f32 %v6323_v36, %v267_v37 }
 0x184   :  { %271 = vrot.lane.b32.xlu0 %v269_v38, %s6156_s16  ;;  %v6490_v38 = vld [vmem:[%s7387_s9 + $0x1] ss:$0 sm:$0xff] }
 0x185   :  { %v363_v40 = vpop.permute.xlu1 %362 }
 0x186   :  { %v365_v41 = vmul.f32 %v6327_v39, %v363_v40 }
 0x188   :  { %367 = vrot.lane.b32.xlu1 %v365_v41, %s6156_s16 }
 0x1f6   :  { %v272_v43 = vpop.permute.xlu0 %271 }
 0x1f7   :  { %v6332_v44 = vadd.f32 %v272_v43, %v264_v42 }
 0x1f9   :  { %5734 = vtanh.f32 %v6332_v44 }
 0x1fa   :  { %v368_v46 = vpop.permute.xlu1 %367 }
 0x1fb   :  { %v6336_v47 = vadd.f32 %v368_v46, %v360_v45 }
 0x1fd   :  { %5736 = vtanh.f32 %v6336_v47 }
 0x206   :  { %v5735_v54 = vpop.eup %5734 }
 0x207   :  { %277 = vrot.lane.b32.xlu0 %v5735_v54, %s6155_s15 }
 0x20a   :  { %v5737_v58 = vpop.eup %5736 }
 0x20b   :  { %373 = vrot.lane.b32.xlu1 %v5737_v58, %s6155_s15 }
 0x279   :  { %v278_v62 = vpop.permute.xlu0 %277 }
 0x27a   :  { %v280_v63 = vmul.f32 %v6323_v36, %v278_v62 }
 0x27c   :  { %448 = vrot.lane.b32.xlu0 %v280_v63, %s6156_s16 }
 0x27d   :  { %v374_v1 = vpop.permute.xlu1 %373 }
 0x27e   :  { %v376_v11 = vmul.f32 %v6327_v39, %v374_v1 }
 0x280   :  { %618 = vrot.lane.b32.xlu1 %v376_v11, %s6156_s16  ;;  %723 = vperm.xlu0 %5720, %v4821_v10  }
 0x284   :  { %729 = vperm.xlu1 %5721, %v4822_v12  }
 0x2ee   :  { %v449_v21 = vpop.permute.xlu0 %448 }
 0x2ef   :  { %5200 = vmatmul.mubr.msk.f32.vlgmr.msra.gmra.mxu1 %vm181_vm1, %v449_v21  ;;  %5233 = vmatmul.mubr.msk.f32.vlgmr.msra.gmra.mxu0 %vm181_vm1, %v449_v21 }
 0x2f0   :  { %5214 = vmatpush3.msra.mxu1 %v6427_v20  ;;  %5221 = vmatprep.mubr.msk.f32.mxu1 %vm6153_vm0, %v6152_v0 }
 0x2f1   :  { %5215 = vmatprep.subr.mxu1 %v6152_v0  ;;  %5247 = vmatpush3.msra.mxu0 %v6339_v48 }
 0x2f2   :  { %5216 = vmatpush3.msra.mxu1 %v6431_v22  ;;  %5248 = vmatprep.subr.mxu0 %v6152_v0  ;;  %v619_v26 = vpop.permute.xlu1 %618 }
 0x2f3   :  { %5217 = vmatprep.subr.mxu1 %v6152_v0  ;;  %5249 = vmatpush3.msra.mxu0 %v6341_v49 }
 0x2f4   :  { %5218 = vmatpush3.msra.mxu1 %v6437_v24  ;;  %5250 = vmatprep.subr.mxu0 %v6152_v0 }
 0x2f5   :  { %5219 = vmatprep.subr.mxu1 %v6152_v0  ;;  %5251 = vmatpush3.msra.mxu0 %v6345_v50 }
 0x2f6   :  { %5220 = vmatpush3.msra.mxu1 %v6443_v25  ;;  %5252 = vmatprep.subr.mxu0 %v6152_v0 }
 0x2f7   :  { %5222 = vmatmul.mubr.msk.f32.vlgmr.msra.gmra.mxu1 %vm181_vm1, %v619_v26  ;;  %5235 = vmatprep.subr.mxu1 %v6152_v0 }
 0x2f8   :  { %5236 = vmatpush3.msra.mxu1 %v6255_v3  ;;  %5243 = vmatprep.mubr.msk.f32.mxu1 %vm6153_vm0, %v6152_v0 }
 0x2f9   :  { %5237 = vmatprep.subr.mxu1 %v6152_v0  ;;  %5253 = vmatpush3.msra.mxu0 %v6359_v53 }
 0x2fa   :  { %5238 = vmatpush3.msra.mxu1 %v6261_v5  ;;  %5254 = vmatprep.mubr.msk.f32.mxu0 %vm6153_vm0, %v6152_v0 }
 0x2fb   :  { %5239 = vmatprep.subr.mxu1 %v6152_v0  ;;  %5268 = vmatprep.subr.mxu0 %v6152_v0  ;;  %v724_v27 = vpop.permute.xlu0 %723 }
 0x2fc   :  { %5240 = vmatpush3.msra.mxu1 %v6267_v7  ;;  %v726_v28 = vmul.f32 %v6300_v13, %v724_v27 }
 0x2fd   :  { %5241 = vmatprep.subr.mxu1 %v6152_v0 }
 0x2fe   :  { %5242 = vmatpush3.msra.mxu1 %v6275_v9 }
 0x2ff   :  { %5244 = vmatmul.mubr.msk.f32.vlgmr.msra.gmra.mxu1 %vm181_vm1, %v619_v26  ;;  %5257 = vmatprep.subr.mxu1 %v6152_v0  ;;  %v730_v42 = vpop.permute.xlu1 %729 }
 0x300   :  { %5258 = vmatpush3.msra.mxu1 %v6351_v51  ;;  %5265 = vmatprep.mubr.msk.f32.mxu1 %vm6153_vm0, %v6152_v0  ;;  %v732_v45 = vmul.f32 %v6305_v15, %v730_v42 }
 0x301   :  { %5259 = vmatprep.subr.mxu1 %v6152_v0 }
 0x302   :  { %5260 = vmatpush3.msra.mxu1 %v6356_v52 }
 0x303   :  { %5261 = vmatprep.subr.mxu1 %v6152_v0 }
 0x304   :  { %5262 = vmatpush3.msra.mxu1 %v6380_v57 }
 0x305   :  { %5263 = vmatprep.subr.mxu1 %v6152_v0 }
 0x306   :  { %5264 = vmatpush3.msra.mxu1 %v6391_v60 }
 0x307   :  { %5279 = vmatprep.subr.mxu1 %v6152_v0 }
 0x3af   :  { %v518_v30 = vpop.f32.mrf.mxu1  ;;  %v799_v31 = vpop.f32.mrf.mxu0 }
 0x3b0   :  { %v519_v32 = vadd.f32 %v518_v30, %v443_v14  ;;  %v803_v33 = vadd.f32 %v799_v31, %v726_v28 }
 0x3b1   :  { %v5201_v34 = vpop.f32.mrf.mxu1  ;;  %v5234_v35 = vpop.f32.mrf.mxu0 }
 0x3b2   :  { %v522_v36 = vadd.f32 %v6483_v29, %v519_v32  ;;  %v804_v37 = vadd.f32 %v6312_v18, %v803_v33 }
 0x3b4   :  { %5738 = vtanh.f32 %v522_v36  ;;  %v4818_v12 = vmul.f32 -1.442695, %v522_v36  ;;  %v4824_v14 = vmul.f32 -1.442695, %v804_v37 }
 0x3b5   :  { %5740 = vtanh.f32 %v804_v37 }
 0x3b7   :  { %v688_v39 = vpop.f32.mrf.mxu1 }
 0x3b8   :  { %v689_v40 = vadd.f32 %v688_v39, %v6425_v17 }
 0x3b9   :  { %v5223_v41 = vpop.f32.mrf.mxu1 }
 0x3ba   :  { %v692_v43 = vadd.f32 %v6490_v38, %v689_v40 }
 0x3bc   :  { %5742 = vtanh.f32 %v692_v43  ;;  %v4820_v16 = vmul.f32 -1.442695, %v692_v43 }
 0x3bf   :  { %v895_v46 = vpop.f32.mrf.mxu1 }
 0x3c0   :  { %v899_v54 = vadd.f32 %v895_v46, %v732_v45 }
 0x3c1   :  { %v5739_v58 = vpop.eup %5738  ;;  %v5245_v62 = vpop.f32.mrf.mxu1 }
 0x3c2   :  { %v900_v63 = vadd.f32 %v6317_v23, %v899_v54  ;;  %532 = vrot.lane.b32.xlu0 %v5739_v58, %s6155_s15  ;;  %v5741_v1 = vpop.eup %5740 }
 0x3c4   :  { %5744 = vtanh.f32 %v900_v63  ;;  %v4826_v17 = vmul.f32 -1.442695, %v900_v63 }
 0x3c5   :  { %5746 = vpow2.f32 %v4818_v12 }
 0x3c6   :  { %814 = vrot.lane.b32.xlu0 %v5741_v1, %s6155_s15  ;;  %5748 = vpow2.f32 %v4824_v14 }
 0x3c7   :  { %5750 = vpow2.f32 %v4820_v16 }
 0x3c8   :  { %5752 = vpow2.f32 %v4826_v17 }
 0x3c9   :  { %v5743_v10 = vpop.eup %5742 }
 0x3ca   :  { %702 = vrot.lane.b32.xlu1 %v5743_v10, %s6155_s15 }
 0x3d1   :  { %v5745_v11 = vpop.eup %5744 }
 0x3d2   :  { %910 = vrot.lane.b32.xlu1 %v5745_v11, %s6155_s15  ;;  %v5747_v19 = vpop.eup %5746 }
 0x3d3   :  { %v526_v21 = vadd.f32 1.0, %v5747_v19  ;;  %v5749_v26 = vpop.eup %5748 }
 0x3d4   :  { %v808_v27 = vadd.f32 1.0, %v5749_v26  ;;  %v5751_v28 = vpop.eup %5750 }
 0x3d5   :  { %5754 = vrcp.f32 %v526_v21  ;;  %v696_v30 = vadd.f32 1.0, %v5751_v28  ;;  %v5753_v31 = vpop.eup %5752 }
 0x3d6   :  { %5756 = vrcp.f32 %v808_v27  ;;  %v904_v32 = vadd.f32 1.0, %v5753_v31 }
 0x3d7   :  { %5758 = vrcp.f32 %v696_v30 }
 0x3d8   :  { %5760 = vrcp.f32 %v904_v32 }
 0x3e2   :  { %v5755_v33 = vpop.eup %5754 }
 0x3e3   :  { %v5757_v36 = vpop.eup %5756  ;;  %v530_v54 = vmul.f32 0.0, %v5755_v33 }
 0x3e4   :  { %v5759_v40 = vpop.eup %5758  ;;  %v812_v63 = vmul.f32 %v5757_v36, %v6332_v44 }
 0x3e5   :  { %v5761_v43 = vpop.eup %5760  ;;  %v700_v11 = vmul.f32 0.0, %v5759_v40 }
 0x3e6   :  { %v908_v16 = vmul.f32 %v5761_v43, %v6336_v47 }
 0x434   :  { %v533_v34 = vpop.permute.xlu0 %532 }
 0x435   :  { %v535_v35 = vmul.f32 %v5755_v33, %v533_v34 }
 0x437   :  { %537 = vrot.lane.b32.xlu0 %v535_v35, %s6156_s16  ;;  %v4833_v35 = vld [vmem:[%s7378_s0 + $0x4] sm:$0x3] }
 0x438   :  { %v815_v37 = vpop.permute.xlu0 %814 }
 0x439   :  { %v817_v39 = vmul.f32 %v5757_v36, %v815_v37 }
 0x43b   :  { %819 = vrot.lane.b32.xlu0 %v817_v39, %s6156_s16 }
 0x43c   :  { %v703_v41 = vpop.permute.xlu1 %702 }
 0x43d   :  { %v705_v42 = vmul.f32 %v5759_v40, %v703_v41 }
 0x43f   :  { %707 = vrot.lane.b32.xlu1 %v705_v42, %s6156_s16 }
 0x444   :  { %v911_v45 = vpop.permute.xlu1 %910 }
 0x445   :  { %v913_v46 = vmul.f32 %v5761_v43, %v911_v45 }
 0x447   :  { %915 = vrot.lane.b32.xlu1 %v913_v46, %s6156_s16 }
 0x4a9   :  { %v538_v58 = vpop.permute.xlu0 %537 }
 0x4aa   :  { %v6504_v62 = vadd.f32 %v538_v58, %v530_v54 }
 0x4ac   :  { %5762 = vtanh.f32 %v6504_v62 }
 0x4ad   :  { %v820_v1 = vpop.permute.xlu0 %819 }
 0x4ae   :  { %v6508_v10 = vadd.f32 %v820_v1, %v812_v63 }
 0x4b0   :  { %5764 = vtanh.f32 %v6508_v10 }
 0x4b1   :  { %v708_v12 = vpop.permute.xlu1 %707 }
 0x4b2   :  { %v6511_v14 = vadd.f32 %v708_v12, %v700_v11 }
 0x4b4   :  { %5766 = vtanh.f32 %v6511_v14 }
 0x4b9   :  { %v5763_v17 = vpop.eup %5762  ;;  %v916_v19 = vpop.permute.xlu1 %915 }
 0x4ba   :  { %v6515_v21 = vadd.f32 %v916_v19, %v908_v16  ;;  %543 = vrot.lane.b32.xlu0 %v5763_v17, %s6155_s15 }
 0x4bc   :  { %5768 = vtanh.f32 %v6515_v21 }
 0x4bd   :  { %v5765_v44 = vpop.eup %5764 }
 0x4be   :  { %825 = vrot.lane.b32.xlu0 %v5765_v44, %s6155_s15 }
 0x4c1   :  { %v5767_v26 = vpop.eup %5766 }
 0x4c2   :  { %713 = vrot.lane.b32.xlu1 %v5767_v26, %s6155_s15 }
 0x4c9   :  { %v5769_v27 = vpop.eup %5768 }
 0x4ca   :  { %921 = vrot.lane.b32.xlu1 %v5769_v27, %s6155_s15 }
 0x52c   :  { %v544_v28 = vpop.permute.xlu0 %543 }
 0x52d   :  { %v546_v30 = vmul.f32 %v5755_v33, %v544_v28  ;;  %v4834_v33 = vld [vmem:[%s7379_s1 + $0x4] sm:$0x3] }
 0x52f   :  { %926 = vrot.lane.b32.xlu0 %v546_v30, %s6156_s16 }
 0x530   :  { %v826_v47 = vpop.permute.xlu0 %825 }
 0x531   :  { %v828_v31 = vmul.f32 %v5757_v36, %v826_v47 }
 0x533   :  { %1001 = vrot.lane.b32.xlu1 %v828_v31, %s6156_s16 }
 0x534   :  { %v714_v32 = vpop.permute.xlu1 %713 }
 0x535   :  { %v716_v34 = vmul.f32 %v5759_v40, %v714_v32 }
 0x537   :  { %1101 = vrot.lane.b32.xlu0 %v716_v34, %s6156_s16 }
 0x53b   :  { %1281 = vperm.xlu0 %5720, %v4833_v35  }
 0x53c   :  { %v922_v37 = vpop.permute.xlu1 %921 }
 0x53d   :  { %v924_v39 = vmul.f32 %v5761_v43, %v922_v37 }
 0x53f   :  { %1176 = vrot.lane.b32.xlu1 %v924_v39, %s6156_s16 }
 0x543   :  { %1287 = vperm.xlu1 %5721, %v4834_v33  }
 0x5a1   :  { %v927_v36 = vpop.permute.xlu0 %926 }
 0x5a2   :  { %5255 = vmatmul.mubr.msk.f32.vlgmr.msra.gmra.mxu0 %vm181_vm1, %v927_v36 }
 0x5a3   :  { %5269 = vmatpush3.msra.mxu0 %v6365_v55  ;;  %5276 = vmatprep.mubr.msk.f32.mxu0 %vm6153_vm0, %v6152_v0 }
 0x5a4   :  { %5270 = vmatprep.subr.mxu0 %v6152_v0 }
 0x5a5   :  { %5271 = vmatpush3.msra.mxu0 %v6372_v56  ;;  %v1002_v40 = vpop.permute.xlu1 %1001 }
 0x5a6   :  { %5272 = vmatprep.subr.mxu0 %v6152_v0  ;;  %5266 = vmatmul.mubr.msk.f32.vlgmr.msra.gmra.mxu1 %vm181_vm1, %v1002_v40 }
 0x5a7   :  { %5273 = vmatpush3.msra.mxu0 %v6383_v59  ;;  %5280 = vmatpush3.msra.mxu1 %v6427_v20 }
 0x5a8   :  { %5274 = vmatprep.subr.mxu0 %v6152_v0  ;;  %5281 = vmatprep.subr.mxu1 %v6152_v0 }
 0x5a9   :  { %5275 = vmatpush3.msra.mxu0 %v6394_v61  ;;  %v1102_v41 = vpop.permute.xlu0 %1101  ;;  %5282 = vmatpush3.msra.mxu1 %v6431_v22 }
 0x5aa   :  { %5277 = vmatmul.mubr.msk.f32.vlgmr.msra.gmra.mxu0 %vm181_vm1, %v1102_v41  ;;  %5290 = vmatprep.subr.mxu0 %v6152_v0 }
 0x5ab   :  { %5291 = vmatpush3.msra.mxu0 %v6253_v2  ;;  %5283 = vmatprep.subr.mxu1 %v6152_v0 }
 0x5ac   :  { %5292 = vmatprep.subr.mxu0 %v6152_v0  ;;  %5284 = vmatpush3.msra.mxu1 %v6437_v24 }
 0x5ad   :  { %5293 = vmatpush3.msra.mxu0 %v6257_v4  ;;  %5285 = vmatprep.subr.mxu1 %v6152_v0 }
 0x5ae   :  { %5294 = vmatprep.subr.mxu0 %v6152_v0  ;;  %5286 = vmatpush3.msra.mxu1 %v6443_v25 }
 0x5af   :  { %5295 = vmatpush3.msra.mxu0 %v6265_v6  ;;  %5287 = vmatprep.mubr.msk.f32.mxu1 %vm6153_vm0, %v6152_v0 }
 0x5b0   :  { %5296 = vmatprep.subr.mxu0 %v6152_v0  ;;  %5301 = vmatprep.subr.mxu1 %v6152_v0 }
 0x5b1   :  { %v1177_v42 = vpop.permute.xlu1 %1176  ;;  %5297 = vmatpush3.msra.mxu0 %v6273_v8  ;;  %5298 = vmatprep.mubr.msk.f32.mxu0 %vm6153_vm0, %v6152_v0 }
 0x5b2   :  { %5288 = vmatmul.mubr.msk.f32.vlgmr.msra.gmra.mxu1 %vm181_vm1, %v1177_v42  ;;  %5299 = vmatmul.mubr.msk.f32.vlgmr.msra.gmra.mxu0 %vm181_vm1, %v1002_v40 }
 0x5b3   :  { %5302 = vmatpush3.msra.mxu1 %v6255_v3  ;;  %5309 = vmatprep.mubr.msk.f32.mxu1 %vm6153_vm0, %v6152_v0 }
 0x5b4   :  { %5303 = vmatprep.subr.mxu1 %v6152_v0  ;;  %5312 = vmatprep.subr.mxu0 %v6152_v0 }
 0x5b5   :  { %5304 = vmatpush3.msra.mxu1 %v6261_v5  ;;  %5313 = vmatpush3.msra.mxu0 %v6339_v48 }
 0x5b6   :  { %5305 = vmatprep.subr.mxu1 %v6152_v0  ;;  %5314 = vmatprep.subr.mxu0 %v6152_v0  ;;  %v1282_v58 = vpop.permute.xlu0 %1281 }
 0x5b7   :  { %5306 = vmatpush3.msra.mxu1 %v6267_v7  ;;  %5315 = vmatpush3.msra.mxu0 %v6341_v49  ;;  %v1284_v63 = vmul.f32 %v6300_v13, %v1282_v58 }
 0x5b8   :  { %5307 = vmatprep.subr.mxu1 %v6152_v0  ;;  %5316 = vmatprep.subr.mxu0 %v6152_v0 }
 0x5b9   :  { %5308 = vmatpush3.msra.mxu1 %v6275_v9  ;;  %5317 = vmatpush3.msra.mxu0 %v6345_v50 }
 0x5ba   :  { %5310 = vmatmul.mubr.msk.f32.vlgmr.msra.gmra.mxu1 %vm181_vm1, %v1177_v42  ;;  %5318 = vmatprep.subr.mxu0 %v6152_v0 }
 0x5bb   :  { %5319 = vmatpush3.msra.mxu0 %v6359_v53  ;;  %5320 = vmatprep.mubr.msk.f32.mxu0 %vm6153_vm0, %v6152_v0 }
 0x5bc   :  { %5323 = vmatprep.subr.mxu1 %v6152_v0  ;;  %5334 = vmatprep.subr.mxu0 %v6152_v0 }
 0x5bd   :  { %5324 = vmatpush3.msra.mxu1 %v6351_v51  ;;  %5331 = vmatprep.mubr.msk.f32.mxu1 %vm6153_vm0, %v6152_v0 }
 0x5be   :  { %5325 = vmatprep.subr.mxu1 %v6152_v0  ;;  %v1288_v27 = vpop.permute.xlu1 %1287 }
 0x5bf   :  { %5326 = vmatpush3.msra.mxu1 %v6356_v52  ;;  %v1290_v30 = vmul.f32 %v6305_v15, %v1288_v27 }
 0x5c0   :  { %5327 = vmatprep.subr.mxu1 %v6152_v0 }
 0x5c1   :  { %5328 = vmatpush3.msra.mxu1 %v6380_v57 }
 0x5c2   :  { %5329 = vmatprep.subr.mxu1 %v6152_v0 }
 0x5c3   :  { %5330 = vmatpush3.msra.mxu1 %v6391_v60 }
 0x5c4   :  { %5345 = vmatprep.subr.mxu1 %v6152_v0 }
 0x662   :  { %v996_v3 = vpop.f32.mrf.mxu0 }
 0x664   :  { %v5256_v5 = vpop.f32.mrf.mxu0 }
 0x666   :  { %v1071_v7 = vpop.f32.mrf.mxu1 }
 0x667   :  { %v1072_v9 = vadd.f32 %v1071_v7, %v996_v3 }
 0x668   :  { %v5267_v43 = vpop.f32.mrf.mxu1 }
 0x669   :  { %v1075_v45 = vadd.f32 %v6483_v29, %v1072_v9 }
 0x66a   :  { %v1171_v46 = vpop.f32.mrf.mxu0 }
 0x66b   :  { %5770 = vtanh.f32 %v1075_v45  ;;  %v4829_v37 = vmul.f32 -1.442695, %v1075_v45 }
 0x66c   :  { %v5278_v54 = vpop.f32.mrf.mxu0 }
 0x672   :  { %v1246_v1 = vpop.f32.mrf.mxu1  ;;  %v1357_v11 = vpop.f32.mrf.mxu0 }
 0x673   :  { %v1247_v12 = vadd.f32 %v1246_v1, %v1171_v46  ;;  %v1361_v16 = vadd.f32 %v1357_v11, %v1284_v63 }
 0x674   :  { %v5289_v17 = vpop.f32.mrf.mxu1  ;;  %v5300_v19 = vpop.f32.mrf.mxu0 }
 0x675   :  { %v1250_v44 = vadd.f32 %v6490_v38, %v1247_v12  ;;  %v1362_v26 = vadd.f32 %v6312_v18, %v1361_v16 }
 0x677   :  { %5772 = vtanh.f32 %v1250_v44  ;;  %v4832_v15 = vmul.f32 -1.442695, %v1250_v44  ;;  %v4836_v39 = vmul.f32 -1.442695, %v1362_v26 }
 0x678   :  { %v5771_v28 = vpop.eup %5770  ;;  %5774 = vtanh.f32 %v1362_v26 }
 0x679   :  { %1085 = vrot.lane.b32.xlu0 %v5771_v28, %s6155_s15 }
 0x67a   :  { %v1453_v47 = vpop.f32.mrf.mxu1 }
 0x67b   :  { %v1457_v13 = vadd.f32 %v1453_v47, %v1290_v30 }
 0x67c   :  { %v5311_v31 = vpop.f32.mrf.mxu1 }
 0x67d   :  { %v1458_v32 = vadd.f32 %v6317_v23, %v1457_v13 }
 0x67f   :  { %5776 = vtanh.f32 %v1458_v32  ;;  %v4838_v40 = vmul.f32 -1.442695, %v1458_v32 }
 0x680   :  { %5778 = vpow2.f32 %v4829_v37 }
 0x681   :  { %5780 = vpow2.f32 %v4832_v15 }
 0x682   :  { %5782 = vpow2.f32 %v4836_v39 }
 0x684   :  { %v5773_v34 = vpop.eup %5772 }
 0x685   :  { %v5775_v35 = vpop.eup %5774  ;;  %1260 = vrot.lane.b32.xlu0 %v5773_v34, %s6155_s15 }
 0x686   :  { %1372 = vrot.lane.b32.xlu1 %v5775_v35, %s6155_s15 }
 0x68c   :  { %v5777_v18 = vpop.eup %5776 }
 0x68d   :  { %1468 = vrot.lane.b32.xlu1 %v5777_v18, %s6155_s15  ;;  %v5779_v33 = vpop.eup %5778 }
 0x68e   :  { %v1079_v36 = vadd.f32 1.0, %v5779_v33  ;;  %v5781_v23 = vpop.eup %5780 }
 0x68f   :  { %v5783_v41 = vpop.eup %5782  ;;  %v1254_v42 = vadd.f32 1.0, %v5781_v23 }
 0x690   :  { %5784 = vrcp.f32 %v1079_v36  ;;  %v1366_v3 = vadd.f32 1.0, %v5783_v41 }
 0x691   :  { %5786 = vpow2.f32 %v4838_v40  ;;  %v4845_v40 = vld [vmem:[%s7378_s0 + $0x6] sm:$0x3] }
 0x692   :  { %5788 = vrcp.f32 %v1254_v42  ;;  %v4846_v42 = vld [vmem:[%s7379_s1 + $0x6] sm:$0x3] }
 0x693   :  { %5790 = vrcp.f32 %v1366_v3 }
 0x69d   :  { %v5785_v5 = vpop.eup %5784 }
 0x69e   :  { %v5787_v7 = vpop.eup %5786  ;;  %v1083_v19 = vmul.f32 %v5785_v5, %v6504_v62 }
 0x69f   :  { %v1462_v45 = vadd.f32 1.0, %v5787_v7  ;;  %v5789_v46 = vpop.eup %5788 }
 0x6a0   :  { %v5791_v58 = vpop.eup %5790  ;;  %v1258_v27 = vmul.f32 %v5789_v46, %v6511_v14 }
 0x6a1   :  { %5792 = vrcp.f32 %v1462_v45  ;;  %v1370_v28 = vmul.f32 %v5791_v58, %v6508_v10 }
 0x6ae   :  { %v5793_v12 = vpop.eup %5792 }
 0x6af   :  { %v1466_v62 = vmul.f32 %v5793_v12, %v6515_v21 }
 0x6eb   :  { %v1086_v9 = vpop.permute.xlu0 %1085 }
 0x6ec   :  { %v1088_v43 = vmul.f32 %v5785_v5, %v1086_v9 }
 0x6ee   :  { %1090 = vrot.lane.b32.xlu0 %v1088_v43, %s6156_s16 }
 0x6f7   :  { %v1261_v54 = vpop.permute.xlu0 %1260 }
 0x6f8   :  { %v1373_v63 = vpop.permute.xlu1 %1372  ;;  %v1263_v1 = vmul.f32 %v5789_v46, %v1261_v54 }
 0x6f9   :  { %v1375_v11 = vmul.f32 %v5791_v58, %v1373_v63 }
 0x6fa   :  { %1265 = vrot.lane.b32.xlu0 %v1263_v1, %s6156_s16 }
 0x6fb   :  { %1377 = vrot.lane.b32.xlu1 %v1375_v11, %s6156_s16 }
 0x6ff   :  { %v1469_v16 = vpop.permute.xlu1 %1468 }
 0x700   :  { %v1471_v17 = vmul.f32 %v5793_v12, %v1469_v16  ;;  %v6740_v16 = vld [vmem:[%s7387_s9] ss:$0 sm:$0xff] }
 0x702   :  { %1473 = vrot.lane.b32.xlu1 %v1471_v17, %s6156_s16 }
 0x760   :  { %v1091_v44 = vpop.permute.xlu0 %1090 }
 0x761   :  { %v6613_v26 = vadd.f32 %v1091_v44, %v1083_v19 }
 0x763   :  { %5794 = vtanh.f32 %v6613_v26 }
 0x76c   :  { %v1266_v30 = vpop.permute.xlu0 %1265 }
 0x76d   :  { %v1378_v47 = vpop.permute.xlu1 %1377  ;;  %v6618_v13 = vadd.f32 %v1266_v30, %v1258_v27 }
 0x76e   :  { %v6620_v31 = vadd.f32 %v1378_v47, %v1370_v28 }
 0x76f   :  { %5796 = vtanh.f32 %v6618_v13 }
 0x770   :  { %v5795_v32 = vpop.eup %5794  ;;  %5798 = vtanh.f32 %v6620_v31 }
 0x771   :  { %1096 = vrot.lane.b32.xlu0 %v5795_v32, %s6155_s15 }
 0x774   :  { %v1474_v34 = vpop.permute.xlu1 %1473 }
 0x775   :  { %v6626_v35 = vadd.f32 %v1474_v34, %v1466_v62 }
 0x777   :  { %5800 = vtanh.f32 %v6626_v35 }
 0x77c   :  { %v5797_v10 = vpop.eup %5796 }
 0x77d   :  { %v5799_v14 = vpop.eup %5798  ;;  %1271 = vrot.lane.b32.xlu0 %v5797_v10, %s6155_s15 }
 0x77e   :  { %1383 = vrot.lane.b32.xlu1 %v5799_v14, %s6155_s15 }
 0x784   :  { %v5801_v18 = vpop.eup %5800 }
 0x785   :  { %1479 = vrot.lane.b32.xlu1 %v5801_v18, %s6155_s15 }
 0x7e3   :  { %v1097_v37 = vpop.permute.xlu0 %1096 }
 0x7e4   :  { %v1099_v15 = vmul.f32 %v5785_v5, %v1097_v37 }
 0x7e6   :  { %1484 = vrot.lane.b32.xlu0 %v1099_v15, %s6156_s16 }
 0x7ef   :  { %v1272_v39 = vpop.permute.xlu0 %1271 }
 0x7f0   :  { %v1384_v21 = vpop.permute.xlu1 %1383  ;;  %v1274_v33 = vmul.f32 %v5789_v46, %v1272_v39 }
 0x7f1   :  { %v1386_v36 = vmul.f32 %v5791_v58, %v1384_v21  ;;  %v6733_v58 = vld [vmem:[%s7384_s6] ss:$0 sm:$0xff] }
 0x7f2   :  { %1659 = vrot.lane.b32.xlu0 %v1274_v33, %s6156_s16 }
 0x7f3   :  { %1559 = vrot.lane.b32.xlu1 %v1386_v36, %s6156_s16 }
 0x7f6   :  { %1839 = vperm.xlu0 %5720, %v4845_v40  }
 0x7f7   :  { %v1480_v23 = vpop.permute.xlu1 %1479 }
 0x7f8   :  { %v1482_v41 = vmul.f32 %v5793_v12, %v1480_v23 }
 0x7fa   :  { %1734 = vrot.lane.b32.xlu1 %v1482_v41, %s6156_s16 }
 0x7fe   :  { %1845 = vperm.xlu1 %5721, %v4846_v42  }
 0x858   :  { %v1485_v3 = vpop.permute.xlu0 %1484 }
 0x859   :  { %5321 = vmatmul.mubr.msk.f32.vlgmr.msra.gmra.mxu0 %vm181_vm1, %v1485_v3 }
 0x85a   :  { %5335 = vmatpush3.msra.mxu0 %v6365_v55  ;;  %5342 = vmatprep.mubr.msk.f32.mxu0 %vm6153_vm0, %v6152_v0  ;;  %v6695_v55 = vld [vmem:[#allocation7] sm:$0xff] }
 0x85b   :  { %5336 = vmatprep.subr.mxu0 %v6152_v0 }
 0x85c   :  { %5337 = vmatpush3.msra.mxu0 %v6372_v56 }
 0x85d   :  { %5338 = vmatprep.subr.mxu0 %v6152_v0 }
 0x85e   :  { %5339 = vmatpush3.msra.mxu0 %v6383_v59 }
 0x85f   :  { %5340 = vmatprep.subr.mxu0 %v6152_v0 }
 0x860   :  { %5341 = vmatpush3.msra.mxu0 %v6394_v61 }
 0x861   :  { %5356 = vmatprep.subr.mxu0 %v6152_v0 }
 0x864   :  { %v1660_v5 = vpop.permute.xlu0 %1659 }
 0x865   :  { %v1560_v7 = vpop.permute.xlu1 %1559  ;;  %5343 = vmatmul.mubr.msk.f32.vlgmr.msra.gmra.mxu0 %vm181_vm1, %v1660_v5 }
 0x866   :  { %5332 = vmatmul.mubr.msk.f32.vlgmr.msra.gmra.mxu1 %vm181_vm1, %v1560_v7  ;;  %5357 = vmatpush3.msra.mxu0 %v6253_v2 }
 0x867   :  { %5346 = vmatpush3.msra.mxu1 %v6427_v20  ;;  %5358 = vmatprep.subr.mxu0 %v6152_v0 }
 0x868   :  { %5347 = vmatprep.subr.mxu1 %v6152_v0  ;;  %5359 = vmatpush3.msra.mxu0 %v6257_v4  ;;  %v6676_v4 = vld [vmem:[#allocation7 + $0x18] sm:$0xff] }
 0x869   :  { %5348 = vmatpush3.msra.mxu1 %v6431_v22  ;;  %5360 = vmatprep.subr.mxu0 %v6152_v0 }
 0x86a   :  { %5349 = vmatprep.subr.mxu1 %v6152_v0  ;;  %5361 = vmatpush3.msra.mxu0 %v6265_v6  ;;  %v6683_v6 = vld [vmem:[#allocation7 + $0x10] sm:$0xff] }
 0x86b   :  { %5350 = vmatpush3.msra.mxu1 %v6437_v24  ;;  %5362 = vmatprep.subr.mxu0 %v6152_v0 }
 0x86c   :  { %5351 = vmatprep.subr.mxu1 %v6152_v0  ;;  %5353 = vmatprep.mubr.msk.f32.mxu1 %vm6153_vm0, %v6152_v0  ;;  %v1735_v2 = vpop.permute.xlu1 %1734 }
 0x86d   :  { %5352 = vmatpush3.msra.mxu1 %v6443_v25  ;;  %5363 = vmatpush3.msra.mxu0 %v6273_v8  ;;  %v6689_v8 = vld [vmem:[#allocation7 + $0x8] sm:$0xff] }
 0x86e   :  { %5364 = vmatprep.mubr.msk.f32.mxu0 %vm6153_vm0, %v6152_v0  ;;  %5354 = vmatmul.mubr.msk.f32.vlgmr.msra.gmra.mxu1 %vm181_vm1, %v1735_v2 }
 0x86f   :  { %5365 = vmatmul.mubr.msk.f32.vlgmr.msra.gmra.mxu0 %vm181_vm1, %v1560_v7  ;;  %5367 = vmatprep.subr.mxu1 %v6152_v0 }
 0x870   :  { %5368 = vmatpush3.msra.mxu1 %v6676_v4  ;;  %5375 = vmatprep.mubr.msk.f32.mxu1 %vm6153_vm0, %v6152_v0 }
 0x871   :  { %5369 = vmatprep.subr.mxu1 %v6152_v0  ;;  %5378 = vmatprep.subr.mxu0 %v6152_v0  ;;  %v1840_v61 = vpop.permute.xlu0 %1839 }
 0x872   :  { %5370 = vmatpush3.msra.mxu1 %v6683_v6  ;;  %5379 = vmatpush3.msra.mxu0 %v6339_v48 }
 0x873   :  { %5371 = vmatprep.subr.mxu1 %v6152_v0  ;;  %5380 = vmatprep.subr.mxu0 %v6152_v0 }
 0x874   :  { %5372 = vmatpush3.msra.mxu1 %v6689_v8  ;;  %5381 = vmatpush3.msra.mxu0 %v6341_v49 }
 0x875   :  { %5373 = vmatprep.subr.mxu1 %v6152_v0  ;;  %5382 = vmatprep.subr.mxu0 %v6152_v0 }
 0x876   :  { %5374 = vmatpush3.msra.mxu1 %v6695_v55  ;;  %5383 = vmatpush3.msra.mxu0 %v6345_v50 }
 0x877   :  { %5376 = vmatmul.mubr.msk.f32.vlgmr.msra.gmra.mxu1 %vm181_vm1, %v1735_v2  ;;  %5384 = vmatprep.subr.mxu0 %v6152_v0 }
 0x878   :  { %5385 = vmatpush3.msra.mxu0 %v6359_v53  ;;  %5389 = vmatprep.subr.mxu1 %v6152_v0 }
 0x879   :  { %5386 = vmatprep.mubr.msk.f32.mxu0 %vm6153_vm0, %v6152_v0  ;;  %5390 = vmatpush3.msra.mxu1 %v6351_v51  ;;  %v1846_v54 = vpop.permute.xlu1 %1845 }
 0x87a   :  { %5400 = vmatprep.subr.mxu0 %v6152_v0  ;;  %5391 = vmatprep.subr.mxu1 %v6152_v0  ;;  %v1848_v63 = vmul.f32 %v6733_v58, %v1846_v54 }
 0x87b   :  { %5392 = vmatpush3.msra.mxu1 %v6356_v52  ;;  %5397 = vmatprep.mubr.msk.f32.mxu1 %vm6153_vm0, %v6152_v0 }
 0x87c   :  { %5393 = vmatprep.subr.mxu1 %v6152_v0 }
 0x87d   :  { %5394 = vmatpush3.msra.mxu1 %v6380_v57  ;;  %v6720_v57 = vld [vmem:[%s7380_s2] ss:$0 sm:$0xff] }
 0x87e   :  { %5395 = vmatprep.subr.mxu1 %v6152_v0 }
 0x87f   :  { %5396 = vmatpush3.msra.mxu1 %v6391_v60  ;;  %v1842_v60 = vmul.f32 %v6720_v57, %v1840_v61 }
 0x880   :  { %5411 = vmatprep.subr.mxu1 %v6152_v0 }
 0x919   :  { %v1554_v48 = vpop.f32.mrf.mxu0 }
 0x91b   :  { %v5322_v49 = vpop.f32.mrf.mxu0 }
 0x925   :  { %v1729_v50 = vpop.f32.mrf.mxu0 }
 0x926   :  { %v1629_v51 = vpop.f32.mrf.mxu1 }
 0x927   :  { %v1630_v53 = vadd.f32 %v1629_v51, %v1554_v48  ;;  %v5344_v56 = vpop.f32.mrf.mxu0 }
 0x928   :  { %v5333_v52 = vpop.f32.mrf.mxu1 }
 0x929   :  { %v1633_v59 = vadd.f32 %v6483_v29, %v1630_v53  ;;  %v6727_v29 = vld [vmem:[%s7383_s5] ss:$0 sm:$0xff] }
 0x92b   :  { %5802 = vtanh.f32 %v1633_v59  ;;  %v4841_v28 = vmul.f32 -1.442695, %v1633_v59 }
 0x92e   :  { %v1804_v20 = vpop.f32.mrf.mxu1 }
 0x92f   :  { %v1805_v22 = vadd.f32 %v1804_v20, %v1729_v50  ;;  %v1915_v24 = vpop.f32.mrf.mxu0 }
 0x930   :  { %v1919_v25 = vadd.f32 %v1915_v24, %v1842_v60  ;;  %v5355_v9 = vpop.f32.mrf.mxu1 }
 0x931   :  { %v1808_v43 = vadd.f32 %v6490_v38, %v1805_v22  ;;  %v5366_v45 = vpop.f32.mrf.mxu0 }
 0x932   :  { %v1920_v46 = vadd.f32 %v6727_v29, %v1919_v25 }
 0x933   :  { %5804 = vtanh.f32 %v1808_v43  ;;  %v4844_v30 = vmul.f32 -1.442695, %v1808_v43 }
 0x934   :  { %5806 = vtanh.f32 %v1920_v46  ;;  %v4848_v47 = vmul.f32 -1.442695, %v1920_v46 }
 0x937   :  { %v2011_v1 = vpop.f32.mrf.mxu1 }
 0x938   :  { %v5803_v38 = vpop.eup %5802  ;;  %v2015_v11 = vadd.f32 %v2011_v1, %v1848_v63  ;;  %v4857_v63 = vld [vmem:[%s7378_s0 + $0x8] sm:$0x3] }
 0x939   :  { %v5377_v12 = vpop.f32.mrf.mxu1  ;;  %1643 = vrot.lane.b32.xlu0 %v5803_v38, %s6155_s15 }
 0x93a   :  { %v2016_v17 = vadd.f32 %v6740_v16, %v2015_v11  ;;  %v4858_v11 = vld [vmem:[%s7379_s1 + $0x8] sm:$0x3] }
 0x93c   :  { %5808 = vtanh.f32 %v2016_v17  ;;  %v4850_v62 = vmul.f32 -1.442695, %v2016_v17  ;;  %v6781_v17 = vld [vmem:[#allocation7 + $0x38] sm:$0xff] }
 0x93d   :  { %5810 = vpow2.f32 %v4841_v28 }
 0x93e   :  { %5812 = vpow2.f32 %v4844_v30 }
 0x93f   :  { %5814 = vpow2.f32 %v4848_v47  ;;  %v6801_v47 = vld [vmem:[#allocation2 + $0x18] sm:$0xff] }
 0x940   :  { %v5805_v19 = vpop.eup %5804  ;;  %5816 = vpow2.f32 %v4850_v62  ;;  %v6809_v62 = vld [vmem:[#allocation2 + $0x10] sm:$0xff] }
 0x941   :  { %v5807_v44 = vpop.eup %5806  ;;  %1818 = vrot.lane.b32.xlu1 %v5805_v19, %s6155_s15  ;;  %v6787_v19 = vld [vmem:[#allocation7 + $0x30] sm:$0xff] }
 0x942   :  { %1930 = vrot.lane.b32.xlu0 %v5807_v44, %s6155_s15  ;;  %v6791_v44 = vld [vmem:[#allocation7 + $0x28] sm:$0xff] }
 0x949   :  { %v5809_v27 = vpop.eup %5808 }
 0x94a   :  { %2026 = vrot.lane.b32.xlu1 %v5809_v27, %s6155_s15  ;;  %v5811_v32 = vpop.eup %5810  ;;  %v6795_v27 = vld [vmem:[#allocation7 + $0x20] sm:$0xff] }
 0x94b   :  { %v1637_v34 = vadd.f32 1.0, %v5811_v32  ;;  %v5813_v10 = vpop.eup %5812  ;;  %v6804_v32 = vld [vmem:[#allocation5 + $0x18] sm:$0xff] }
 0x94c   :  { %v5815_v14 = vpop.eup %5814  ;;  %v1812_v18 = vadd.f32 1.0, %v5813_v10  ;;  %v6817_v10 = vld [vmem:[#allocation2 + $0x8] sm:$0xff] }
 0x94d   :  { %5818 = vrcp.f32 %v1637_v34  ;;  %v1924_v37 = vadd.f32 1.0, %v5815_v14  ;;  %v5817_v15 = vpop.eup %5816  ;;  %v6812_v34 = vld [vmem:[#allocation5 + $0x10] sm:$0xff]  ;;  %v6820_v14 = vld [vmem:[#allocation5 + $0x8] sm:$0xff] }
 0x94e   :  { %5820 = vrcp.f32 %v1812_v18  ;;  %v2020_v21 = vadd.f32 1.0, %v5817_v15  ;;  %v6827_v18 = vld [vmem:[#allocation5] sm:$0xff] }
 0x94f   :  { %5822 = vrcp.f32 %v1924_v37  ;;  %v6830_v15 = vld [vmem:[#allocation2] sm:$0xff] }
 0x950   :  { %5824 = vrcp.f32 %v2020_v21  ;;  %v6850_v21 = vld [vmem:[#allocation2 + $0x30] sm:$0xff] }
 0x95a   :  { %v5819_v39 = vpop.eup %5818 }
 0x95b   :  { %v5821_v40 = vpop.eup %5820  ;;  %v1641_v49 = vmul.f32 %v5819_v39, %v6613_v26 }
 0x95c   :  { %v5823_v41 = vpop.eup %5822  ;;  %v1816_v53 = vmul.f32 %v5821_v40, %v6618_v13 }
 0x95d   :  { %v5825_v7 = vpop.eup %5824  ;;  %v1928_v52 = vmul.f32 %v5823_v41, %v6620_v31 }
 0x95e   :  { %v2024_v20 = vmul.f32 %v5825_v7, %v6626_v35 }
 0x9ab   :  { %v1644_v33 = vpop.permute.xlu0 %1643 }
 0x9ac   :  { %v1646_v36 = vmul.f32 %v5819_v39, %v1644_v33  ;;  %v6856_v33 = vld [vmem:[#allocation2 + $0x28] sm:$0xff] }
 0x9ae   :  { %1648 = vrot.lane.b32.xlu0 %v1646_v36, %s6156_s16  ;;  %v6861_v36 = vld [vmem:[#allocation2 + $0x20] sm:$0xff] }
 0x9b3   :  { %v1819_v23 = vpop.permute.xlu1 %1818 }
 0x9b4   :  { %v1821_v42 = vmul.f32 %v5821_v40, %v1819_v23  ;;  %v1931_v3 = vpop.permute.xlu0 %1930  ;;  %v6880_v23 = vld [vmem:[%s7381_s3 + $0x10] sm:$0xff] }
 0x9b5   :  { %v1933_v5 = vmul.f32 %v5823_v41, %v1931_v3 }
 0x9b6   :  { %1823 = vrot.lane.b32.xlu1 %v1821_v42, %s6156_s16  ;;  %v6894_v42 = vld [vmem:[%s7381_s3] sm:$0xff] }
 0x9b7   :  { %1935 = vrot.lane.b32.xlu0 %v1933_v5, %s6156_s16 }
 0x9bc   :  { %v2027_v2 = vpop.permute.xlu1 %2026 }
 0x9bd   :  { %v2029_v48 = vmul.f32 %v5825_v7, %v2027_v2 }
 0x9bf   :  { %2031 = vrot.lane.b32.xlu1 %v2029_v48, %s6156_s16 }
 0xa20   :  { %v1649_v50 = vpop.permute.xlu0 %1648 }
 0xa21   :  { %v6751_v51 = vadd.f32 %v1649_v50, %v1641_v49 }
 0xa23   :  { %5826 = vtanh.f32 %v6751_v51 }
 0xa28   :  { %v1824_v56 = vpop.permute.xlu1 %1823 }
 0xa29   :  { %v6756_v59 = vadd.f32 %v1824_v56, %v1816_v53  ;;  %v1936_v61 = vpop.permute.xlu0 %1935  ;;  %v6901_v53 = vld [vmem:[%s7383_s5 + $0x1] ss:$0 sm:$0xff] }
 0xa2a   :  { %v6758_v60 = vadd.f32 %v1936_v61, %v1928_v52 }
 0xa2b   :  { %5828 = vtanh.f32 %v6756_v59 }
 0xa2c   :  { %5830 = vtanh.f32 %v6758_v60 }
 0xa30   :  { %v5827_v26 = vpop.eup %5826 }
 0xa31   :  { %v2032_v22 = vpop.permute.xlu1 %2031  ;;  %1654 = vrot.lane.b32.xlu0 %v5827_v26, %s6155_s15 }
 0xa32   :  { %v6764_v24 = vadd.f32 %v2032_v22, %v2024_v20 }
 0xa34   :  { %5832 = vtanh.f32 %v6764_v24 }
 0xa38   :  { %v5829_v13 = vpop.eup %5828 }
 0xa39   :  { %v5831_v31 = vpop.eup %5830  ;;  %1829 = vrot.lane.b32.xlu1 %v5829_v13, %s6155_s15 }
 0xa3a   :  { %1941 = vrot.lane.b32.xlu0 %v5831_v31, %s6155_s15 }
 0xa41   :  { %v5833_v25 = vpop.eup %5832 }
 0xa42   :  { %2037 = vrot.lane.b32.xlu1 %v5833_v25, %s6155_s15 }
 0xaa3   :  { %v1655_v9 = vpop.permute.xlu0 %1654 }
 0xaa4   :  { %v1657_v43 = vmul.f32 %v5819_v39, %v1655_v9  ;;  %v6844_v39 = vld [vmem:[#allocation2 + $0x38] sm:$0xff]  ;;  %v6908_v9 = vld [vmem:[%s7387_s9 + $0x1] ss:$0 sm:$0xff] }
 0xaa6   :  { %2042 = vrot.lane.b32.xlu0 %v1657_v43, %s6156_s16 }
 0xaab   :  { %v1830_v35 = vpop.permute.xlu1 %1829 }
 0xaac   :  { %v1832_v45 = vmul.f32 %v5821_v40, %v1830_v35  ;;  %v1942_v46 = vpop.permute.xlu0 %1941  ;;  %v6871_v40 = vld [vmem:[%s7381_s3 + $0x18] sm:$0xff] }
 0xaad   :  { %v1944_v54 = vmul.f32 %v5823_v41, %v1942_v46  ;;  %v6887_v41 = vld [vmem:[%s7381_s3 + $0x8] sm:$0xff] }
 0xaae   :  { %2217 = vrot.lane.b32.xlu0 %v1832_v45, %s6156_s16 }
 0xaaf   :  { %2117 = vrot.lane.b32.xlu1 %v1944_v54, %s6156_s16 }
 0xab2   :  { %2397 = vperm.xlu0 %5720, %v4857_v63  }
 0xab4   :  { %v2038_v1 = vpop.permute.xlu1 %2037 }
 0xab5   :  { %v2040_v38 = vmul.f32 %v5825_v7, %v2038_v1 }
 0xab7   :  { %2292 = vrot.lane.b32.xlu1 %v2040_v38, %s6156_s16 }
 0xabb   :  { %2403 = vperm.xlu1 %5721, %v4858_v11  }
 0xb18   :  { %v2043_v12 = vpop.permute.xlu0 %2042 }
 0xb19   :  { %5387 = vmatmul.mubr.msk.f32.vlgmr.msra.gmra.mxu0 %vm181_vm1, %v2043_v12 }
 0xb1a   :  { %5401 = vmatpush3.msra.mxu0 %v6781_v17  ;;  %5408 = vmatprep.mubr.msk.f32.mxu0 %vm6153_vm0, %v6152_v0 }
 0xb1b   :  { %5402 = vmatprep.subr.mxu0 %v6152_v0 }
 0xb1c   :  { %5403 = vmatpush3.msra.mxu0 %v6787_v19 }
 0xb1d   :  { %5404 = vmatprep.subr.mxu0 %v6152_v0 }
 0xb1e   :  { %5405 = vmatpush3.msra.mxu0 %v6791_v44 }
 0xb1f   :  { %5406 = vmatprep.subr.mxu0 %v6152_v0 }
 0xb20   :  { %5407 = vmatpush3.msra.mxu0 %v6795_v27  ;;  %v2218_v28 = vpop.permute.xlu0 %2217 }
 0xb21   :  { %v2118_v30 = vpop.permute.xlu1 %2117  ;;  %5409 = vmatmul.mubr.msk.f32.vlgmr.msra.gmra.mxu0 %vm181_vm1, %v2218_v28  ;;  %5422 = vmatprep.subr.mxu0 %v6152_v0 }
 0xb22   :  { %5398 = vmatmul.mubr.msk.f32.vlgmr.msra.gmra.mxu1 %vm181_vm1, %v2118_v30  ;;  %5423 = vmatpush3.msra.mxu0 %v6801_v47 }
 0xb23   :  { %5412 = vmatpush3.msra.mxu1 %v6804_v32  ;;  %5424 = vmatprep.subr.mxu0 %v6152_v0 }
 0xb24   :  { %5413 = vmatprep.subr.mxu1 %v6152_v0  ;;  %5425 = vmatpush3.msra.mxu0 %v6809_v62 }
 0xb25   :  { %5414 = vmatpush3.msra.mxu1 %v6812_v34  ;;  %5426 = vmatprep.subr.mxu0 %v6152_v0 }
 0xb26   :  { %5415 = vmatprep.subr.mxu1 %v6152_v0  ;;  %5427 = vmatpush3.msra.mxu0 %v6817_v10 }
 0xb27   :  { %5416 = vmatpush3.msra.mxu1 %v6820_v14  ;;  %5428 = vmatprep.subr.mxu0 %v6152_v0 }
 0xb28   :  { %5417 = vmatprep.subr.mxu1 %v6152_v0  ;;  %5419 = vmatprep.mubr.msk.f32.mxu1 %vm6153_vm0, %v6152_v0 }
 0xb29   :  { %5418 = vmatpush3.msra.mxu1 %v6827_v18  ;;  %v2293_v37 = vpop.permute.xlu1 %2292  ;;  %5429 = vmatpush3.msra.mxu0 %v6830_v15 }
 0xb2a   :  { %5433 = vmatprep.subr.mxu1 %v6152_v0  ;;  %5430 = vmatprep.mubr.msk.f32.mxu0 %vm6153_vm0, %v6152_v0 }
 0xb2b   :  { %5420 = vmatmul.mubr.msk.f32.vlgmr.msra.gmra.mxu1 %vm181_vm1, %v2293_v37  ;;  %5431 = vmatmul.mubr.msk.f32.vlgmr.msra.gmra.mxu0 %vm181_vm1, %v2118_v30 }
 0xb2c   :  { %5434 = vmatpush3.msra.mxu1 %v6676_v4  ;;  %5441 = vmatprep.mubr.msk.f32.mxu1 %vm6153_vm0, %v6152_v0 }
 0xb2d   :  { %5435 = vmatprep.subr.mxu1 %v6152_v0  ;;  %5444 = vmatprep.subr.mxu0 %v6152_v0  ;;  %v2398_v52 = vpop.permute.xlu0 %2397 }
 0xb2e   :  { %5436 = vmatpush3.msra.mxu1 %v6683_v6  ;;  %5445 = vmatpush3.msra.mxu0 %v6844_v39  ;;  %v2400_v61 = vmul.f32 %v6720_v57, %v2398_v52 }
 0xb2f   :  { %5437 = vmatprep.subr.mxu1 %v6152_v0  ;;  %5446 = vmatprep.subr.mxu0 %v6152_v0 }
 0xb30   :  { %5438 = vmatpush3.msra.mxu1 %v6689_v8  ;;  %5447 = vmatpush3.msra.mxu0 %v6850_v21 }
 0xb31   :  { %5439 = vmatprep.subr.mxu1 %v6152_v0  ;;  %5448 = vmatprep.subr.mxu0 %v6152_v0 }
 0xb32   :  { %5440 = vmatpush3.msra.mxu1 %v6695_v55  ;;  %5449 = vmatpush3.msra.mxu0 %v6856_v33 }
 0xb33   :  { %5442 = vmatmul.mubr.msk.f32.vlgmr.msra.gmra.mxu1 %vm181_vm1, %v2293_v37  ;;  %5450 = vmatprep.subr.mxu0 %v6152_v0 }
 0xb34   :  { %5451 = vmatpush3.msra.mxu0 %v6861_v36  ;;  %5452 = vmatprep.mubr.msk.f32.mxu0 %vm6153_vm0, %v6152_v0 }
 0xb35   :  { %5455 = vmatprep.subr.mxu1 %v6152_v0  ;;  %5466 = vmatprep.subr.mxu0 %v6152_v0 }
 0xb36   :  { %5456 = vmatpush3.msra.mxu1 %v6871_v40  ;;  %5463 = vmatprep.mubr.msk.f32.mxu1 %vm6153_vm0, %v6152_v0  ;;  %v2404_v45 = vpop.permute.xlu1 %2403 }
 0xb37   :  { %5457 = vmatprep.subr.mxu1 %v6152_v0  ;;  %v2406_v46 = vmul.f32 %v6733_v58, %v2404_v45 }
 0xb38   :  { %5458 = vmatpush3.msra.mxu1 %v6880_v23 }
 0xb39   :  { %5459 = vmatprep.subr.mxu1 %v6152_v0 }
 0xb3a   :  { %5460 = vmatpush3.msra.mxu1 %v6887_v41 }
 0xb3b   :  { %5461 = vmatprep.subr.mxu1 %v6152_v0 }
 0xb3c   :  { %5462 = vmatpush3.msra.mxu1 %v6894_v42 }
 0xb3d   :  { %5477 = vmatprep.subr.mxu1 %v6152_v0 }
 0xbd9   :  { %v2112_v3 = vpop.f32.mrf.mxu0 }
 0xbdb   :  { %v5388_v5 = vpop.f32.mrf.mxu0 }
 0xbe1   :  { %v2287_v7 = vpop.f32.mrf.mxu0 }
 0xbe2   :  { %v2187_v2 = vpop.f32.mrf.mxu1 }
 0xbe3   :  { %v2188_v48 = vadd.f32 %v2187_v2, %v2112_v3  ;;  %v5410_v49 = vpop.f32.mrf.mxu0 }
 0xbe4   :  { %v5399_v50 = vpop.f32.mrf.mxu1 }
 0xbe5   :  { %v2191_v56 = vadd.f32 %v6901_v53, %v2188_v48 }
 0xbe7   :  { %5834 = vtanh.f32 %v2191_v56  ;;  %v4853_v37 = vmul.f32 -1.442695, %v2191_v56 }
 0xbeb   :  { %v2362_v26 = vpop.f32.mrf.mxu1  ;;  %v2473_v20 = vpop.f32.mrf.mxu0 }
 0xbec   :  { %v2363_v22 = vadd.f32 %v2362_v26, %v2287_v7  ;;  %v2477_v13 = vadd.f32 %v2473_v20, %v2400_v61 }
 0xbed   :  { %v5421_v31 = vpop.f32.mrf.mxu1  ;;  %v5432_v25 = vpop.f32.mrf.mxu0 }
 0xbee   :  { %v2366_v43 = vadd.f32 %v6908_v9, %v2363_v22  ;;  %v2478_v35 = vadd.f32 %v6727_v29, %v2477_v13 }
 0xbf0   :  { %5836 = vtanh.f32 %v2366_v43  ;;  %v4856_v3 = vmul.f32 -1.442695, %v2366_v43  ;;  %v4860_v5 = vmul.f32 -1.442695, %v2478_v35 }
 0xbf1   :  { %5838 = vtanh.f32 %v2478_v35 }
 0xbf3   :  { %v2569_v54 = vpop.f32.mrf.mxu1 }
 0xbf4   :  { %v5835_v63 = vpop.eup %5834  ;;  %v2573_v1 = vadd.f32 %v2569_v54, %v2406_v46 }
 0xbf5   :  { %v5443_v38 = vpop.f32.mrf.mxu1  ;;  %2201 = vrot.lane.b32.xlu0 %v5835_v63, %s6155_s15 }
 0xbf6   :  { %v2574_v11 = vadd.f32 %v6740_v16, %v2573_v1 }
 0xbf8   :  { %5840 = vtanh.f32 %v2574_v11  ;;  %v4862_v2 = vmul.f32 -1.442695, %v2574_v11 }
 0xbf9   :  { %5842 = vpow2.f32 %v4853_v37 }
 0xbfa   :  { %5844 = vpow2.f32 %v4856_v3 }
 0xbfb   :  { %5846 = vpow2.f32 %v4860_v5 }
 0xbfc   :  { %5848 = vpow2.f32 %v4862_v2 }
 0xbfd   :  { %v5837_v12 = vpop.eup %5836 }
 0xbfe   :  { %v5839_v28 = vpop.eup %5838  ;;  %2376 = vrot.lane.b32.xlu0 %v5837_v12, %s6155_s15 }
 0xbff   :  { %2488 = vrot.lane.b32.xlu1 %v5839_v28, %s6155_s15 }
 0xc05   :  { %v5841_v30 = vpop.eup %5840 }
 0xc06   :  { %2584 = vrot.lane.b32.xlu1 %v5841_v30, %s6155_s15  ;;  %v5843_v7 = vpop.eup %5842 }
 0xc07   :  { %v2195_v48 = vadd.f32 1.0, %v5843_v7  ;;  %v5845_v49 = vpop.eup %5844 }
 0xc08   :  { %v5847_v50 = vpop.eup %5846  ;;  %v2370_v52 = vadd.f32 1.0, %v5845_v49 }
 0xc09   :  { %5850 = vrcp.f32 %v2195_v48  ;;  %v2482_v61 = vadd.f32 1.0, %v5847_v50  ;;  %v5849_v26 = vpop.eup %5848 }
 0xc0a   :  { %5852 = vrcp.f32 %v2370_v52  ;;  %v2578_v22 = vadd.f32 1.0, %v5849_v26 }
 0xc0b   :  { %5854 = vrcp.f32 %v2482_v61 }
 0xc0c   :  { %5856 = vrcp.f32 %v2578_v22 }
 0xc16   :  { %v5851_v20 = vpop.eup %5850 }
 0xc17   :  { %v5853_v31 = vpop.eup %5852  ;;  %v2199_v38 = vmul.f32 %v5851_v20, %v6751_v51 }
 0xc18   :  { %v5855_v43 = vpop.eup %5854  ;;  %v2374_v28 = vmul.f32 %v5853_v31, %v6756_v59 }
 0xc19   :  { %v5857_v54 = vpop.eup %5856  ;;  %v2486_v30 = vmul.f32 %v5855_v43, %v6758_v60 }
 0xc1a   :  { %v2582_v2 = vmul.f32 %v5857_v54, %v6764_v24 }
 0xc67   :  { %v2202_v56 = vpop.permute.xlu0 %2201 }
 0xc68   :  { %v2204_v13 = vmul.f32 %v5851_v20, %v2202_v56 }
 0xc6a   :  { %2206 = vrot.lane.b32.xlu0 %v2204_v13, %s6156_s16  ;;  %v4869_v13 = vld [vmem:[%s7378_s0 + $0xa] sm:$0x3] }
 0xc70   :  { %v2377_v25 = vpop.permute.xlu0 %2376 }
 0xc71   :  { %v2489_v35 = vpop.permute.xlu1 %2488  ;;  %v2379_v45 = vmul.f32 %v5853_v31, %v2377_v25 }
 0xc72   :  { %v2491_v46 = vmul.f32 %v5855_v43, %v2489_v35 }
 0xc73   :  { %2381 = vrot.lane.b32.xlu0 %v2379_v45, %s6156_s16 }
 0xc74   :  { %2493 = vrot.lane.b32.xlu1 %v2491_v46, %s6156_s16 }
 0xc78   :  { %v2585_v63 = vpop.permute.xlu1 %2584 }
 0xc79   :  { %v2587_v1 = vmul.f32 %v5857_v54, %v2585_v63 }
 0xc7b   :  { %2589 = vrot.lane.b32.xlu1 %v2587_v1, %s6156_s16 }
 0xcdc   :  { %v2207_v11 = vpop.permute.xlu0 %2206 }
 0xcdd   :  { %v6923_v12 = vadd.f32 %v2207_v11, %v2199_v38 }
 0xcdf   :  { %5858 = vtanh.f32 %v6923_v12 }
 0xce5   :  { %v2382_v37 = vpop.permute.xlu0 %2381 }
 0xce6   :  { %v2494_v3 = vpop.permute.xlu1 %2493  ;;  %v6928_v5 = vadd.f32 %v2382_v37, %v2374_v28 }
 0xce7   :  { %v6930_v7 = vadd.f32 %v2494_v3, %v2486_v30 }
 0xce8   :  { %5860 = vtanh.f32 %v6928_v5 }
 0xce9   :  { %5862 = vtanh.f32 %v6930_v7 }
 0xcec   :  { %v5859_v51 = vpop.eup %5858 }
 0xced   :  { %v2590_v48 = vpop.permute.xlu1 %2589  ;;  %2212 = vrot.lane.b32.xlu0 %v5859_v51, %s6155_s15 }
 0xcee   :  { %v6936_v49 = vadd.f32 %v2590_v48, %v2582_v2 }
 0xcf0   :  { %5864 = vtanh.f32 %v6936_v49 }
 0xcf5   :  { %v5861_v59 = vpop.eup %5860 }
 0xcf6   :  { %v5863_v60 = vpop.eup %5862  ;;  %2387 = vrot.lane.b32.xlu0 %v5861_v59, %s6155_s15 }
 0xcf7   :  { %2499 = vrot.lane.b32.xlu1 %v5863_v60, %s6155_s15 }
 0xcfd   :  { %v5865_v50 = vpop.eup %5864 }
 0xcfe   :  { %2595 = vrot.lane.b32.xlu1 %v5865_v50, %s6155_s15 }
 0xd5f   :  { %v2213_v52 = vpop.permute.xlu0 %2212 }
 0xd60   :  { %v2215_v61 = vmul.f32 %v5851_v20, %v2213_v52  ;;  %v4870_v20 = vld [vmem:[%s7379_s1 + $0xa] sm:$0x3] }
 0xd62   :  { %2600 = vrot.lane.b32.xlu0 %v2215_v61, %s6156_s16 }
 0xd68   :  { %v2388_v24 = vpop.permute.xlu0 %2387 }
 0xd69   :  { %v2500_v26 = vpop.permute.xlu1 %2499  ;;  %v2390_v22 = vmul.f32 %v5853_v31, %v2388_v24 }
 0xd6a   :  { %v2502_v56 = vmul.f32 %v5855_v43, %v2500_v26 }
 0xd6b   :  { %2775 = vrot.lane.b32.xlu0 %v2390_v22, %s6156_s16 }
 0xd6c   :  { %2675 = vrot.lane.b32.xlu1 %v2502_v56, %s6156_s16 }
 0xd6f   :  { %2955 = vperm.xlu0 %5720, %v4869_v13  }
 0xd70   :  { %v2596_v25 = vpop.permute.xlu1 %2595 }
 0xd71   :  { %v2598_v35 = vmul.f32 %v5857_v54, %v2596_v25 }
 0xd73   :  { %2850 = vrot.lane.b32.xlu1 %v2598_v35, %s6156_s16 }
 0xd77   :  { %2961 = vperm.xlu1 %5721, %v4870_v20  }
 0xdd4   :  { %v2601_v31 = vpop.permute.xlu0 %2600 }
 0xdd5   :  { %5453 = vmatmul.mubr.msk.f32.vlgmr.msra.gmra.mxu0 %vm181_vm1, %v2601_v31 }
 0xdd6   :  { %5467 = vmatpush3.msra.mxu0 %v6781_v17  ;;  %5474 = vmatprep.mubr.msk.f32.mxu0 %vm6153_vm0, %v6152_v0 }
 0xdd7   :  { %5468 = vmatprep.subr.mxu0 %v6152_v0 }
 0xdd8   :  { %5469 = vmatpush3.msra.mxu0 %v6787_v19 }
 0xdd9   :  { %5470 = vmatprep.subr.mxu0 %v6152_v0 }
 0xdda   :  { %5471 = vmatpush3.msra.mxu0 %v6791_v44 }
 0xddb   :  { %5472 = vmatprep.subr.mxu0 %v6152_v0 }
 0xddc   :  { %5473 = vmatpush3.msra.mxu0 %v6795_v27 }
 0xddd   :  { %5488 = vmatprep.subr.mxu0 %v6152_v0  ;;  %v2776_v43 = vpop.permute.xlu0 %2775 }
 0xdde   :  { %v2676_v45 = vpop.permute.xlu1 %2675  ;;  %5475 = vmatmul.mubr.msk.f32.vlgmr.msra.gmra.mxu0 %vm181_vm1, %v2776_v43 }
 0xddf   :  { %5464 = vmatmul.mubr.msk.f32.vlgmr.msra.gmra.mxu1 %vm181_vm1, %v2676_v45  ;;  %5489 = vmatpush3.msra.mxu0 %v6801_v47 }
 0xde0   :  { %5478 = vmatpush3.msra.mxu1 %v6804_v32  ;;  %5490 = vmatprep.subr.mxu0 %v6152_v0 }
 0xde1   :  { %5479 = vmatprep.subr.mxu1 %v6152_v0  ;;  %5491 = vmatpush3.msra.mxu0 %v6809_v62 }
 0xde2   :  { %5480 = vmatpush3.msra.mxu1 %v6812_v34  ;;  %5492 = vmatprep.subr.mxu0 %v6152_v0 }
 0xde3   :  { %5481 = vmatprep.subr.mxu1 %v6152_v0  ;;  %5493 = vmatpush3.msra.mxu0 %v6817_v10 }
 0xde4   :  { %5482 = vmatpush3.msra.mxu1 %v6820_v14  ;;  %5494 = vmatprep.subr.mxu0 %v6152_v0 }
 0xde5   :  { %5483 = vmatprep.subr.mxu1 %v6152_v0  ;;  %5485 = vmatprep.mubr.msk.f32.mxu1 %vm6153_vm0, %v6152_v0  ;;  %v2851_v46 = vpop.permute.xlu1 %2850 }
 0xde6   :  { %5484 = vmatpush3.msra.mxu1 %v6827_v18  ;;  %5495 = vmatpush3.msra.mxu0 %v6830_v15 }
 0xde7   :  { %5496 = vmatprep.mubr.msk.f32.mxu0 %vm6153_vm0, %v6152_v0  ;;  %5486 = vmatmul.mubr.msk.f32.vlgmr.msra.gmra.mxu1 %vm181_vm1, %v2851_v46 }
 0xde8   :  { %5497 = vmatmul.mubr.msk.f32.vlgmr.msra.gmra.mxu0 %vm181_vm1, %v2676_v45  ;;  %5499 = vmatprep.subr.mxu1 %v6152_v0 }
 0xde9   :  { %5500 = vmatpush3.msra.mxu1 %v6676_v4  ;;  %5507 = vmatprep.mubr.msk.f32.mxu1 %vm6153_vm0, %v6152_v0 }
 0xdea   :  { %5501 = vmatprep.subr.mxu1 %v6152_v0  ;;  %5510 = vmatprep.subr.mxu0 %v6152_v0  ;;  %v2956_v11 = vpop.permute.xlu0 %2955 }
 0xdeb   :  { %5502 = vmatpush3.msra.mxu1 %v6683_v6  ;;  %5511 = vmatpush3.msra.mxu0 %v6844_v39  ;;  %v2958_v28 = vmul.f32 %v6720_v57, %v2956_v11 }
 0xdec   :  { %5503 = vmatprep.subr.mxu1 %v6152_v0  ;;  %5512 = vmatprep.subr.mxu0 %v6152_v0 }
 0xded   :  { %5504 = vmatpush3.msra.mxu1 %v6689_v8  ;;  %5513 = vmatpush3.msra.mxu0 %v6850_v21 }
 0xdee   :  { %5505 = vmatprep.subr.mxu1 %v6152_v0  ;;  %5514 = vmatprep.subr.mxu0 %v6152_v0 }
 0xdef   :  { %5506 = vmatpush3.msra.mxu1 %v6695_v55  ;;  %5515 = vmatpush3.msra.mxu0 %v6856_v33 }
 0xdf0   :  { %5508 = vmatmul.mubr.msk.f32.vlgmr.msra.gmra.mxu1 %vm181_vm1, %v2851_v46  ;;  %5516 = vmatprep.subr.mxu0 %v6152_v0 }
 0xdf1   :  { %5517 = vmatpush3.msra.mxu0 %v6861_v36  ;;  %5521 = vmatprep.subr.mxu1 %v6152_v0 }
 0xdf2   :  { %5518 = vmatprep.mubr.msk.f32.mxu0 %vm6153_vm0, %v6152_v0  ;;  %5522 = vmatpush3.msra.mxu1 %v6871_v40  ;;  %v2962_v50 = vpop.permute.xlu1 %2961 }
 0xdf3   :  { %5532 = vmatprep.subr.mxu0 %v6152_v0  ;;  %5523 = vmatprep.subr.mxu1 %v6152_v0  ;;  %v2964_v52 = vmul.f32 %v6733_v58, %v2962_v50 }
 0xdf4   :  { %5524 = vmatpush3.msra.mxu1 %v6880_v23  ;;  %5529 = vmatprep.mubr.msk.f32.mxu1 %vm6153_vm0, %v6152_v0 }
 0xdf5   :  { %5525 = vmatprep.subr.mxu1 %v6152_v0 }
 0xdf6   :  { %5526 = vmatpush3.msra.mxu1 %v6887_v41 }
 0xdf7   :  { %5527 = vmatprep.subr.mxu1 %v6152_v0 }
 0xdf8   :  { %5528 = vmatpush3.msra.mxu1 %v6894_v42 }
 0xdf9   :  { %5543 = vmatprep.subr.mxu1 %v6152_v0 }
 0xe95   :  { %v2670_v4 = vpop.f32.mrf.mxu0 }
 0xe97   :  { %v5454_v6 = vpop.f32.mrf.mxu0 }
 0xe9e   :  { %v2845_v8 = vpop.f32.mrf.mxu0 }
 0xe9f   :  { %v2745_v55 = vpop.f32.mrf.mxu1 }
 0xea0   :  { %v2746_v54 = vadd.f32 %v2745_v55, %v2670_v4  ;;  %v5476_v63 = vpop.f32.mrf.mxu0 }
 0xea1   :  { %v5465_v1 = vpop.f32.mrf.mxu1 }
 0xea2   :  { %v2749_v38 = vadd.f32 %v6901_v53, %v2746_v54 }
 0xea4   :  { %5866 = vtanh.f32 %v2749_v38  ;;  %v4865_v25 = vmul.f32 -1.442695, %v2749_v38 }
 0xea7   :  { %v2920_v30 = vpop.f32.mrf.mxu1 }
 0xea8   :  { %v2921_v37 = vadd.f32 %v2920_v30, %v2845_v8  ;;  %v3031_v3 = vpop.f32.mrf.mxu0 }
 0xea9   :  { %v3035_v51 = vadd.f32 %v3031_v3, %v2958_v28  ;;  %v5487_v2 = vpop.f32.mrf.mxu1 }
 0xeaa   :  { %v2924_v48 = vadd.f32 %v6908_v9, %v2921_v37  ;;  %v5498_v59 = vpop.f32.mrf.mxu0 }
 0xeab   :  { %v3036_v60 = vadd.f32 %v6727_v29, %v3035_v51 }
 0xeac   :  { %5868 = vtanh.f32 %v2924_v48  ;;  %v4868_v58 = vmul.f32 -1.442695, %v2924_v48 }
 0xead   :  { %5870 = vtanh.f32 %v3036_v60  ;;  %v4872_v35 = vmul.f32 -1.442695, %v3036_v60 }
 0xeb0   :  { %v3127_v61 = vpop.f32.mrf.mxu1 }
 0xeb1   :  { %v5867_v24 = vpop.eup %5866  ;;  %v3131_v26 = vadd.f32 %v3127_v61, %v2964_v52 }
 0xeb2   :  { %v5509_v22 = vpop.f32.mrf.mxu1  ;;  %2759 = vrot.lane.b32.xlu0 %v5867_v24, %s6155_s15 }
 0xeb3   :  { %v3132_v57 = vadd.f32 %v6740_v16, %v3131_v26 }
 0xeb5   :  { %5872 = vtanh.f32 %v3132_v57  ;;  %v4874_v31 = vmul.f32 -1.442695, %v3132_v57 }
 0xeb6   :  { %5874 = vpow2.f32 %v4865_v25 }
 0xeb7   :  { %5876 = vpow2.f32 %v4868_v58 }
 0xeb8   :  { %5878 = vpow2.f32 %v4872_v35 }
 0xeb9   :  { %v5869_v56 = vpop.eup %5868  ;;  %5880 = vpow2.f32 %v4874_v31 }
 0xeba   :  { %v5871_v13 = vpop.eup %5870  ;;  %2934 = vrot.lane.b32.xlu1 %v5869_v56, %s6155_s15 }
 0xebb   :  { %3046 = vrot.lane.b32.xlu0 %v5871_v13, %s6155_s15 }
 0xec2   :  { %v5873_v29 = vpop.eup %5872 }
 0xec3   :  { %3142 = vrot.lane.b32.xlu1 %v5873_v29, %s6155_s15  ;;  %v5875_v20 = vpop.eup %5874 }
 0xec4   :  { %v2753_v43 = vadd.f32 1.0, %v5875_v20  ;;  %v5877_v16 = vpop.eup %5876 }
 0xec5   :  { %v5879_v45 = vpop.eup %5878  ;;  %v2928_v46 = vadd.f32 1.0, %v5877_v16 }
 0xec6   :  { %5882 = vrcp.f32 %v2753_v43  ;;  %v3040_v4 = vadd.f32 1.0, %v5879_v45  ;;  %v5881_v6 = vpop.eup %5880  ;;  %v4881_v43 = vld [vmem:[%s7378_s0 + $0xc] sm:$0x3] }
 0xec7   :  { %5884 = vrcp.f32 %v2928_v46  ;;  %v3136_v55 = vadd.f32 1.0, %v5881_v6  ;;  %v4882_v46 = vld [vmem:[%s7379_s1 + $0xc] sm:$0x3] }
 0xec8   :  { %5886 = vrcp.f32 %v3040_v4 }
 0xec9   :  { %5888 = vrcp.f32 %v3136_v55 }
 0xed3   :  { %v5883_v8 = vpop.eup %5882 }
 0xed4   :  { %v5885_v1 = vpop.eup %5884  ;;  %v2757_v48 = vmul.f32 %v5883_v8, %v6923_v12 }
 0xed5   :  { %v5887_v11 = vpop.eup %5886  ;;  %v2932_v50 = vmul.f32 %v5885_v1, %v6928_v5 }
 0xed6   :  { %v5889_v3 = vpop.eup %5888  ;;  %v3044_v61 = vmul.f32 %v5887_v11, %v6930_v7 }
 0xed7   :  { %v3140_v57 = vmul.f32 %v5889_v3, %v6936_v49 }
 0xf24   :  { %v2760_v54 = vpop.permute.xlu0 %2759 }
 0xf25   :  { %v2762_v63 = vmul.f32 %v5883_v8, %v2760_v54 }
 0xf27   :  { %2764 = vrot.lane.b32.xlu0 %v2762_v63, %s6156_s16 }
 0xf2c   :  { %v2935_v38 = vpop.permute.xlu1 %2934 }
 0xf2d   :  { %v2937_v28 = vmul.f32 %v5885_v1, %v2935_v38  ;;  %v3047_v30 = vpop.permute.xlu0 %3046 }
 0xf2e   :  { %v3049_v37 = vmul.f32 %v5887_v11, %v3047_v30 }
 0xf2f   :  { %2939 = vrot.lane.b32.xlu1 %v2937_v28, %s6156_s16 }
 0xf30   :  { %3051 = vrot.lane.b32.xlu0 %v3049_v37, %s6156_s16 }
 0xf35   :  { %v3143_v51 = vpop.permute.xlu1 %3142 }
 0xf36   :  { %v3145_v2 = vmul.f32 %v5889_v3, %v3143_v51  ;;  %v7160_v51 = vld [vmem:[%s7387_s9] ss:$0 sm:$0xff] }
 0xf38   :  { %3147 = vrot.lane.b32.xlu1 %v3145_v2, %s6156_s16 }
 0xf99   :  { %v2765_v59 = vpop.permute.xlu0 %2764 }
 0xf9a   :  { %v7033_v60 = vadd.f32 %v2765_v59, %v2757_v48 }
 0xf9c   :  { %5890 = vtanh.f32 %v7033_v60 }
 0xfa1   :  { %v2940_v52 = vpop.permute.xlu1 %2939 }
 0xfa2   :  { %v7038_v24 = vadd.f32 %v2940_v52, %v2932_v50  ;;  %v3052_v26 = vpop.permute.xlu0 %3051 }
 0xfa3   :  { %v7040_v22 = vadd.f32 %v3052_v26, %v3044_v61 }
 0xfa4   :  { %5892 = vtanh.f32 %v7038_v24 }
 0xfa5   :  { %5894 = vtanh.f32 %v7040_v22 }
 0xfa9   :  { %v5891_v12 = vpop.eup %5890 }
 0xfaa   :  { %v3148_v56 = vpop.permute.xlu1 %3147  ;;  %2770 = vrot.lane.b32.xlu0 %v5891_v12, %s6155_s15 }
 0xfab   :  { %v7046_v13 = vadd.f32 %v3148_v56, %v3140_v57 }
 0xfad   :  { %5896 = vtanh.f32 %v7046_v13 }
 0xfb1   :  { %v5893_v5 = vpop.eup %5892 }
 0xfb2   :  { %v5895_v7 = vpop.eup %5894  ;;  %2945 = vrot.lane.b32.xlu1 %v5893_v5, %s6155_s15 }
 0xfb3   :  { %3057 = vrot.lane.b32.xlu0 %v5895_v7, %s6155_s15 }
 0xfba   :  { %v5897_v29 = vpop.eup %5896 }
 0xfbb   :  { %3153 = vrot.lane.b32.xlu1 %v5897_v29, %s6155_s15 }
0x101c   :  { %v2771_v25 = vpop.permute.xlu0 %2770 }
0x101d   :  { %v2773_v58 = vmul.f32 %v5883_v8, %v2771_v25 }
0x101f   :  { %3158 = vrot.lane.b32.xlu0 %v2773_v58, %s6156_s16 }
0x1024   :  { %v2946_v49 = vpop.permute.xlu1 %2945 }
0x1025   :  { %v2948_v35 = vmul.f32 %v5885_v1, %v2946_v49  ;;  %v3058_v20 = vpop.permute.xlu0 %3057 }
0x1026   :  { %v3060_v31 = vmul.f32 %v5887_v11, %v3058_v20  ;;  %v7153_v11 = vld [vmem:[%s7384_s6] ss:$0 sm:$0xff] }
0x1027   :  { %3333 = vrot.lane.b32.xlu0 %v2948_v35, %s6156_s16 }
0x1028   :  { %3233 = vrot.lane.b32.xlu1 %v3060_v31, %s6156_s16 }
0x102b   :  { %3513 = vperm.xlu0 %5720, %v4881_v43  }
0x102d   :  { %v3154_v16 = vpop.permute.xlu1 %3153 }
0x102e   :  { %v3156_v45 = vmul.f32 %v5889_v3, %v3154_v16 }
0x1030   :  { %3408 = vrot.lane.b32.xlu1 %v3156_v45, %s6156_s16 }
0x1034   :  { %3519 = vperm.xlu1 %5721, %v4882_v46  }
0x1091   :  { %v3159_v4 = vpop.permute.xlu0 %3158 }
0x1092   :  { %5519 = vmatmul.mubr.msk.f32.vlgmr.msra.gmra.mxu0 %vm181_vm1, %v3159_v4 }
0x1093   :  { %5533 = vmatpush3.msra.mxu0 %v6781_v17  ;;  %5540 = vmatprep.mubr.msk.f32.mxu0 %vm6153_vm0, %v6152_v0 }
0x1094   :  { %5534 = vmatprep.subr.mxu0 %v6152_v0 }
0x1095   :  { %5535 = vmatpush3.msra.mxu0 %v6787_v19  ;;  %v7096_v19 = vld [vmem:[#allocation7 + $0x18] sm:$0xff] }
0x1096   :  { %5536 = vmatprep.subr.mxu0 %v6152_v0 }
0x1097   :  { %5537 = vmatpush3.msra.mxu0 %v6791_v44  ;;  %v7103_v44 = vld [vmem:[#allocation7 + $0x10] sm:$0xff] }
0x1098   :  { %5538 = vmatprep.subr.mxu0 %v6152_v0 }
0x1099   :  { %5539 = vmatpush3.msra.mxu0 %v6795_v27  ;;  %v3334_v6 = vpop.permute.xlu0 %3333  ;;  %v7109_v27 = vld [vmem:[#allocation7 + $0x8] sm:$0xff] }
0x109a   :  { %v3234_v8 = vpop.permute.xlu1 %3233  ;;  %5541 = vmatmul.mubr.msk.f32.vlgmr.msra.gmra.mxu0 %vm181_vm1, %v3334_v6  ;;  %5554 = vmatprep.subr.mxu0 %v6152_v0 }
0x109b   :  { %5530 = vmatmul.mubr.msk.f32.vlgmr.msra.gmra.mxu1 %vm181_vm1, %v3234_v8  ;;  %5555 = vmatpush3.msra.mxu0 %v6801_v47  ;;  %v7115_v47 = vld [vmem:[#allocation7] sm:$0xff] }
0x109c   :  { %5544 = vmatpush3.msra.mxu1 %v6804_v32  ;;  %5556 = vmatprep.subr.mxu0 %v6152_v0 }
0x109d   :  { %5545 = vmatprep.subr.mxu1 %v6152_v0  ;;  %5557 = vmatpush3.msra.mxu0 %v6809_v62 }
0x109e   :  { %5546 = vmatpush3.msra.mxu1 %v6812_v34  ;;  %5558 = vmatprep.subr.mxu0 %v6152_v0 }
0x109f   :  { %5547 = vmatprep.subr.mxu1 %v6152_v0  ;;  %5559 = vmatpush3.msra.mxu0 %v6817_v10 }
0x10a0   :  { %5548 = vmatpush3.msra.mxu1 %v6820_v14  ;;  %5560 = vmatprep.subr.mxu0 %v6152_v0 }
0x10a1   :  { %5549 = vmatprep.subr.mxu1 %v6152_v0  ;;  %5551 = vmatprep.mubr.msk.f32.mxu1 %vm6153_vm0, %v6152_v0 }
0x10a2   :  { %5550 = vmatpush3.msra.mxu1 %v6827_v18  ;;  %v3409_v17 = vpop.permute.xlu1 %3408  ;;  %5561 = vmatpush3.msra.mxu0 %v6830_v15 }
0x10a3   :  { %5565 = vmatprep.subr.mxu1 %v6152_v0  ;;  %5562 = vmatprep.mubr.msk.f32.mxu0 %vm6153_vm0, %v6152_v0 }
0x10a4   :  { %5552 = vmatmul.mubr.msk.f32.vlgmr.msra.gmra.mxu1 %vm181_vm1, %v3409_v17  ;;  %5563 = vmatmul.mubr.msk.f32.vlgmr.msra.gmra.mxu0 %vm181_vm1, %v3234_v8 }
0x10a5   :  { %5566 = vmatpush3.msra.mxu1 %v7096_v19  ;;  %5573 = vmatprep.mubr.msk.f32.mxu1 %vm6153_vm0, %v6152_v0 }
0x10a6   :  { %5567 = vmatprep.subr.mxu1 %v6152_v0  ;;  %5576 = vmatprep.subr.mxu0 %v6152_v0 }
0x10a7   :  { %5568 = vmatpush3.msra.mxu1 %v7103_v44  ;;  %5577 = vmatpush3.msra.mxu0 %v6844_v39 }
0x10a8   :  { %5569 = vmatprep.subr.mxu1 %v6152_v0  ;;  %5578 = vmatprep.subr.mxu0 %v6152_v0 }
0x10a9   :  { %5570 = vmatpush3.msra.mxu1 %v7109_v27  ;;  %5579 = vmatpush3.msra.mxu0 %v6850_v21  ;;  %v3514_v21 = vpop.permute.xlu0 %3513 }
0x10aa   :  { %5571 = vmatprep.subr.mxu1 %v6152_v0  ;;  %5580 = vmatprep.subr.mxu0 %v6152_v0 }
0x10ab   :  { %5572 = vmatpush3.msra.mxu1 %v7115_v47  ;;  %5581 = vmatpush3.msra.mxu0 %v6856_v33  ;;  %v7140_v33 = vld [vmem:[%s7380_s2] ss:$0 sm:$0xff] }
0x10ac   :  { %5574 = vmatmul.mubr.msk.f32.vlgmr.msra.gmra.mxu1 %vm181_vm1, %v3409_v17  ;;  %5582 = vmatprep.subr.mxu0 %v6152_v0 }
0x10ad   :  { %5583 = vmatpush3.msra.mxu0 %v6861_v36  ;;  %5584 = vmatprep.mubr.msk.f32.mxu0 %vm6153_vm0, %v6152_v0  ;;  %v3516_v36 = vmul.f32 %v7140_v33, %v3514_v21 }
0x10ae   :  { %5587 = vmatprep.subr.mxu1 %v6152_v0  ;;  %5598 = vmatprep.subr.mxu0 %v6152_v0 }
0x10af   :  { %5588 = vmatpush3.msra.mxu1 %v6871_v40  ;;  %5595 = vmatprep.mubr.msk.f32.mxu1 %vm6153_vm0, %v6152_v0  ;;  %v3520_v38 = vpop.permute.xlu1 %3519 }
0x10b0   :  { %5589 = vmatprep.subr.mxu1 %v6152_v0  ;;  %v3522_v28 = vmul.f32 %v7153_v11, %v3520_v38 }
0x10b1   :  { %5590 = vmatpush3.msra.mxu1 %v6880_v23 }
0x10b2   :  { %5591 = vmatprep.subr.mxu1 %v6152_v0 }
0x10b3   :  { %5592 = vmatpush3.msra.mxu1 %v6887_v41 }
0x10b4   :  { %5593 = vmatprep.subr.mxu1 %v6152_v0 }
0x10b5   :  { %5594 = vmatpush3.msra.mxu1 %v6894_v42 }
0x10b6   :  { %5609 = vmatprep.subr.mxu1 %v6152_v0 }
0x1152   :  { %v3228_v32 = vpop.f32.mrf.mxu0 }
0x1154   :  { %v5520_v62 = vpop.f32.mrf.mxu0 }
0x115a   :  { %v3403_v34 = vpop.f32.mrf.mxu0 }
0x115b   :  { %v3303_v10 = vpop.f32.mrf.mxu1 }
0x115c   :  { %v3304_v14 = vadd.f32 %v3303_v10, %v3228_v32  ;;  %v5542_v18 = vpop.f32.mrf.mxu0 }
0x115d   :  { %v5531_v15 = vpop.f32.mrf.mxu1 }
0x115e   :  { %v3307_v39 = vadd.f32 %v6901_v53, %v3304_v14  ;;  %v7147_v53 = vld [vmem:[%s7383_s5] ss:$0 sm:$0xff] }
0x1160   :  { %5898 = vtanh.f32 %v3307_v39  ;;  %v4877_v52 = vmul.f32 -1.442695, %v3307_v39 }
0x1164   :  { %v3478_v40 = vpop.f32.mrf.mxu1  ;;  %v3589_v23 = vpop.f32.mrf.mxu0 }
0x1165   :  { %v3479_v41 = vadd.f32 %v3478_v40, %v3403_v34  ;;  %v3593_v42 = vadd.f32 %v3589_v23, %v3516_v36 }
0x1166   :  { %v5553_v55 = vpop.f32.mrf.mxu1  ;;  %v5564_v54 = vpop.f32.mrf.mxu0 }
0x1167   :  { %v3482_v63 = vadd.f32 %v6908_v9, %v3479_v41  ;;  %v3594_v1 = vadd.f32 %v7147_v53, %v3593_v42 }
0x1169   :  { %5900 = vtanh.f32 %v3482_v63  ;;  %v4880_v61 = vmul.f32 -1.442695, %v3482_v63  ;;  %v4884_v26 = vmul.f32 -1.442695, %v3594_v1 }
0x116a   :  { %5902 = vtanh.f32 %v3594_v1 }
0x116c   :  { %v3685_v30 = vpop.f32.mrf.mxu1 }
0x116d   :  { %v5899_v37 = vpop.eup %5898  ;;  %v3689_v9 = vadd.f32 %v3685_v30, %v3522_v28  ;;  %v4893_v28 = vld [vmem:[%s7378_s0 + $0xe] sm:$0x3] }
0x116e   :  { %v5575_v3 = vpop.f32.mrf.mxu1  ;;  %3317 = vrot.lane.b32.xlu0 %v5899_v37, %s6155_s15 }
0x116f   :  { %v3690_v2 = vadd.f32 %v7160_v51, %v3689_v9  ;;  %v4894_v9 = vld [vmem:[%s7379_s1 + $0xe] sm:$0x3] }
0x1171   :  { %5904 = vtanh.f32 %v3690_v2  ;;  %v4886_v57 = vmul.f32 -1.442695, %v3690_v2  ;;  %v7201_v2 = vld [vmem:[#allocation7 + $0x38] sm:$0xff] }
0x1172   :  { %5906 = vpow2.f32 %v4877_v52 }
0x1173   :  { %5908 = vpow2.f32 %v4880_v61 }
0x1174   :  { %5910 = vpow2.f32 %v4884_v26  ;;  %v6020_v26 = vld [vmem:[#allocation2 + $0x18] sm:$0xff] }
0x1175   :  { %5912 = vpow2.f32 %v4886_v57  ;;  %v6022_v57 = vld [vmem:[#allocation2 + $0x10] sm:$0xff] }
0x1176   :  { %v5901_v48 = vpop.eup %5900 }
0x1177   :  { %v5903_v59 = vpop.eup %5902  ;;  %3492 = vrot.lane.b32.xlu0 %v5901_v48, %s6155_s15  ;;  %v7207_v48 = vld [vmem:[#allocation7 + $0x30] sm:$0xff] }
0x1178   :  { %3604 = vrot.lane.b32.xlu1 %v5903_v59, %s6155_s15  ;;  %v7211_v59 = vld [vmem:[#allocation7 + $0x28] sm:$0xff] }
0x117e   :  { %v5905_v50 = vpop.eup %5904 }
0x117f   :  { %3700 = vrot.lane.b32.xlu1 %v5905_v50, %s6155_s15  ;;  %v5907_v12 = vpop.eup %5906  ;;  %v7215_v50 = vld [vmem:[#allocation7 + $0x20] sm:$0xff] }
0x1180   :  { %v3311_v56 = vadd.f32 1.0, %v5907_v12  ;;  %v5909_v5 = vpop.eup %5908  ;;  %v7221_v12 = vld [vmem:[#allocation5 + $0x18] sm:$0xff] }
0x1181   :  { %v5911_v7 = vpop.eup %5910  ;;  %v3486_v29 = vadd.f32 1.0, %v5909_v5  ;;  %v6024_v5 = vld [vmem:[#allocation2 + $0x8] sm:$0xff] }
0x1182   :  { %5914 = vrcp.f32 %v3311_v56  ;;  %v3598_v25 = vadd.f32 1.0, %v5911_v7  ;;  %v5913_v58 = vpop.eup %5912  ;;  %v7226_v56 = vld [vmem:[#allocation5 + $0x10] sm:$0xff]  ;;  %v7231_v7 = vld [vmem:[#allocation5 + $0x8] sm:$0xff] }
0x1183   :  { %5916 = vrcp.f32 %v3486_v29  ;;  %v3694_v35 = vadd.f32 1.0, %v5913_v58  ;;  %v6027_v58 = vld [vmem:[#allocation2] sm:$0xff] }
0x1184   :  { %5918 = vrcp.f32 %v3598_v25  ;;  %v7238_v25 = vld [vmem:[#allocation5] sm:$0xff] }
0x1185   :  { %5920 = vrcp.f32 %v3694_v35  ;;  %v6029_v35 = vld [vmem:[#allocation2 + $0x30] sm:$0xff] }
0x118f   :  { %v5915_v49 = vpop.eup %5914 }
0x1190   :  { %v5917_v43 = vpop.eup %5916  ;;  %v3315_v62 = vmul.f32 %v5915_v49, %v7033_v60 }
0x1191   :  { %v5919_v45 = vpop.eup %5918  ;;  %v3490_v14 = vmul.f32 %v5917_v43, %v7038_v24 }
0x1192   :  { %v5921_v8 = vpop.eup %5920  ;;  %v3602_v18 = vmul.f32 %v5919_v45, %v7040_v22 }
0x1193   :  { %v3698_v40 = vmul.f32 %v5921_v8, %v7046_v13 }
0x11e0   :  { %v3318_v20 = vpop.permute.xlu0 %3317 }
0x11e1   :  { %v3320_v31 = vmul.f32 %v5915_v49, %v3318_v20  ;;  %v6034_v20 = vld [vmem:[%s7381_s3 + $0x8] sm:$0xff] }
0x11e3   :  { %3322 = vrot.lane.b32.xlu0 %v3320_v31, %s6156_s16  ;;  %v6035_v31 = vld [vmem:[%s7381_s3] sm:$0xff] }
0x11e9   :  { %v3493_v16 = vpop.permute.xlu0 %3492 }
0x11ea   :  { %v3605_v46 = vpop.permute.xlu1 %3604  ;;  %v3495_v4 = vmul.f32 %v5917_v43, %v3493_v16 }
0x11eb   :  { %v3607_v6 = vmul.f32 %v5919_v45, %v3605_v46 }
0x11ec   :  { %3497 = vrot.lane.b32.xlu0 %v3495_v4, %s6156_s16 }
0x11ed   :  { %3609 = vrot.lane.b32.xlu1 %v3607_v6, %s6156_s16 }
0x11f1   :  { %v3701_v17 = vpop.permute.xlu1 %3700 }
0x11f2   :  { %v3703_v32 = vmul.f32 %v5921_v8, %v3701_v17  ;;  %v7285_v17 = vld [vmem:[%s7383_s5 + $0x1] ss:$0 sm:$0xff] }
0x11f4   :  { %3705 = vrot.lane.b32.xlu1 %v3703_v32, %s6156_s16 }
0x1255   :  { %v3323_v34 = vpop.permute.xlu0 %3322 }
0x1256   :  { %v7171_v10 = vadd.f32 %v3323_v34, %v3315_v62 }
0x1258   :  { %5922 = vtanh.f32 %v7171_v10 }
0x125e   :  { %v3498_v15 = vpop.permute.xlu0 %3497 }
0x125f   :  { %v3610_v39 = vpop.permute.xlu1 %3609  ;;  %v7176_v21 = vadd.f32 %v3498_v15, %v3490_v14 }
0x1260   :  { %v7178_v36 = vadd.f32 %v3610_v39, %v3602_v18 }
0x1261   :  { %5924 = vtanh.f32 %v7176_v21 }
0x1262   :  { %5926 = vtanh.f32 %v7178_v36 }
0x1265   :  { %v5923_v60 = vpop.eup %5922 }
0x1266   :  { %v3706_v23 = vpop.permute.xlu1 %3705  ;;  %3328 = vrot.lane.b32.xlu0 %v5923_v60, %s6155_s15 }
0x1267   :  { %v7184_v41 = vadd.f32 %v3706_v23, %v3698_v40  ;;  %v7292_v40 = vld [vmem:[%s7387_s9 + $0x1] ss:$0 sm:$0xff] }
0x1269   :  { %5928 = vtanh.f32 %v7184_v41 }
0x126e   :  { %v5925_v24 = vpop.eup %5924 }
0x126f   :  { %v5927_v22 = vpop.eup %5926  ;;  %3503 = vrot.lane.b32.xlu0 %v5925_v24, %s6155_s15 }
0x1270   :  { %3615 = vrot.lane.b32.xlu1 %v5927_v22, %s6155_s15 }
0x1276   :  { %v5929_v42 = vpop.eup %5928 }
0x1277   :  { %3711 = vrot.lane.b32.xlu1 %v5929_v42, %s6155_s15 }
0x12d8   :  { %v3329_v55 = vpop.permute.xlu0 %3328 }
0x12d9   :  { %v3331_v54 = vmul.f32 %v5915_v49, %v3329_v55  ;;  %v6028_v49 = vld [vmem:[#allocation2 + $0x38] sm:$0xff] }
0x12db   :  { %3716 = vrot.lane.b32.xlu0 %v3331_v54, %s6156_s16 }
0x12e1   :  { %v3504_v13 = vpop.permute.xlu0 %3503 }
0x12e2   :  { %v3616_v63 = vpop.permute.xlu1 %3615  ;;  %v3506_v1 = vmul.f32 %v5917_v43, %v3504_v13 }
0x12e3   :  { %v3618_v38 = vmul.f32 %v5919_v45, %v3616_v63 }
0x12e4   :  { %3891 = vrot.lane.b32.xlu0 %v3506_v1, %s6156_s16 }
0x12e5   :  { %3791 = vrot.lane.b32.xlu1 %v3618_v38, %s6156_s16 }
0x12e8   :  { %4071 = vperm.xlu0 %5720, %v4893_v28  }
0x12e9   :  { %v3712_v30 = vpop.permute.xlu1 %3711 }
0x12ea   :  { %v3714_v37 = vmul.f32 %v5921_v8, %v3712_v30 }
0x12ec   :  { %3966 = vrot.lane.b32.xlu1 %v3714_v37, %s6156_s16 }
0x12f0   :  { %4077 = vperm.xlu1 %5721, %v4894_v9  }
0x134d   :  { %v3717_v3 = vpop.permute.xlu0 %3716 }
0x134e   :  { %5585 = vmatmul.mubr.msk.f32.vlgmr.msra.gmra.mxu0 %vm181_vm1, %v3717_v3 }
0x134f   :  { %5599 = vmatpush3.msra.mxu0 %v7201_v2  ;;  %5606 = vmatprep.mubr.msk.f32.mxu0 %vm6153_vm0, %v6152_v0 }
0x1350   :  { %5600 = vmatprep.subr.mxu0 %v6152_v0 }
0x1351   :  { %5601 = vmatpush3.msra.mxu0 %v7207_v48 }
0x1352   :  { %5602 = vmatprep.subr.mxu0 %v6152_v0 }
0x1353   :  { %5603 = vmatpush3.msra.mxu0 %v7211_v59 }
0x1354   :  { %5604 = vmatprep.subr.mxu0 %v6152_v0 }
0x1355   :  { %5605 = vmatpush3.msra.mxu0 %v7215_v50 }
0x1356   :  { %5620 = vmatprep.subr.mxu0 %v6152_v0  ;;  %v3892_v52 = vpop.permute.xlu0 %3891 }
0x1357   :  { %v3792_v61 = vpop.permute.xlu1 %3791  ;;  %5607 = vmatmul.mubr.msk.f32.vlgmr.msra.gmra.mxu0 %vm181_vm1, %v3892_v52 }
0x1358   :  { %5596 = vmatmul.mubr.msk.f32.vlgmr.msra.gmra.mxu1 %vm181_vm1, %v3792_v61  ;;  %5621 = vmatpush3.msra.mxu0 %v6020_v26 }
0x1359   :  { %5610 = vmatpush3.msra.mxu1 %v7221_v12  ;;  %5622 = vmatprep.subr.mxu0 %v6152_v0 }
0x135a   :  { %5611 = vmatprep.subr.mxu1 %v6152_v0  ;;  %5623 = vmatpush3.msra.mxu0 %v6022_v57 }
0x135b   :  { %5612 = vmatpush3.msra.mxu1 %v7226_v56  ;;  %5624 = vmatprep.subr.mxu0 %v6152_v0 }
0x135c   :  { %5613 = vmatprep.subr.mxu1 %v6152_v0  ;;  %5625 = vmatpush3.msra.mxu0 %v6024_v5 }
0x135d   :  { %5614 = vmatpush3.msra.mxu1 %v7231_v7  ;;  %5626 = vmatprep.subr.mxu0 %v6152_v0 }
0x135e   :  { %5615 = vmatprep.subr.mxu1 %v6152_v0  ;;  %5617 = vmatprep.mubr.msk.f32.mxu1 %vm6153_vm0, %v6152_v0  ;;  %v3967_v29 = vpop.permute.xlu1 %3966 }
0x135f   :  { %5616 = vmatpush3.msra.mxu1 %v7238_v25  ;;  %5627 = vmatpush3.msra.mxu0 %v6027_v58 }
0x1360   :  { %5628 = vmatprep.mubr.msk.f32.mxu0 %vm6153_vm0, %v6152_v0  ;;  %5618 = vmatmul.mubr.msk.f32.vlgmr.msra.gmra.mxu1 %vm181_vm1, %v3967_v29 }
0x1361   :  { %5629 = vmatmul.mubr.msk.f32.vlgmr.msra.gmra.mxu0 %vm181_vm1, %v3792_v61  ;;  %5631 = vmatprep.subr.mxu1 %v6152_v0 }
0x1362   :  { %5632 = vmatpush3.msra.mxu1 %v7096_v19  ;;  %5639 = vmatprep.mubr.msk.f32.mxu1 %vm6153_vm0, %v6152_v0  ;;  %v6030_v19 = vld [vmem:[#allocation2 + $0x28] sm:$0xff] }
0x1363   :  { %5633 = vmatprep.subr.mxu1 %v6152_v0  ;;  %5642 = vmatprep.subr.mxu0 %v6152_v0  ;;  %v4072_v62 = vpop.permute.xlu0 %4071 }
0x1364   :  { %5634 = vmatpush3.msra.mxu1 %v7103_v44  ;;  %5643 = vmatpush3.msra.mxu0 %v6028_v49  ;;  %v6031_v44 = vld [vmem:[#allocation2 + $0x20] sm:$0xff]  ;;  %v4074_v34 = vmul.f32 %v7140_v33, %v4072_v62 }
0x1365   :  { %5635 = vmatprep.subr.mxu1 %v6152_v0  ;;  %5644 = vmatprep.subr.mxu0 %v6152_v0 }
0x1366   :  { %5636 = vmatpush3.msra.mxu1 %v7109_v27  ;;  %5645 = vmatpush3.msra.mxu0 %v6029_v35  ;;  %v6032_v27 = vld [vmem:[%s7381_s3 + $0x18] sm:$0xff] }
0x1367   :  { %5637 = vmatprep.subr.mxu1 %v6152_v0  ;;  %5646 = vmatprep.subr.mxu0 %v6152_v0 }
0x1368   :  { %5638 = vmatpush3.msra.mxu1 %v7115_v47  ;;  %5647 = vmatpush3.msra.mxu0 %v6030_v19  ;;  %v6033_v47 = vld [vmem:[%s7381_s3 + $0x10] sm:$0xff] }
0x1369   :  { %5640 = vmatmul.mubr.msk.f32.vlgmr.msra.gmra.mxu1 %vm181_vm1, %v3967_v29  ;;  %5648 = vmatprep.subr.mxu0 %v6152_v0 }
0x136a   :  { %5649 = vmatpush3.msra.mxu0 %v6031_v44  ;;  %5650 = vmatprep.mubr.msk.f32.mxu0 %vm6153_vm0, %v6152_v0 }
0x136b   :  { %5653 = vmatprep.subr.mxu1 %v6152_v0  ;;  %5664 = vmatprep.subr.mxu0 %v6152_v0  ;;  %v4078_v42 = vpop.permute.xlu1 %4077 }
0x136c   :  { %5654 = vmatpush3.msra.mxu1 %v6032_v27  ;;  %5661 = vmatprep.mubr.msk.f32.mxu1 %vm6153_vm0, %v6152_v0  ;;  %v4080_v33 = vmul.f32 %v7153_v11, %v4078_v42 }
0x136d   :  { %5655 = vmatprep.subr.mxu1 %v6152_v0 }
0x136e   :  { %5656 = vmatpush3.msra.mxu1 %v6033_v47 }
0x136f   :  { %5657 = vmatprep.subr.mxu1 %v6152_v0 }
0x1370   :  { %5658 = vmatpush3.msra.mxu1 %v6034_v20 }
0x1371   :  { %5659 = vmatprep.subr.mxu1 %v6152_v0 }
0x1372   :  { %5660 = vmatpush3.msra.mxu1 %v6035_v31 }
0x1373   :  { %5675 = vmatprep.subr.mxu1 %v6152_v0 }
0x140e   :  { %v3786_v43 = vpop.f32.mrf.mxu0 }
0x1410   :  { %v5586_v16 = vpop.f32.mrf.mxu0 }
0x1417   :  { %v3961_v45 = vpop.f32.mrf.mxu0 }
0x1418   :  { %v3861_v46 = vpop.f32.mrf.mxu1 }
0x1419   :  { %v3862_v4 = vadd.f32 %v3861_v46, %v3786_v43  ;;  %v5608_v6 = vpop.f32.mrf.mxu0 }
0x141a   :  { %v5597_v8 = vpop.f32.mrf.mxu1 }
0x141b   :  { %v3865_v32 = vadd.f32 %v7285_v17, %v3862_v4 }
0x141d   :  { %5930 = vtanh.f32 %v3865_v32  ;;  %v4889_v30 = vmul.f32 -1.442695, %v3865_v32 }
0x1420   :  { %v4036_v14 = vpop.f32.mrf.mxu1 }
0x1421   :  { %v4037_v18 = vadd.f32 %v4036_v14, %v3961_v45  ;;  %v4147_v15 = vpop.f32.mrf.mxu0 }
0x1422   :  { %v4151_v39 = vadd.f32 %v4147_v15, %v4074_v34  ;;  %v5619_v60 = vpop.f32.mrf.mxu1 }
0x1423   :  { %v4040_v23 = vadd.f32 %v7292_v40, %v4037_v18  ;;  %v5630_v24 = vpop.f32.mrf.mxu0 }
0x1424   :  { %v4152_v22 = vadd.f32 %v7147_v53, %v4151_v39 }
0x1425   :  { %5932 = vtanh.f32 %v4040_v23  ;;  %v4892_v11 = vmul.f32 -1.442695, %v4040_v23 }
0x1426   :  { %5934 = vtanh.f32 %v4152_v22  ;;  %v4896_v37 = vmul.f32 -1.442695, %v4152_v22 }
0x1429   :  { %v4243_v55 = vpop.f32.mrf.mxu1 }
0x142a   :  { %v5931_v54 = vpop.eup %5930  ;;  %v4247_v13 = vadd.f32 %v4243_v55, %v4080_v33 }
0x142b   :  { %v5641_v63 = vpop.f32.mrf.mxu1  ;;  %3875 = vrot.lane.b32.xlu0 %v5931_v54, %s6155_s15 }
0x142c   :  { %v4248_v1 = vadd.f32 %v7160_v51, %v4247_v13 }
0x142e   :  { %5936 = vtanh.f32 %v4248_v1  ;;  %v4898_v3 = vmul.f32 -1.442695, %v4248_v1 }
0x142f   :  { %5938 = vpow2.f32 %v4889_v30 }
0x1430   :  { %5940 = vpow2.f32 %v4892_v11 }
0x1431   :  { %5942 = vpow2.f32 %v4896_v37 }
0x1432   :  { %v5933_v38 = vpop.eup %5932  ;;  %5944 = vpow2.f32 %v4898_v3 }
0x1433   :  { %v5935_v28 = vpop.eup %5934  ;;  %4050 = vrot.lane.b32.xlu0 %v5933_v38, %s6155_s15 }
0x1434   :  { %4162 = vrot.lane.b32.xlu1 %v5935_v28, %s6155_s15 }
0x143b   :  { %v5937_v53 = vpop.eup %5936 }
0x143c   :  { %4258 = vrot.lane.b32.xlu1 %v5937_v53, %s6155_s15  ;;  %v5939_v9 = vpop.eup %5938 }
0x143d   :  { %v3869_v52 = vadd.f32 1.0, %v5939_v9  ;;  %v5941_v51 = vpop.eup %5940 }
0x143e   :  { %v5943_v61 = vpop.eup %5942  ;;  %v4044_v26 = vadd.f32 1.0, %v5941_v51 }
0x143f   :  { %5946 = vrcp.f32 %v3869_v52  ;;  %v4156_v57 = vadd.f32 1.0, %v5943_v61  ;;  %v5945_v5 = vpop.eup %5944 }
0x1440   :  { %5948 = vrcp.f32 %v4044_v26  ;;  %v4252_v58 = vadd.f32 1.0, %v5945_v5 }
0x1441   :  { %5950 = vrcp.f32 %v4156_v57 }
0x1442   :  { %5952 = vrcp.f32 %v4252_v58 }
0x144c   :  { %v5947_v29 = vpop.eup %5946 }
0x144d   :  { %v5949_v19 = vpop.eup %5948  ;;  %v3873_v46 = vmul.f32 %v5947_v29, %v7171_v10 }
0x144e   :  { %v5951_v27 = vpop.eup %5950  ;;  %v4048_v8 = vmul.f32 %v5949_v19, %v7176_v21 }
0x144f   :  { %v5953_v43 = vpop.eup %5952  ;;  %v4160_v32 = vmul.f32 %v5951_v27, %v7178_v36 }
0x1450   :  { %v4256_v10 = vmul.f32 %v5953_v43, %v7184_v41 }
0x149d   :  { %v3876_v49 = vpop.permute.xlu0 %3875 }
0x149e   :  { %v3878_v35 = vmul.f32 %v5947_v29, %v3876_v49 }
0x14a0   :  { %3880 = vrot.lane.b32.xlu0 %v3878_v35, %s6156_s16 }
0x14a5   :  { %v4051_v44 = vpop.permute.xlu0 %4050 }
0x14a6   :  { %v4163_v47 = vpop.permute.xlu1 %4162  ;;  %v4053_v20 = vmul.f32 %v5949_v19, %v4051_v44 }
0x14a7   :  { %v4165_v31 = vmul.f32 %v5951_v27, %v4163_v47 }
0x14a8   :  { %4055 = vrot.lane.b32.xlu0 %v4053_v20, %s6156_s16 }
0x14a9   :  { %4167 = vrot.lane.b32.xlu1 %v4165_v31, %s6156_s16 }
0x14ae   :  { %v4259_v16 = vpop.permute.xlu1 %4258 }
0x14af   :  { %v4261_v45 = vmul.f32 %v5953_v43, %v4259_v16  ;;  %v4625_v16 = vld [vmem:[#allocation8 + $0x10] sm:$0xff] }
0x14b1   :  { %4263 = vrot.lane.b32.xlu1 %v4261_v45, %s6156_s16 }
0x1512   :  { %v3881_v4 = vpop.permute.xlu0 %3880 }
0x1513   :  { %v7307_v6 = vadd.f32 %v3881_v4, %v3873_v46  ;;  %v4624_v46 = vld [vmem:[#allocation8 + $0x8] sm:$0xff]  ;;  %v4623_v4 = vld [vmem:[#allocation8] sm:$0xff] }
0x1515   :  { %5954 = vtanh.f32 %v7307_v6 }
0x151a   :  { %v4056_v62 = vpop.permute.xlu0 %4055 }
0x151b   :  { %v4168_v34 = vpop.permute.xlu1 %4167  ;;  %v7312_v14 = vadd.f32 %v4056_v62, %v4048_v8  ;;  %v4630_v8 = vld [vmem:[#allocation8 + $0x38] sm:$0xff]  ;;  %v4628_v62 = vld [vmem:[#allocation8 + $0x28] sm:$0xff] }
0x151c   :  { %v4170_v18 = vadd.f32 %v4168_v34, %v4160_v32  ;;  %v4629_v32 = vld [vmem:[#allocation8 + $0x30] sm:$0xff]  ;;  %v4627_v34 = vld [vmem:[#allocation8 + $0x20] sm:$0xff] }
0x151d   :  { %5956 = vtanh.f32 %v7312_v14 }
0x151e   :  { %5958 = vtanh.f32 %v4170_v18 }
0x1522   :  { %v5955_v15 = vpop.eup %5954 }
0x1523   :  { %v4264_v39 = vpop.permute.xlu1 %4263  ;;  %3886 = vrot.lane.b32.xlu0 %v5955_v15, %s6155_s15 }
0x1524   :  { %v4266_v60 = vadd.f32 %v4264_v39, %v4256_v10 }
0x1526   :  { %5960 = vtanh.f32 %v4266_v60 }
0x152a   :  { %v5957_v23 = vpop.eup %5956 }
0x152b   :  { %v5959_v21 = vpop.eup %5958  ;;  %4061 = vrot.lane.b32.xlu0 %v5957_v23, %s6155_s15 }
0x152c   :  { %4173 = vrot.lane.b32.xlu1 %v5959_v21, %s6155_s15 }
0x1533   :  { %v5961_v36 = vpop.eup %5960 }
0x1534   :  { %4269 = vrot.lane.b32.xlu1 %v5961_v36, %s6155_s15 }
0x1595   :  { %v3887_v24 = vpop.permute.xlu0 %3886 }
0x1596   :  { %v3889_v22 = vmul.f32 %v5947_v29, %v3887_v24 }
0x1598   :  { %4274 = vrot.lane.b32.xlu0 %v3889_v22, %s6156_s16 }
0x159d   :  { %v4062_v42 = vpop.permute.xlu0 %4061 }
0x159e   :  { %v4174_v41 = vpop.permute.xlu1 %4173  ;;  %v4064_v33 = vmul.f32 %v5949_v19, %v4062_v42 }
0x159f   :  { %v4176_v55 = vmul.f32 %v5951_v27, %v4174_v41 }
0x15a0   :  { %4449 = vrot.lane.b32.xlu0 %v4064_v33, %s6156_s16 }
0x15a1   :  { %4349 = vrot.lane.b32.xlu1 %v4176_v55, %s6156_s16 }
0x15a6   :  { %v4270_v54 = vpop.permute.xlu1 %4269 }
0x15a7   :  { %v4272_v13 = vmul.f32 %v5953_v43, %v4270_v54  ;;  %v4626_v43 = vld [vmem:[#allocation8 + $0x18] sm:$0xff] }
0x15a9   :  { %4524 = vrot.lane.b32.xlu1 %v4272_v13, %s6156_s16 }
0x160a   :  { %v4275_v63 = vpop.permute.xlu0 %4274 }
0x160b   :  { %5651 = vmatmul.mubr.msk.f32.vlgmr.msra.gmra.mxu0 %vm181_vm1, %v4275_v63 }
0x160c   :  { %5665 = vmatpush3.msra.mxu0 %v7201_v2  ;;  %5672 = vmatprep.mubr.msk.f32.mxu0 %vm6153_vm0, %v6152_v0 }
0x160d   :  { %5666 = vmatprep.subr.mxu0 %v6152_v0 }
0x160e   :  { %5667 = vmatpush3.msra.mxu0 %v7207_v48 }
0x160f   :  { %5668 = vmatprep.subr.mxu0 %v6152_v0 }
0x1610   :  { %5669 = vmatpush3.msra.mxu0 %v7211_v59 }
0x1611   :  { %5670 = vmatprep.subr.mxu0 %v6152_v0 }
0x1612   :  { %5671 = vmatpush3.msra.mxu0 %v7215_v50  ;;  %v4450_v1 = vpop.permute.xlu0 %4449 }
0x1613   :  { %v4350_v38 = vpop.permute.xlu1 %4349  ;;  %5673 = vmatmul.mubr.msk.f32.vlgmr.msra.gmra.mxu0 %vm181_vm1, %v4450_v1  ;;  %5686 = vmatprep.subr.mxu0 %v6152_v0 }
0x1614   :  { %5662 = vmatmul.mubr.msk.f32.vlgmr.msra.gmra.mxu1 %vm181_vm1, %v4350_v38  ;;  %5694 = vmatprep.mubr.msk.f32.mxu0 %vm6153_vm0, %v6152_v0 }
0x1615   :  { %5676 = vmatpush3.msra.mxu1 %v7221_v12  ;;  %5683 = vmatprep.mubr.msk.f32.mxu1 %vm6153_vm0, %v6152_v0 }
0x1616   :  { %5677 = vmatprep.subr.mxu1 %v6152_v0  ;;  %5687 = vmatpush3.msra.mxu0 %v4630_v8 }
0x1617   :  { %5678 = vmatpush3.msra.mxu1 %v7226_v56  ;;  %5688 = vmatprep.subr.mxu0 %v6152_v0 }
0x1618   :  { %5679 = vmatprep.subr.mxu1 %v6152_v0  ;;  %5689 = vmatpush3.msra.mxu0 %v4629_v32 }
0x1619   :  { %5680 = vmatpush3.msra.mxu1 %v7231_v7  ;;  %5690 = vmatprep.subr.mxu0 %v6152_v0 }
0x161a   :  { %5681 = vmatprep.subr.mxu1 %v6152_v0  ;;  %5691 = vmatpush3.msra.mxu0 %v4628_v62 }
0x161b   :  { %5682 = vmatpush3.msra.mxu1 %v7238_v25  ;;  %v4525_v2 = vpop.permute.xlu1 %4524  ;;  %5692 = vmatprep.subr.mxu0 %v6152_v0 }
0x161c   :  { %5684 = vmatmul.mubr.msk.f32.vlgmr.msra.gmra.mxu1 %vm181_vm1, %v4525_v2  ;;  %5697 = vmatprep.subr.mxu1 %v6152_v0 }
0x161d   :  { %5705 = vmatprep.mubr.msk.f32.mxu1 %vm6153_vm0, %v6152_v0  ;;  %5698 = vmatpush3.msra.mxu1 %v4626_v43 }
0x161e   :  { %5699 = vmatprep.subr.mxu1 %v6152_v0  ;;  %5693 = vmatpush3.msra.mxu0 %v4627_v34 }
0x161f   :  { %5700 = vmatpush3.msra.mxu1 %v4625_v16 }
0x1620   :  { %5701 = vmatprep.subr.mxu1 %v6152_v0 }
0x1621   :  { %5702 = vmatpush3.msra.mxu1 %v4624_v46 }
0x1622   :  { %5703 = vmatprep.subr.mxu1 %v6152_v0  ;;  %v4907_v0 = vld [vmem:[%s7389_s11] ss:$0 sm:$0xff] }
0x1623   :  { %5704 = vmatpush3.msra.mxu1 %v4623_v4 }
0x16cb   :  { %v4344_v48 = vpop.f32.mrf.mxu0 }
0x16cd   :  { %v5652_v59 = vpop.f32.mrf.mxu0 }
0x16d3   :  { %v4519_v50 = vpop.f32.mrf.mxu0 }
0x16d4   :  { %v4419_v12 = vpop.f32.mrf.mxu1 }
0x16d5   :  { %v4420_v56 = vadd.f32 %v4419_v12, %v4344_v48  ;;  %v5674_v28 = vpop.f32.mrf.mxu0 }
0x16d6   :  { %v5663_v53 = vpop.f32.mrf.mxu1 }
0x16d7   :  { %v4423_v7 = vadd.f32 %v7285_v17, %v4420_v56 }
0x16d9   :  { %5962 = vtanh.f32 %v4423_v7  ;;  %v4901_v52 = vmul.f32 -1.442695, %v4423_v7 }
0x16dc   :  { %v4594_v30 = vpop.f32.mrf.mxu1 }
0x16dd   :  { %v4595_v25 = vadd.f32 %v4594_v30, %v4519_v50 }
0x16de   :  { %v5685_v11 = vpop.f32.mrf.mxu1 }
0x16df   :  { %v4598_v37 = vadd.f32 %v7292_v40, %v4595_v25 }
0x16e1   :  { %5964 = vtanh.f32 %v4598_v37  ;;  %v4904_v51 = vmul.f32 -1.442695, %v4598_v37 }
0x16e2   :  { %5966 = vpow2.f32 %v4901_v52 }
0x16e3   :  { %5968 = vpow2.f32 %v4904_v51 }
0x16e6   :  { %v5963_v9 = vpop.eup %5962 }
0x16e7   :  { %4433 = vrot.lane.b32.xlu0 %v5963_v9, %s6155_s15 }
0x16ee   :  { %v5965_v3 = vpop.eup %5964 }
0x16ef   :  { %4608 = vrot.lane.b32.xlu1 %v5965_v3, %s6155_s15  ;;  %v5967_v61 = vpop.eup %5966 }
0x16f0   :  { %v4427_v26 = vadd.f32 1.0, %v5967_v61  ;;  %v5969_v17 = vpop.eup %5968 }
0x16f1   :  { %v4602_v57 = vadd.f32 1.0, %v5969_v17 }
0x16f2   :  { %5970 = vrcp.f32 %v4427_v26 }
0x16f3   :  { %5972 = vrcp.f32 %v4602_v57 }
0x16ff   :  { %v5971_v5 = vpop.eup %5970 }
0x1700   :  { %v5973_v58 = vpop.eup %5972  ;;  %v4431_v19 = vmul.f32 %v5971_v5, %v7307_v6 }
0x1701   :  { %v4606_v47 = vmul.f32 %v5973_v58, %v7312_v14 }
0x1759   :  { %v4434_v29 = vpop.permute.xlu0 %4433 }
0x175a   :  { %v4436_v40 = vmul.f32 %v5971_v5, %v4434_v29 }
0x175c   :  { %4438 = vrot.lane.b32.xlu0 %v4436_v40, %s6156_s16 }
0x1761   :  { %v4609_v49 = vpop.permute.xlu1 %4608 }
0x1762   :  { %v4611_v35 = vmul.f32 %v5973_v58, %v4609_v49 }
0x1764   :  { %4613 = vrot.lane.b32.xlu1 %v4611_v35, %s6156_s16 }
0x17ce   :  { %v4439_v44 = vpop.permute.xlu0 %4438 }
0x17cf   :  { %v4441_v27 = vadd.f32 %v4439_v44, %v4431_v19 }
0x17d1   :  { %5974 = vtanh.f32 %v4441_v27 }
0x17d6   :  { %v4614_v20 = vpop.permute.xlu1 %4613 }
0x17d7   :  { %v4616_v31 = vadd.f32 %v4614_v20, %v4606_v47 }
0x17d9   :  { %5976 = vtanh.f32 %v4616_v31 }
0x17de   :  { %v5975_v45 = vpop.eup %5974 }
0x17df   :  { %4444 = vrot.lane.b32.xlu0 %v5975_v45, %s6155_s15 }
0x17e6   :  { %v5977_v6 = vpop.eup %5976 }
0x17e7   :  { %4619 = vrot.lane.b32.xlu1 %v5977_v6, %s6155_s15  ;;  %s6157_s15 = smov [#allocation10]  }
0x17e8   :  { %s4796_s28 = sshll.u32 %s6157_s15, 4  ;;  %s4797_s28 = int_to_ptr.vmem [resolvable:$true] %s4796_s28 }
0x17e9   :  { %p6123_p7 = scmp.lt.s32.totalorder %s4797_s28, %s4797_s28 }
0x1851   :  { %v4445_v14 = vpop.permute.xlu0 %4444 }
0x1852   :  { %v4447_v18 = vmul.f32 %v5971_v5, %v4445_v14 }
0x1854   :  { %4707 = vrot.lane.b32.xlu1 %v4447_v18, %s6156_s16 }
0x1859   :  { %v4620_v15 = vpop.permute.xlu1 %4619 }
0x185a   :  { %v4622_v10 = vmul.f32 %v5973_v58, %v4620_v15 }
0x185c   :  { %4632 = vrot.lane.b32.xlu0 %v4622_v10, %s6156_s16  ;;  %s6118_s16 = scalar_lea.vmem %s4797_s28, 32 }
0x185d   :  { %p6119_p6 = scmp.ne.s32.totalorder %s4797_s28, %s6118_s16  ;;  %p6124_p8 = scmp.lt.s32.totalorder %s6118_s16, %s6118_s16 }
0x185f   :  { %p6125_p9 = por %p6124_p8, %p6123_p7 }
0x1861   :  { %p6126_p10 = pnand %p6125_p9, %p6119_p6 }
0x18c6   :  { %v4708_v39 = vpop.permute.xlu1 %4707 }
0x18c7   :  { %5706 = vmatmul.mubr.msk.f32.vlgmr.msra.gmra.mxu1 %vm181_vm1, %v4708_v39 }
0x18ce   :  { %v4633_v60 = vpop.permute.xlu0 %4632 }
0x18cf   :  { %5695 = vmatmul.mubr.msk.f32.vlgmr.msra.gmra.mxu0 %vm181_vm1, %v4633_v60 }
0x1987   :  { %v4777_v23 = vpop.f32.mrf.mxu1 }
0x1989   :  { %v5707_v21 = vpop.f32.mrf.mxu1 }
0x198f   :  { %v4702_v36 = vpop.f32.mrf.mxu0 }
0x1990   :  { %v4778_v24 = vadd.f32 %v4777_v23, %v4702_v36 }
0x1991   :  { %v5696_v22 = vpop.f32.mrf.mxu0 }
0x1992   :  { %v4788_v42 = vadd.f32 %v4907_v0, %v4778_v24 }
0x1994   :  { %4789 = vst [vmem:[#allocation10] sm:$0x3] %v4788_v42 }
0x1995   :  { %6129 = shalt.err (!%p6126_p10)
}
0x1996   :  { %4799 = dma.vmem_to_hbm [thread:$0]  %s4797_s28, 32, %s7390_s12, [#allocation4]  }
0x1997   :  { %6144 = dma.done.wait [#allocation4], 32  }
0x1998   :  { %6145 = vsyncadd [#allocation4], 4294967264 }
0x1999   :  { %4803 = vsyncpa [#allocation3], 1 }
0x199a   :  { %4804 = vsyncpa [#allocation6], 1 }
0x199b   :  { %4805 = vsyncpa [#allocation9], 1 }
0x199c   :  { %4806 = vsyncpa [#allocation4], 1 }

</bundles_post_ra>
